<compile_context>
chip_gen: v5e
topology: v5e:2x2
jax: 0.10.0
libtpu: 0.0.40
codegen_flags: <defaults>
</compile_context>

<pallas_src>
import numpy as np
import jax
import jax.numpy as jnp
from jax.experimental import pallas as pl
from jax.experimental.pallas import tpu as pltpu

N_QUBITS = 4


def _qlayer_kernel(zphase_ref, rytrig_ref, ang_ref, out_ref):
    """Simulate the 4-qubit circuit for one (8,128)=1024-element batch tile.

    zphase_ref: SMEM (4, 2**nq)  rows: [cos/sin of fused layer-1 RZ phase,
                                        cos/sin of fused layer-2 RZ phase] per basis state
    rytrig_ref: SMEM (2*nq, 2)   [cos(half), sin(half)] of RY angles, layer 1 then layer 2
    ang_ref:    VMEM (nq, 8, 128) encoding half-angles (feature map already applied)
    out_ref:    VMEM (nq, 8, 128) <Z_w> expectations
    """
    nq = out_ref.shape[0]
    dim = 1 << nq
    sub, lanes = out_ref.shape[1], out_ref.shape[2]

    def bit(i, w):               # wire 0 = most significant bit (PennyLane order)
        return (i >> (nq - 1 - w)) & 1

    def splat(s):                # hoisted SMEM-scalar -> full-vreg broadcast
        return jnp.full((sub, lanes), s, dtype=jnp.float32)

    # ---- 1) data encoding RY layer on |0..0>: analytic real product state ----
    cw = [jnp.cos(ang_ref[w]) for w in range(nq)]   # EUP ops (off the VALU slot)
    sw = [jnp.sin(ang_ref[w]) for w in range(nq)]

    def prod_state(lo, hi):      # pairwise-product build, wire `lo` is MSB
        if hi - lo == 1:
            return [cw[lo], sw[lo]]
        mid = (lo + hi) // 2
        left = prod_state(lo, mid)
        right = prod_state(mid, hi)
        return [l * r for l in left for r in right]

    prod = prod_state(0, nq)                         # dim real amplitudes, im == 0

    # ---- 2a) layer-1 RZ gates fused into one diagonal phase (real state: 2 muls/amp)
    re = [None] * dim
    im = [None] * dim
    for i in range(dim):
        re[i] = splat(zphase_ref[0, i]) * prod[i]
        im[i] = splat(zphase_ref[1, i]) * prod[i]

    def apply_ry(w, row):        # RY = [[c,-s],[s,c]] (real), acts on re & im alike
        c = splat(rytrig_ref[row, 0])
        s = splat(rytrig_ref[row, 1])
        stride = 1 << (nq - 1 - w)
        for i0 in range(dim):
            if bit(i0, w):
                continue
            i1 = i0 + stride
            r0, r1, m0, m1 = re[i0], re[i1], im[i0], im[i1]
            re[i0] = c * r0 - s * r1
            re[i1] = s * r0 + c * r1
            im[i0] = c * m0 - s * m1
            im[i1] = s * m0 + c * m1

    # ---- 2b) layer-1 RY gates ----
    for w in range(nq):
        apply_ry(w, w)

    # ---- 3) CNOT chain: pure amplitude relabeling (free Python swap) ----
    for ctrl in range(nq - 1):
        tgt = ctrl + 1
        for i in range(dim):
            if bit(i, ctrl) == 1 and bit(i, tgt) == 0:
                j = i ^ (1 << (nq - 1 - tgt))
                re[i], re[j] = re[j], re[i]
                im[i], im[j] = im[j], im[i]

    # ---- 4a) layer-2 RZ gates fused into one diagonal phase (complex state) ----
    for i in range(dim):
        c = splat(zphase_ref[2, i])
        s = splat(zphase_ref[3, i])
        r, m = re[i], im[i]
        re[i] = c * r - s * m
        im[i] = c * m + s * r

    # ---- 4b) layer-2 RY gates ----
    for w in range(nq):
        apply_ry(w, w + nq)

    # ---- 5) expectations <Z_w>: probabilities computed once, single dense store
    p = [re[i] * re[i] + im[i] * im[i] for i in range(dim)]
    zs = []
    for w in range(nq):
        acc = p[0] if bit(0, w) == 0 else -p[0]
        for i in range(1, dim):
            acc = acc + p[i] if bit(i, w) == 0 else acc - p[i]
        zs.append(acc)
    out_ref[...] = jnp.stack(zs, axis=0)


class QuantumLayerPallas:
    """JAX/Pallas port of the PyTorch QuantumLayer (forward pass)."""

    def __init__(self, n_qubits, n_features, key):
        self.n_qubits = n_qubits
        self.n_features = n_features
        kq, kw, kb = jax.random.split(key, 3)
        # TorchLayer default init: uniform in [0, 2*pi)
        self.q_weights = jax.random.uniform(
            kq, (2 * n_qubits, 2), jnp.float32, 0.0, 2.0 * np.pi)
        if n_features > n_qubits:
            bound = 1.0 / np.sqrt(n_features)       # nn.Linear default init
            self.wlin = jax.random.uniform(
                kw, (n_qubits, n_features), jnp.float32, -bound, bound)
            self.blin = jax.random.uniform(
                kb, (n_qubits,), jnp.float32, -bound, bound)
        else:
            self.wlin = None                        # forward() slices x[:, :n_qubits]
            self.blin = None

    def _circuit_consts(self):
        """Batch-independent trig constants, recomputed per forward so that any
        update to q_weights (training) is reflected (addresses staleness concern)."""
        nq = self.n_qubits
        dim = 1 << nq
        # sign of each wire's RZ half-angle in the fused per-basis-state phase
        signs = np.array([[1.0 if ((i >> (nq - 1 - w)) & 1) else -1.0
                           for w in range(nq)] for i in range(dim)], np.float32)
        half_rz = 0.5 * self.q_weights[:, 0]                      # (2*nq,)
        theta1 = signs @ half_rz[:nq]                             # (dim,)
        theta2 = signs @ half_rz[nq:]
        zphase = jnp.stack([jnp.cos(theta1), jnp.sin(theta1),
                            jnp.cos(theta2), jnp.sin(theta2)], axis=0)   # (4, dim)
        half_ry = 0.5 * self.q_weights[:, 1]                      # (2*nq,)
        rytrig = jnp.stack([jnp.cos(half_ry), jnp.sin(half_ry)], axis=1)  # (2*nq, 2)
        return zphase.astype(jnp.float32), rytrig.astype(jnp.float32)

    def __call__(self, x):
        B = x.shape[0]
        nq = self.n_qubits

        # Feature map (nn.Linear) + half-angle scaling as one XLA matmul over the
        # whole batch (kept out of the kernel — tiny MXU-unfriendly dot otherwise).
        if self.wlin is not None:
            ang = x.astype(jnp.float32) @ self.wlin.T + self.blin      # (B, nq)
        else:
            ang = x[:, :nq].astype(jnp.float32)
        half = 0.5 * ang                                               # (B, nq)

        BT = 1024                                   # 8 sublanes x 128 lanes per grid step
        n_tiles = max(2, -(-B // BT))               # >=2 steps so v7x megacore gets both TCs
        Bpad = n_tiles * BT
        half_pad = jnp.zeros((Bpad, nq), jnp.float32).at[:B].set(half)
        ang_in = half_pad.T.reshape(nq, Bpad // 128, 128)              # row r = batch b//128

        zphase, rytrig = self._circuit_consts()

        out = pl.pallas_call(
            _qlayer_kernel,
            out_shape=jax.ShapeDtypeStruct((nq, Bpad // 128, 128), jnp.float32),
            grid_spec=pltpu.PrefetchScalarGridSpec(
                num_scalar_prefetch=0,
                grid=(n_tiles,),
                in_specs=[
                    pl.BlockSpec(memory_space=pltpu.MemorySpace.SMEM),   # zphase
                    pl.BlockSpec(memory_space=pltpu.MemorySpace.SMEM),   # rytrig
                    pl.BlockSpec((nq, 8, 128), lambda i: (0, i, 0)),     # half-angles
                ],
                out_specs=pl.BlockSpec((nq, 8, 128), lambda i: (0, i, 0)),
            ),
            compiler_params=pltpu.CompilerParams(
                dimension_semantics=("parallel",)),
        )(zphase, rytrig, ang_in)

        return out.reshape(nq, Bpad)[:, :B].T        # (B, n_qubits), matches PyTorch


# ---------------- pure-numpy reference (same gate definitions as PennyLane) ------------
def _reference_forward(x, wlin, blin, qweights, nq):
    dim = 1 << nq
    if wlin is not None:
        a = x.astype(np.float64) @ wlin.astype(np.float64).T + blin.astype(np.float64)
    else:
        a = x[:, :nq].astype(np.float64)

    def apply_1q(state, mat, w):
        new = state.copy()
        stride = 1 << (nq - 1 - w)
        for i0 in range(dim):
            if (i0 >> (nq - 1 - w)) & 1:
                continue
            i1 = i0 + stride
            a0, a1 = state[i0], state[i1]
            new[i0] = mat[0, 0] * a0 + mat[0, 1] * a1
            new[i1] = mat[1, 0] * a0 + mat[1, 1] * a1
        return new

    def ry(t):
        c, s = np.cos(t / 2), np.sin(t / 2)
        return np.array([[c, -s], [s, c]], dtype=np.complex128)

    def rz(p):
        return np.array([[np.exp(-1j * p / 2), 0], [0, np.exp(1j * p / 2)]],
                        dtype=np.complex128)

    def cnot(state, c, t):
        perm = np.array([i ^ (1 << (nq - 1 - t))
                         if ((i >> (nq - 1 - c)) & 1) else i for i in range(dim)])
        return state[perm]

    out = np.zeros((x.shape[0], nq), dtype=np.float64)
    for b in range(x.shape[0]):
        st = np.zeros(dim, dtype=np.complex128)
        st[0] = 1.0
        for w in range(nq):
            st = apply_1q(st, ry(a[b, w]), w)
        for w in range(nq):
            st = apply_1q(st, rz(qweights[w, 0]), w)
            st = apply_1q(st, ry(qweights[w, 1]), w)
        for w in range(nq - 1):
            st = cnot(st, w, w + 1)
        for w in range(nq):
            st = apply_1q(st, rz(qweights[w + nq, 0]), w)
            st = apply_1q(st, ry(qweights[w + nq, 1]), w)
        probs = np.abs(st) ** 2
        for w in range(nq):
            signs = np.array([1.0 if ((i >> (nq - 1 - w)) & 1) == 0 else -1.0
                              for i in range(dim)])
            out[b, w] = np.sum(probs * signs)
    return out.astype(np.float32)


if __name__ == "__main__":
    key = jax.random.PRNGKey(0)
    kparams, kx = jax.random.split(key, 2)

    batch, n_features = 8, 8          # n_features > n_qubits -> Linear feature map active
    layer = QuantumLayerPallas(N_QUBITS, n_features, kparams)
    x = jax.random.normal(kx, (batch, n_features), dtype=jnp.float32)

    out = layer(x)
    out = jax.block_until_ready(out)
    assert out.shape == (batch, N_QUBITS)

    ref = _reference_forward(np.asarray(x),
                             None if layer.wlin is None else np.asarray(layer.wlin),
                             None if layer.blin is None else np.asarray(layer.blin),
                             np.asarray(layer.q_weights), N_QUBITS)
    np.testing.assert_allclose(np.asarray(out), ref, atol=1e-3, rtol=0.0)

    print("KERNEL_OK")
</pallas_src>

<mosaic_0001>
module attributes {stable_mosaic.version = 11 : i64} {
  func.func @_qlayer_kernel(%arg0: i32, %arg1: memref<4x16xf32, #tpu.memory_space<smem>>, %arg2: memref<8x2xf32, #tpu.memory_space<smem>>, %arg3: memref<4x8x128xf32, #tpu.memory_space<vmem>>, %arg4: memref<4x8x128xf32, #tpu.memory_space<vmem>>) attributes {dimension_semantics = [#tpu.dimension_semantics<parallel>], iteration_bounds = array<i64: 2>, scalar_prefetch = 0 : i64, scratch_operands = 0 : i64, tpu.core_type = #tpu.core_type<tc>, window_params = [{transform_indices = @transform_0, window_bounds = array<i64: 4, 16>}, {transform_indices = @transform_1, window_bounds = array<i64: 8, 2>}, {transform_indices = @transform_2, window_bounds = array<i64: 4, 8, 128>}, {transform_indices = @transform_3, window_bounds = array<i64: 4, 8, 128>}]} {
    %c0 = arith.constant 0 : index
    %c0_0 = arith.constant 0 : index
    %c0_1 = arith.constant 0 : index
    %0 = vector.load %arg3[%c0, %c0_0, %c0_1] : memref<4x8x128xf32, #tpu.memory_space<vmem>>, vector<1x8x128xf32>
    %1 = vector.shape_cast %0 : vector<1x8x128xf32> to vector<8x128xf32>
    %2 = math.cos %1 : vector<8x128xf32>
    %c1 = arith.constant 1 : index
    %c0_2 = arith.constant 0 : index
    %c0_3 = arith.constant 0 : index
    %3 = vector.load %arg3[%c1, %c0_2, %c0_3] : memref<4x8x128xf32, #tpu.memory_space<vmem>>, vector<1x8x128xf32>
    %4 = vector.shape_cast %3 : vector<1x8x128xf32> to vector<8x128xf32>
    %5 = math.cos %4 : vector<8x128xf32>
    %c2 = arith.constant 2 : index
    %c0_4 = arith.constant 0 : index
    %c0_5 = arith.constant 0 : index
    %6 = vector.load %arg3[%c2, %c0_4, %c0_5] : memref<4x8x128xf32, #tpu.memory_space<vmem>>, vector<1x8x128xf32>
    %7 = vector.shape_cast %6 : vector<1x8x128xf32> to vector<8x128xf32>
    %8 = math.cos %7 : vector<8x128xf32>
    %c3 = arith.constant 3 : index
    %c0_6 = arith.constant 0 : index
    %c0_7 = arith.constant 0 : index
    %9 = vector.load %arg3[%c3, %c0_6, %c0_7] : memref<4x8x128xf32, #tpu.memory_space<vmem>>, vector<1x8x128xf32>
    %10 = vector.shape_cast %9 : vector<1x8x128xf32> to vector<8x128xf32>
    %11 = math.cos %10 : vector<8x128xf32>
    %c0_8 = arith.constant 0 : index
    %c0_9 = arith.constant 0 : index
    %c0_10 = arith.constant 0 : index
    %12 = vector.load %arg3[%c0_8, %c0_9, %c0_10] : memref<4x8x128xf32, #tpu.memory_space<vmem>>, vector<1x8x128xf32>
    %13 = vector.shape_cast %12 : vector<1x8x128xf32> to vector<8x128xf32>
    %14 = math.sin %13 : vector<8x128xf32>
    %c1_11 = arith.constant 1 : index
    %c0_12 = arith.constant 0 : index
    %c0_13 = arith.constant 0 : index
    %15 = vector.load %arg3[%c1_11, %c0_12, %c0_13] : memref<4x8x128xf32, #tpu.memory_space<vmem>>, vector<1x8x128xf32>
    %16 = vector.shape_cast %15 : vector<1x8x128xf32> to vector<8x128xf32>
    %17 = math.sin %16 : vector<8x128xf32>
    %c2_14 = arith.constant 2 : index
    %c0_15 = arith.constant 0 : index
    %c0_16 = arith.constant 0 : index
    %18 = vector.load %arg3[%c2_14, %c0_15, %c0_16] : memref<4x8x128xf32, #tpu.memory_space<vmem>>, vector<1x8x128xf32>
    %19 = vector.shape_cast %18 : vector<1x8x128xf32> to vector<8x128xf32>
    %20 = math.sin %19 : vector<8x128xf32>
    %c3_17 = arith.constant 3 : index
    %c0_18 = arith.constant 0 : index
    %c0_19 = arith.constant 0 : index
    %21 = vector.load %arg3[%c3_17, %c0_18, %c0_19] : memref<4x8x128xf32, #tpu.memory_space<vmem>>, vector<1x8x128xf32>
    %22 = vector.shape_cast %21 : vector<1x8x128xf32> to vector<8x128xf32>
    %23 = math.sin %22 : vector<8x128xf32>
    %24 = arith.mulf %2, %5 : vector<8x128xf32>
    %25 = arith.mulf %2, %17 : vector<8x128xf32>
    %26 = arith.mulf %14, %5 : vector<8x128xf32>
    %27 = arith.mulf %14, %17 : vector<8x128xf32>
    %28 = arith.mulf %8, %11 : vector<8x128xf32>
    %29 = arith.mulf %8, %23 : vector<8x128xf32>
    %30 = arith.mulf %20, %11 : vector<8x128xf32>
    %31 = arith.mulf %20, %23 : vector<8x128xf32>
    %32 = arith.mulf %24, %28 : vector<8x128xf32>
    %33 = arith.mulf %24, %29 : vector<8x128xf32>
    %34 = arith.mulf %24, %30 : vector<8x128xf32>
    %35 = arith.mulf %24, %31 : vector<8x128xf32>
    %36 = arith.mulf %25, %28 : vector<8x128xf32>
    %37 = arith.mulf %25, %29 : vector<8x128xf32>
    %38 = arith.mulf %25, %30 : vector<8x128xf32>
    %39 = arith.mulf %25, %31 : vector<8x128xf32>
    %40 = arith.mulf %26, %28 : vector<8x128xf32>
    %41 = arith.mulf %26, %29 : vector<8x128xf32>
    %42 = arith.mulf %26, %30 : vector<8x128xf32>
    %43 = arith.mulf %26, %31 : vector<8x128xf32>
    %44 = arith.mulf %27, %28 : vector<8x128xf32>
    %45 = arith.mulf %27, %29 : vector<8x128xf32>
    %46 = arith.mulf %27, %30 : vector<8x128xf32>
    %47 = arith.mulf %27, %31 : vector<8x128xf32>
    %c0_20 = arith.constant 0 : index
    %c0_21 = arith.constant 0 : index
    %48 = memref.load %arg1[%c0_20, %c0_21] : memref<4x16xf32, #tpu.memory_space<smem>>
    %49 = vector.broadcast %48 : f32 to vector<8x128xf32>
    %50 = arith.mulf %49, %32 : vector<8x128xf32>
    %c1_22 = arith.constant 1 : index
    %c0_23 = arith.constant 0 : index
    %51 = memref.load %arg1[%c1_22, %c0_23] : memref<4x16xf32, #tpu.memory_space<smem>>
    %52 = vector.broadcast %51 : f32 to vector<8x128xf32>
    %53 = arith.mulf %52, %32 : vector<8x128xf32>
    %c0_24 = arith.constant 0 : index
    %c1_25 = arith.constant 1 : index
    %54 = memref.load %arg1[%c0_24, %c1_25] : memref<4x16xf32, #tpu.memory_space<smem>>
    %55 = vector.broadcast %54 : f32 to vector<8x128xf32>
    %56 = arith.mulf %55, %33 : vector<8x128xf32>
    %c1_26 = arith.constant 1 : index
    %c1_27 = arith.constant 1 : index
    %57 = memref.load %arg1[%c1_26, %c1_27] : memref<4x16xf32, #tpu.memory_space<smem>>
    %58 = vector.broadcast %57 : f32 to vector<8x128xf32>
    %59 = arith.mulf %58, %33 : vector<8x128xf32>
    %c0_28 = arith.constant 0 : index
    %c2_29 = arith.constant 2 : index
    %60 = memref.load %arg1[%c0_28, %c2_29] : memref<4x16xf32, #tpu.memory_space<smem>>
    %61 = vector.broadcast %60 : f32 to vector<8x128xf32>
    %62 = arith.mulf %61, %34 : vector<8x128xf32>
    %c1_30 = arith.constant 1 : index
    %c2_31 = arith.constant 2 : index
    %63 = memref.load %arg1[%c1_30, %c2_31] : memref<4x16xf32, #tpu.memory_space<smem>>
    %64 = vector.broadcast %63 : f32 to vector<8x128xf32>
    %65 = arith.mulf %64, %34 : vector<8x128xf32>
    %c0_32 = arith.constant 0 : index
    %c3_33 = arith.constant 3 : index
    %66 = memref.load %arg1[%c0_32, %c3_33] : memref<4x16xf32, #tpu.memory_space<smem>>
    %67 = vector.broadcast %66 : f32 to vector<8x128xf32>
    %68 = arith.mulf %67, %35 : vector<8x128xf32>
    %c1_34 = arith.constant 1 : index
    %c3_35 = arith.constant 3 : index
    %69 = memref.load %arg1[%c1_34, %c3_35] : memref<4x16xf32, #tpu.memory_space<smem>>
    %70 = vector.broadcast %69 : f32 to vector<8x128xf32>
    %71 = arith.mulf %70, %35 : vector<8x128xf32>
    %c0_36 = arith.constant 0 : index
    %c4 = arith.constant 4 : index
    %72 = memref.load %arg1[%c0_36, %c4] : memref<4x16xf32, #tpu.memory_space<smem>>
    %73 = vector.broadcast %72 : f32 to vector<8x128xf32>
    %74 = arith.mulf %73, %36 : vector<8x128xf32>
    %c1_37 = arith.constant 1 : index
    %c4_38 = arith.constant 4 : index
    %75 = memref.load %arg1[%c1_37, %c4_38] : memref<4x16xf32, #tpu.memory_space<smem>>
    %76 = vector.broadcast %75 : f32 to vector<8x128xf32>
    %77 = arith.mulf %76, %36 : vector<8x128xf32>
    %c0_39 = arith.constant 0 : index
    %c5 = arith.constant 5 : index
    %78 = memref.load %arg1[%c0_39, %c5] : memref<4x16xf32, #tpu.memory_space<smem>>
    %79 = vector.broadcast %78 : f32 to vector<8x128xf32>
    %80 = arith.mulf %79, %37 : vector<8x128xf32>
    %c1_40 = arith.constant 1 : index
    %c5_41 = arith.constant 5 : index
    %81 = memref.load %arg1[%c1_40, %c5_41] : memref<4x16xf32, #tpu.memory_space<smem>>
    %82 = vector.broadcast %81 : f32 to vector<8x128xf32>
    %83 = arith.mulf %82, %37 : vector<8x128xf32>
    %c0_42 = arith.constant 0 : index
    %c6 = arith.constant 6 : index
    %84 = memref.load %arg1[%c0_42, %c6] : memref<4x16xf32, #tpu.memory_space<smem>>
    %85 = vector.broadcast %84 : f32 to vector<8x128xf32>
    %86 = arith.mulf %85, %38 : vector<8x128xf32>
    %c1_43 = arith.constant 1 : index
    %c6_44 = arith.constant 6 : index
    %87 = memref.load %arg1[%c1_43, %c6_44] : memref<4x16xf32, #tpu.memory_space<smem>>
    %88 = vector.broadcast %87 : f32 to vector<8x128xf32>
    %89 = arith.mulf %88, %38 : vector<8x128xf32>
    %c0_45 = arith.constant 0 : index
    %c7 = arith.constant 7 : index
    %90 = memref.load %arg1[%c0_45, %c7] : memref<4x16xf32, #tpu.memory_space<smem>>
    %91 = vector.broadcast %90 : f32 to vector<8x128xf32>
    %92 = arith.mulf %91, %39 : vector<8x128xf32>
    %c1_46 = arith.constant 1 : index
    %c7_47 = arith.constant 7 : index
    %93 = memref.load %arg1[%c1_46, %c7_47] : memref<4x16xf32, #tpu.memory_space<smem>>
    %94 = vector.broadcast %93 : f32 to vector<8x128xf32>
    %95 = arith.mulf %94, %39 : vector<8x128xf32>
    %c0_48 = arith.constant 0 : index
    %c8 = arith.constant 8 : index
    %96 = memref.load %arg1[%c0_48, %c8] : memref<4x16xf32, #tpu.memory_space<smem>>
    %97 = vector.broadcast %96 : f32 to vector<8x128xf32>
    %98 = arith.mulf %97, %40 : vector<8x128xf32>
    %c1_49 = arith.constant 1 : index
    %c8_50 = arith.constant 8 : index
    %99 = memref.load %arg1[%c1_49, %c8_50] : memref<4x16xf32, #tpu.memory_space<smem>>
    %100 = vector.broadcast %99 : f32 to vector<8x128xf32>
    %101 = arith.mulf %100, %40 : vector<8x128xf32>
    %c0_51 = arith.constant 0 : index
    %c9 = arith.constant 9 : index
    %102 = memref.load %arg1[%c0_51, %c9] : memref<4x16xf32, #tpu.memory_space<smem>>
    %103 = vector.broadcast %102 : f32 to vector<8x128xf32>
    %104 = arith.mulf %103, %41 : vector<8x128xf32>
    %c1_52 = arith.constant 1 : index
    %c9_53 = arith.constant 9 : index
    %105 = memref.load %arg1[%c1_52, %c9_53] : memref<4x16xf32, #tpu.memory_space<smem>>
    %106 = vector.broadcast %105 : f32 to vector<8x128xf32>
    %107 = arith.mulf %106, %41 : vector<8x128xf32>
    %c0_54 = arith.constant 0 : index
    %c10 = arith.constant 10 : index
    %108 = memref.load %arg1[%c0_54, %c10] : memref<4x16xf32, #tpu.memory_space<smem>>
    %109 = vector.broadcast %108 : f32 to vector<8x128xf32>
    %110 = arith.mulf %109, %42 : vector<8x128xf32>
    %c1_55 = arith.constant 1 : index
    %c10_56 = arith.constant 10 : index
    %111 = memref.load %arg1[%c1_55, %c10_56] : memref<4x16xf32, #tpu.memory_space<smem>>
    %112 = vector.broadcast %111 : f32 to vector<8x128xf32>
    %113 = arith.mulf %112, %42 : vector<8x128xf32>
    %c0_57 = arith.constant 0 : index
    %c11 = arith.constant 11 : index
    %114 = memref.load %arg1[%c0_57, %c11] : memref<4x16xf32, #tpu.memory_space<smem>>
    %115 = vector.broadcast %114 : f32 to vector<8x128xf32>
    %116 = arith.mulf %115, %43 : vector<8x128xf32>
    %c1_58 = arith.constant 1 : index
    %c11_59 = arith.constant 11 : index
    %117 = memref.load %arg1[%c1_58, %c11_59] : memref<4x16xf32, #tpu.memory_space<smem>>
    %118 = vector.broadcast %117 : f32 to vector<8x128xf32>
    %119 = arith.mulf %118, %43 : vector<8x128xf32>
    %c0_60 = arith.constant 0 : index
    %c12 = arith.constant 12 : index
    %120 = memref.load %arg1[%c0_60, %c12] : memref<4x16xf32, #tpu.memory_space<smem>>
    %121 = vector.broadcast %120 : f32 to vector<8x128xf32>
    %122 = arith.mulf %121, %44 : vector<8x128xf32>
    %c1_61 = arith.constant 1 : index
    %c12_62 = arith.constant 12 : index
    %123 = memref.load %arg1[%c1_61, %c12_62] : memref<4x16xf32, #tpu.memory_space<smem>>
    %124 = vector.broadcast %123 : f32 to vector<8x128xf32>
    %125 = arith.mulf %124, %44 : vector<8x128xf32>
    %c0_63 = arith.constant 0 : index
    %c13 = arith.constant 13 : index
    %126 = memref.load %arg1[%c0_63, %c13] : memref<4x16xf32, #tpu.memory_space<smem>>
    %127 = vector.broadcast %126 : f32 to vector<8x128xf32>
    %128 = arith.mulf %127, %45 : vector<8x128xf32>
    %c1_64 = arith.constant 1 : index
    %c13_65 = arith.constant 13 : index
    %129 = memref.load %arg1[%c1_64, %c13_65] : memref<4x16xf32, #tpu.memory_space<smem>>
    %130 = vector.broadcast %129 : f32 to vector<8x128xf32>
    %131 = arith.mulf %130, %45 : vector<8x128xf32>
    %c0_66 = arith.constant 0 : index
    %c14 = arith.constant 14 : index
    %132 = memref.load %arg1[%c0_66, %c14] : memref<4x16xf32, #tpu.memory_space<smem>>
    %133 = vector.broadcast %132 : f32 to vector<8x128xf32>
    %134 = arith.mulf %133, %46 : vector<8x128xf32>
    %c1_67 = arith.constant 1 : index
    %c14_68 = arith.constant 14 : index
    %135 = memref.load %arg1[%c1_67, %c14_68] : memref<4x16xf32, #tpu.memory_space<smem>>
    %136 = vector.broadcast %135 : f32 to vector<8x128xf32>
    %137 = arith.mulf %136, %46 : vector<8x128xf32>
    %c0_69 = arith.constant 0 : index
    %c15 = arith.constant 15 : index
    %138 = memref.load %arg1[%c0_69, %c15] : memref<4x16xf32, #tpu.memory_space<smem>>
    %139 = vector.broadcast %138 : f32 to vector<8x128xf32>
    %140 = arith.mulf %139, %47 : vector<8x128xf32>
    %c1_70 = arith.constant 1 : index
    %c15_71 = arith.constant 15 : index
    %141 = memref.load %arg1[%c1_70, %c15_71] : memref<4x16xf32, #tpu.memory_space<smem>>
    %142 = vector.broadcast %141 : f32 to vector<8x128xf32>
    %143 = arith.mulf %142, %47 : vector<8x128xf32>
    %c0_72 = arith.constant 0 : index
    %c0_73 = arith.constant 0 : index
    %144 = memref.load %arg2[%c0_72, %c0_73] : memref<8x2xf32, #tpu.memory_space<smem>>
    %145 = vector.broadcast %144 : f32 to vector<8x128xf32>
    %c0_74 = arith.constant 0 : index
    %c1_75 = arith.constant 1 : index
    %146 = memref.load %arg2[%c0_74, %c1_75] : memref<8x2xf32, #tpu.memory_space<smem>>
    %147 = vector.broadcast %146 : f32 to vector<8x128xf32>
    %148 = arith.mulf %145, %50 : vector<8x128xf32>
    %149 = arith.mulf %147, %98 : vector<8x128xf32>
    %150 = arith.subf %148, %149 : vector<8x128xf32>
    %151 = arith.mulf %147, %50 : vector<8x128xf32>
    %152 = arith.mulf %145, %98 : vector<8x128xf32>
    %153 = arith.addf %151, %152 : vector<8x128xf32>
    %154 = arith.mulf %145, %53 : vector<8x128xf32>
    %155 = arith.mulf %147, %101 : vector<8x128xf32>
    %156 = arith.subf %154, %155 : vector<8x128xf32>
    %157 = arith.mulf %147, %53 : vector<8x128xf32>
    %158 = arith.mulf %145, %101 : vector<8x128xf32>
    %159 = arith.addf %157, %158 : vector<8x128xf32>
    %160 = arith.mulf %145, %56 : vector<8x128xf32>
    %161 = arith.mulf %147, %104 : vector<8x128xf32>
    %162 = arith.subf %160, %161 : vector<8x128xf32>
    %163 = arith.mulf %147, %56 : vector<8x128xf32>
    %164 = arith.mulf %145, %104 : vector<8x128xf32>
    %165 = arith.addf %163, %164 : vector<8x128xf32>
    %166 = arith.mulf %145, %59 : vector<8x128xf32>
    %167 = arith.mulf %147, %107 : vector<8x128xf32>
    %168 = arith.subf %166, %167 : vector<8x128xf32>
    %169 = arith.mulf %147, %59 : vector<8x128xf32>
    %170 = arith.mulf %145, %107 : vector<8x128xf32>
    %171 = arith.addf %169, %170 : vector<8x128xf32>
    %172 = arith.mulf %145, %62 : vector<8x128xf32>
    %173 = arith.mulf %147, %110 : vector<8x128xf32>
    %174 = arith.subf %172, %173 : vector<8x128xf32>
    %175 = arith.mulf %147, %62 : vector<8x128xf32>
    %176 = arith.mulf %145, %110 : vector<8x128xf32>
    %177 = arith.addf %175, %176 : vector<8x128xf32>
    %178 = arith.mulf %145, %65 : vector<8x128xf32>
    %179 = arith.mulf %147, %113 : vector<8x128xf32>
    %180 = arith.subf %178, %179 : vector<8x128xf32>
    %181 = arith.mulf %147, %65 : vector<8x128xf32>
    %182 = arith.mulf %145, %113 : vector<8x128xf32>
    %183 = arith.addf %181, %182 : vector<8x128xf32>
    %184 = arith.mulf %145, %68 : vector<8x128xf32>
    %185 = arith.mulf %147, %116 : vector<8x128xf32>
    %186 = arith.subf %184, %185 : vector<8x128xf32>
    %187 = arith.mulf %147, %68 : vector<8x128xf32>
    %188 = arith.mulf %145, %116 : vector<8x128xf32>
    %189 = arith.addf %187, %188 : vector<8x128xf32>
    %190 = arith.mulf %145, %71 : vector<8x128xf32>
    %191 = arith.mulf %147, %119 : vector<8x128xf32>
    %192 = arith.subf %190, %191 : vector<8x128xf32>
    %193 = arith.mulf %147, %71 : vector<8x128xf32>
    %194 = arith.mulf %145, %119 : vector<8x128xf32>
    %195 = arith.addf %193, %194 : vector<8x128xf32>
    %196 = arith.mulf %145, %74 : vector<8x128xf32>
    %197 = arith.mulf %147, %122 : vector<8x128xf32>
    %198 = arith.subf %196, %197 : vector<8x128xf32>
    %199 = arith.mulf %147, %74 : vector<8x128xf32>
    %200 = arith.mulf %145, %122 : vector<8x128xf32>
    %201 = arith.addf %199, %200 : vector<8x128xf32>
    %202 = arith.mulf %145, %77 : vector<8x128xf32>
    %203 = arith.mulf %147, %125 : vector<8x128xf32>
    %204 = arith.subf %202, %203 : vector<8x128xf32>
    %205 = arith.mulf %147, %77 : vector<8x128xf32>
    %206 = arith.mulf %145, %125 : vector<8x128xf32>
    %207 = arith.addf %205, %206 : vector<8x128xf32>
    %208 = arith.mulf %145, %80 : vector<8x128xf32>
    %209 = arith.mulf %147, %128 : vector<8x128xf32>
    %210 = arith.subf %208, %209 : vector<8x128xf32>
    %211 = arith.mulf %147, %80 : vector<8x128xf32>
    %212 = arith.mulf %145, %128 : vector<8x128xf32>
    %213 = arith.addf %211, %212 : vector<8x128xf32>
    %214 = arith.mulf %145, %83 : vector<8x128xf32>
    %215 = arith.mulf %147, %131 : vector<8x128xf32>
    %216 = arith.subf %214, %215 : vector<8x128xf32>
    %217 = arith.mulf %147, %83 : vector<8x128xf32>
    %218 = arith.mulf %145, %131 : vector<8x128xf32>
    %219 = arith.addf %217, %218 : vector<8x128xf32>
    %220 = arith.mulf %145, %86 : vector<8x128xf32>
    %221 = arith.mulf %147, %134 : vector<8x128xf32>
    %222 = arith.subf %220, %221 : vector<8x128xf32>
    %223 = arith.mulf %147, %86 : vector<8x128xf32>
    %224 = arith.mulf %145, %134 : vector<8x128xf32>
    %225 = arith.addf %223, %224 : vector<8x128xf32>
    %226 = arith.mulf %145, %89 : vector<8x128xf32>
    %227 = arith.mulf %147, %137 : vector<8x128xf32>
    %228 = arith.subf %226, %227 : vector<8x128xf32>
    %229 = arith.mulf %147, %89 : vector<8x128xf32>
    %230 = arith.mulf %145, %137 : vector<8x128xf32>
    %231 = arith.addf %229, %230 : vector<8x128xf32>
    %232 = arith.mulf %145, %92 : vector<8x128xf32>
    %233 = arith.mulf %147, %140 : vector<8x128xf32>
    %234 = arith.subf %232, %233 : vector<8x128xf32>
    %235 = arith.mulf %147, %92 : vector<8x128xf32>
    %236 = arith.mulf %145, %140 : vector<8x128xf32>
    %237 = arith.addf %235, %236 : vector<8x128xf32>
    %238 = arith.mulf %145, %95 : vector<8x128xf32>
    %239 = arith.mulf %147, %143 : vector<8x128xf32>
    %240 = arith.subf %238, %239 : vector<8x128xf32>
    %241 = arith.mulf %147, %95 : vector<8x128xf32>
    %242 = arith.mulf %145, %143 : vector<8x128xf32>
    %243 = arith.addf %241, %242 : vector<8x128xf32>
    %c1_76 = arith.constant 1 : index
    %c0_77 = arith.constant 0 : index
    %244 = memref.load %arg2[%c1_76, %c0_77] : memref<8x2xf32, #tpu.memory_space<smem>>
    %245 = vector.broadcast %244 : f32 to vector<8x128xf32>
    %c1_78 = arith.constant 1 : index
    %c1_79 = arith.constant 1 : index
    %246 = memref.load %arg2[%c1_78, %c1_79] : memref<8x2xf32, #tpu.memory_space<smem>>
    %247 = vector.broadcast %246 : f32 to vector<8x128xf32>
    %248 = arith.mulf %245, %150 : vector<8x128xf32>
    %249 = arith.mulf %247, %198 : vector<8x128xf32>
    %250 = arith.subf %248, %249 : vector<8x128xf32>
    %251 = arith.mulf %247, %150 : vector<8x128xf32>
    %252 = arith.mulf %245, %198 : vector<8x128xf32>
    %253 = arith.addf %251, %252 : vector<8x128xf32>
    %254 = arith.mulf %245, %156 : vector<8x128xf32>
    %255 = arith.mulf %247, %204 : vector<8x128xf32>
    %256 = arith.subf %254, %255 : vector<8x128xf32>
    %257 = arith.mulf %247, %156 : vector<8x128xf32>
    %258 = arith.mulf %245, %204 : vector<8x128xf32>
    %259 = arith.addf %257, %258 : vector<8x128xf32>
    %260 = arith.mulf %245, %162 : vector<8x128xf32>
    %261 = arith.mulf %247, %210 : vector<8x128xf32>
    %262 = arith.subf %260, %261 : vector<8x128xf32>
    %263 = arith.mulf %247, %162 : vector<8x128xf32>
    %264 = arith.mulf %245, %210 : vector<8x128xf32>
    %265 = arith.addf %263, %264 : vector<8x128xf32>
    %266 = arith.mulf %245, %168 : vector<8x128xf32>
    %267 = arith.mulf %247, %216 : vector<8x128xf32>
    %268 = arith.subf %266, %267 : vector<8x128xf32>
    %269 = arith.mulf %247, %168 : vector<8x128xf32>
    %270 = arith.mulf %245, %216 : vector<8x128xf32>
    %271 = arith.addf %269, %270 : vector<8x128xf32>
    %272 = arith.mulf %245, %174 : vector<8x128xf32>
    %273 = arith.mulf %247, %222 : vector<8x128xf32>
    %274 = arith.subf %272, %273 : vector<8x128xf32>
    %275 = arith.mulf %247, %174 : vector<8x128xf32>
    %276 = arith.mulf %245, %222 : vector<8x128xf32>
    %277 = arith.addf %275, %276 : vector<8x128xf32>
    %278 = arith.mulf %245, %180 : vector<8x128xf32>
    %279 = arith.mulf %247, %228 : vector<8x128xf32>
    %280 = arith.subf %278, %279 : vector<8x128xf32>
    %281 = arith.mulf %247, %180 : vector<8x128xf32>
    %282 = arith.mulf %245, %228 : vector<8x128xf32>
    %283 = arith.addf %281, %282 : vector<8x128xf32>
    %284 = arith.mulf %245, %186 : vector<8x128xf32>
    %285 = arith.mulf %247, %234 : vector<8x128xf32>
    %286 = arith.subf %284, %285 : vector<8x128xf32>
    %287 = arith.mulf %247, %186 : vector<8x128xf32>
    %288 = arith.mulf %245, %234 : vector<8x128xf32>
    %289 = arith.addf %287, %288 : vector<8x128xf32>
    %290 = arith.mulf %245, %192 : vector<8x128xf32>
    %291 = arith.mulf %247, %240 : vector<8x128xf32>
    %292 = arith.subf %290, %291 : vector<8x128xf32>
    %293 = arith.mulf %247, %192 : vector<8x128xf32>
    %294 = arith.mulf %245, %240 : vector<8x128xf32>
    %295 = arith.addf %293, %294 : vector<8x128xf32>
    %296 = arith.mulf %245, %153 : vector<8x128xf32>
    %297 = arith.mulf %247, %201 : vector<8x128xf32>
    %298 = arith.subf %296, %297 : vector<8x128xf32>
    %299 = arith.mulf %247, %153 : vector<8x128xf32>
    %300 = arith.mulf %245, %201 : vector<8x128xf32>
    %301 = arith.addf %299, %300 : vector<8x128xf32>
    %302 = arith.mulf %245, %159 : vector<8x128xf32>
    %303 = arith.mulf %247, %207 : vector<8x128xf32>
    %304 = arith.subf %302, %303 : vector<8x128xf32>
    %305 = arith.mulf %247, %159 : vector<8x128xf32>
    %306 = arith.mulf %245, %207 : vector<8x128xf32>
    %307 = arith.addf %305, %306 : vector<8x128xf32>
    %308 = arith.mulf %245, %165 : vector<8x128xf32>
    %309 = arith.mulf %247, %213 : vector<8x128xf32>
    %310 = arith.subf %308, %309 : vector<8x128xf32>
    %311 = arith.mulf %247, %165 : vector<8x128xf32>
    %312 = arith.mulf %245, %213 : vector<8x128xf32>
    %313 = arith.addf %311, %312 : vector<8x128xf32>
    %314 = arith.mulf %245, %171 : vector<8x128xf32>
    %315 = arith.mulf %247, %219 : vector<8x128xf32>
    %316 = arith.subf %314, %315 : vector<8x128xf32>
    %317 = arith.mulf %247, %171 : vector<8x128xf32>
    %318 = arith.mulf %245, %219 : vector<8x128xf32>
    %319 = arith.addf %317, %318 : vector<8x128xf32>
    %320 = arith.mulf %245, %177 : vector<8x128xf32>
    %321 = arith.mulf %247, %225 : vector<8x128xf32>
    %322 = arith.subf %320, %321 : vector<8x128xf32>
    %323 = arith.mulf %247, %177 : vector<8x128xf32>
    %324 = arith.mulf %245, %225 : vector<8x128xf32>
    %325 = arith.addf %323, %324 : vector<8x128xf32>
    %326 = arith.mulf %245, %183 : vector<8x128xf32>
    %327 = arith.mulf %247, %231 : vector<8x128xf32>
    %328 = arith.subf %326, %327 : vector<8x128xf32>
    %329 = arith.mulf %247, %183 : vector<8x128xf32>
    %330 = arith.mulf %245, %231 : vector<8x128xf32>
    %331 = arith.addf %329, %330 : vector<8x128xf32>
    %332 = arith.mulf %245, %189 : vector<8x128xf32>
    %333 = arith.mulf %247, %237 : vector<8x128xf32>
    %334 = arith.subf %332, %333 : vector<8x128xf32>
    %335 = arith.mulf %247, %189 : vector<8x128xf32>
    %336 = arith.mulf %245, %237 : vector<8x128xf32>
    %337 = arith.addf %335, %336 : vector<8x128xf32>
    %338 = arith.mulf %245, %195 : vector<8x128xf32>
    %339 = arith.mulf %247, %243 : vector<8x128xf32>
    %340 = arith.subf %338, %339 : vector<8x128xf32>
    %341 = arith.mulf %247, %195 : vector<8x128xf32>
    %342 = arith.mulf %245, %243 : vector<8x128xf32>
    %343 = arith.addf %341, %342 : vector<8x128xf32>
    %c2_80 = arith.constant 2 : index
    %c0_81 = arith.constant 0 : index
    %344 = memref.load %arg2[%c2_80, %c0_81] : memref<8x2xf32, #tpu.memory_space<smem>>
    %345 = vector.broadcast %344 : f32 to vector<8x128xf32>
    %c2_82 = arith.constant 2 : index
    %c1_83 = arith.constant 1 : index
    %346 = memref.load %arg2[%c2_82, %c1_83] : memref<8x2xf32, #tpu.memory_space<smem>>
    %347 = vector.broadcast %346 : f32 to vector<8x128xf32>
    %348 = arith.mulf %345, %250 : vector<8x128xf32>
    %349 = arith.mulf %347, %274 : vector<8x128xf32>
    %350 = arith.subf %348, %349 : vector<8x128xf32>
    %351 = arith.mulf %347, %250 : vector<8x128xf32>
    %352 = arith.mulf %345, %274 : vector<8x128xf32>
    %353 = arith.addf %351, %352 : vector<8x128xf32>
    %354 = arith.mulf %345, %256 : vector<8x128xf32>
    %355 = arith.mulf %347, %280 : vector<8x128xf32>
    %356 = arith.subf %354, %355 : vector<8x128xf32>
    %357 = arith.mulf %347, %256 : vector<8x128xf32>
    %358 = arith.mulf %345, %280 : vector<8x128xf32>
    %359 = arith.addf %357, %358 : vector<8x128xf32>
    %360 = arith.mulf %345, %262 : vector<8x128xf32>
    %361 = arith.mulf %347, %286 : vector<8x128xf32>
    %362 = arith.subf %360, %361 : vector<8x128xf32>
    %363 = arith.mulf %347, %262 : vector<8x128xf32>
    %364 = arith.mulf %345, %286 : vector<8x128xf32>
    %365 = arith.addf %363, %364 : vector<8x128xf32>
    %366 = arith.mulf %345, %268 : vector<8x128xf32>
    %367 = arith.mulf %347, %292 : vector<8x128xf32>
    %368 = arith.subf %366, %367 : vector<8x128xf32>
    %369 = arith.mulf %347, %268 : vector<8x128xf32>
    %370 = arith.mulf %345, %292 : vector<8x128xf32>
    %371 = arith.addf %369, %370 : vector<8x128xf32>
    %372 = arith.mulf %345, %253 : vector<8x128xf32>
    %373 = arith.mulf %347, %277 : vector<8x128xf32>
    %374 = arith.subf %372, %373 : vector<8x128xf32>
    %375 = arith.mulf %347, %253 : vector<8x128xf32>
    %376 = arith.mulf %345, %277 : vector<8x128xf32>
    %377 = arith.addf %375, %376 : vector<8x128xf32>
    %378 = arith.mulf %345, %259 : vector<8x128xf32>
    %379 = arith.mulf %347, %283 : vector<8x128xf32>
    %380 = arith.subf %378, %379 : vector<8x128xf32>
    %381 = arith.mulf %347, %259 : vector<8x128xf32>
    %382 = arith.mulf %345, %283 : vector<8x128xf32>
    %383 = arith.addf %381, %382 : vector<8x128xf32>
    %384 = arith.mulf %345, %265 : vector<8x128xf32>
    %385 = arith.mulf %347, %289 : vector<8x128xf32>
    %386 = arith.subf %384, %385 : vector<8x128xf32>
    %387 = arith.mulf %347, %265 : vector<8x128xf32>
    %388 = arith.mulf %345, %289 : vector<8x128xf32>
    %389 = arith.addf %387, %388 : vector<8x128xf32>
    %390 = arith.mulf %345, %271 : vector<8x128xf32>
    %391 = arith.mulf %347, %295 : vector<8x128xf32>
    %392 = arith.subf %390, %391 : vector<8x128xf32>
    %393 = arith.mulf %347, %271 : vector<8x128xf32>
    %394 = arith.mulf %345, %295 : vector<8x128xf32>
    %395 = arith.addf %393, %394 : vector<8x128xf32>
    %396 = arith.mulf %345, %298 : vector<8x128xf32>
    %397 = arith.mulf %347, %322 : vector<8x128xf32>
    %398 = arith.subf %396, %397 : vector<8x128xf32>
    %399 = arith.mulf %347, %298 : vector<8x128xf32>
    %400 = arith.mulf %345, %322 : vector<8x128xf32>
    %401 = arith.addf %399, %400 : vector<8x128xf32>
    %402 = arith.mulf %345, %304 : vector<8x128xf32>
    %403 = arith.mulf %347, %328 : vector<8x128xf32>
    %404 = arith.subf %402, %403 : vector<8x128xf32>
    %405 = arith.mulf %347, %304 : vector<8x128xf32>
    %406 = arith.mulf %345, %328 : vector<8x128xf32>
    %407 = arith.addf %405, %406 : vector<8x128xf32>
    %408 = arith.mulf %345, %310 : vector<8x128xf32>
    %409 = arith.mulf %347, %334 : vector<8x128xf32>
    %410 = arith.subf %408, %409 : vector<8x128xf32>
    %411 = arith.mulf %347, %310 : vector<8x128xf32>
    %412 = arith.mulf %345, %334 : vector<8x128xf32>
    %413 = arith.addf %411, %412 : vector<8x128xf32>
    %414 = arith.mulf %345, %316 : vector<8x128xf32>
    %415 = arith.mulf %347, %340 : vector<8x128xf32>
    %416 = arith.subf %414, %415 : vector<8x128xf32>
    %417 = arith.mulf %347, %316 : vector<8x128xf32>
    %418 = arith.mulf %345, %340 : vector<8x128xf32>
    %419 = arith.addf %417, %418 : vector<8x128xf32>
    %420 = arith.mulf %345, %301 : vector<8x128xf32>
    %421 = arith.mulf %347, %325 : vector<8x128xf32>
    %422 = arith.subf %420, %421 : vector<8x128xf32>
    %423 = arith.mulf %347, %301 : vector<8x128xf32>
    %424 = arith.mulf %345, %325 : vector<8x128xf32>
    %425 = arith.addf %423, %424 : vector<8x128xf32>
    %426 = arith.mulf %345, %307 : vector<8x128xf32>
    %427 = arith.mulf %347, %331 : vector<8x128xf32>
    %428 = arith.subf %426, %427 : vector<8x128xf32>
    %429 = arith.mulf %347, %307 : vector<8x128xf32>
    %430 = arith.mulf %345, %331 : vector<8x128xf32>
    %431 = arith.addf %429, %430 : vector<8x128xf32>
    %432 = arith.mulf %345, %313 : vector<8x128xf32>
    %433 = arith.mulf %347, %337 : vector<8x128xf32>
    %434 = arith.subf %432, %433 : vector<8x128xf32>
    %435 = arith.mulf %347, %313 : vector<8x128xf32>
    %436 = arith.mulf %345, %337 : vector<8x128xf32>
    %437 = arith.addf %435, %436 : vector<8x128xf32>
    %438 = arith.mulf %345, %319 : vector<8x128xf32>
    %439 = arith.mulf %347, %343 : vector<8x128xf32>
    %440 = arith.subf %438, %439 : vector<8x128xf32>
    %441 = arith.mulf %347, %319 : vector<8x128xf32>
    %442 = arith.mulf %345, %343 : vector<8x128xf32>
    %443 = arith.addf %441, %442 : vector<8x128xf32>
    %c3_84 = arith.constant 3 : index
    %c0_85 = arith.constant 0 : index
    %444 = memref.load %arg2[%c3_84, %c0_85] : memref<8x2xf32, #tpu.memory_space<smem>>
    %445 = vector.broadcast %444 : f32 to vector<8x128xf32>
    %c3_86 = arith.constant 3 : index
    %c1_87 = arith.constant 1 : index
    %446 = memref.load %arg2[%c3_86, %c1_87] : memref<8x2xf32, #tpu.memory_space<smem>>
    %447 = vector.broadcast %446 : f32 to vector<8x128xf32>
    %448 = arith.mulf %445, %350 : vector<8x128xf32>
    %449 = arith.mulf %447, %362 : vector<8x128xf32>
    %450 = arith.subf %448, %449 : vector<8x128xf32>
    %451 = arith.mulf %447, %350 : vector<8x128xf32>
    %452 = arith.mulf %445, %362 : vector<8x128xf32>
    %453 = arith.addf %451, %452 : vector<8x128xf32>
    %454 = arith.mulf %445, %356 : vector<8x128xf32>
    %455 = arith.mulf %447, %368 : vector<8x128xf32>
    %456 = arith.subf %454, %455 : vector<8x128xf32>
    %457 = arith.mulf %447, %356 : vector<8x128xf32>
    %458 = arith.mulf %445, %368 : vector<8x128xf32>
    %459 = arith.addf %457, %458 : vector<8x128xf32>
    %460 = arith.mulf %445, %353 : vector<8x128xf32>
    %461 = arith.mulf %447, %365 : vector<8x128xf32>
    %462 = arith.subf %460, %461 : vector<8x128xf32>
    %463 = arith.mulf %447, %353 : vector<8x128xf32>
    %464 = arith.mulf %445, %365 : vector<8x128xf32>
    %465 = arith.addf %463, %464 : vector<8x128xf32>
    %466 = arith.mulf %445, %359 : vector<8x128xf32>
    %467 = arith.mulf %447, %371 : vector<8x128xf32>
    %468 = arith.subf %466, %467 : vector<8x128xf32>
    %469 = arith.mulf %447, %359 : vector<8x128xf32>
    %470 = arith.mulf %445, %371 : vector<8x128xf32>
    %471 = arith.addf %469, %470 : vector<8x128xf32>
    %472 = arith.mulf %445, %374 : vector<8x128xf32>
    %473 = arith.mulf %447, %386 : vector<8x128xf32>
    %474 = arith.subf %472, %473 : vector<8x128xf32>
    %475 = arith.mulf %447, %374 : vector<8x128xf32>
    %476 = arith.mulf %445, %386 : vector<8x128xf32>
    %477 = arith.addf %475, %476 : vector<8x128xf32>
    %478 = arith.mulf %445, %380 : vector<8x128xf32>
    %479 = arith.mulf %447, %392 : vector<8x128xf32>
    %480 = arith.subf %478, %479 : vector<8x128xf32>
    %481 = arith.mulf %447, %380 : vector<8x128xf32>
    %482 = arith.mulf %445, %392 : vector<8x128xf32>
    %483 = arith.addf %481, %482 : vector<8x128xf32>
    %484 = arith.mulf %445, %377 : vector<8x128xf32>
    %485 = arith.mulf %447, %389 : vector<8x128xf32>
    %486 = arith.subf %484, %485 : vector<8x128xf32>
    %487 = arith.mulf %447, %377 : vector<8x128xf32>
    %488 = arith.mulf %445, %389 : vector<8x128xf32>
    %489 = arith.addf %487, %488 : vector<8x128xf32>
    %490 = arith.mulf %445, %383 : vector<8x128xf32>
    %491 = arith.mulf %447, %395 : vector<8x128xf32>
    %492 = arith.subf %490, %491 : vector<8x128xf32>
    %493 = arith.mulf %447, %383 : vector<8x128xf32>
    %494 = arith.mulf %445, %395 : vector<8x128xf32>
    %495 = arith.addf %493, %494 : vector<8x128xf32>
    %496 = arith.mulf %445, %398 : vector<8x128xf32>
    %497 = arith.mulf %447, %410 : vector<8x128xf32>
    %498 = arith.subf %496, %497 : vector<8x128xf32>
    %499 = arith.mulf %447, %398 : vector<8x128xf32>
    %500 = arith.mulf %445, %410 : vector<8x128xf32>
    %501 = arith.addf %499, %500 : vector<8x128xf32>
    %502 = arith.mulf %445, %404 : vector<8x128xf32>
    %503 = arith.mulf %447, %416 : vector<8x128xf32>
    %504 = arith.subf %502, %503 : vector<8x128xf32>
    %505 = arith.mulf %447, %404 : vector<8x128xf32>
    %506 = arith.mulf %445, %416 : vector<8x128xf32>
    %507 = arith.addf %505, %506 : vector<8x128xf32>
    %508 = arith.mulf %445, %401 : vector<8x128xf32>
    %509 = arith.mulf %447, %413 : vector<8x128xf32>
    %510 = arith.subf %508, %509 : vector<8x128xf32>
    %511 = arith.mulf %447, %401 : vector<8x128xf32>
    %512 = arith.mulf %445, %413 : vector<8x128xf32>
    %513 = arith.addf %511, %512 : vector<8x128xf32>
    %514 = arith.mulf %445, %407 : vector<8x128xf32>
    %515 = arith.mulf %447, %419 : vector<8x128xf32>
    %516 = arith.subf %514, %515 : vector<8x128xf32>
    %517 = arith.mulf %447, %407 : vector<8x128xf32>
    %518 = arith.mulf %445, %419 : vector<8x128xf32>
    %519 = arith.addf %517, %518 : vector<8x128xf32>
    %520 = arith.mulf %445, %422 : vector<8x128xf32>
    %521 = arith.mulf %447, %434 : vector<8x128xf32>
    %522 = arith.subf %520, %521 : vector<8x128xf32>
    %523 = arith.mulf %447, %422 : vector<8x128xf32>
    %524 = arith.mulf %445, %434 : vector<8x128xf32>
    %525 = arith.addf %523, %524 : vector<8x128xf32>
    %526 = arith.mulf %445, %428 : vector<8x128xf32>
    %527 = arith.mulf %447, %440 : vector<8x128xf32>
    %528 = arith.subf %526, %527 : vector<8x128xf32>
    %529 = arith.mulf %447, %428 : vector<8x128xf32>
    %530 = arith.mulf %445, %440 : vector<8x128xf32>
    %531 = arith.addf %529, %530 : vector<8x128xf32>
    %532 = arith.mulf %445, %425 : vector<8x128xf32>
    %533 = arith.mulf %447, %437 : vector<8x128xf32>
    %534 = arith.subf %532, %533 : vector<8x128xf32>
    %535 = arith.mulf %447, %425 : vector<8x128xf32>
    %536 = arith.mulf %445, %437 : vector<8x128xf32>
    %537 = arith.addf %535, %536 : vector<8x128xf32>
    %538 = arith.mulf %445, %431 : vector<8x128xf32>
    %539 = arith.mulf %447, %443 : vector<8x128xf32>
    %540 = arith.subf %538, %539 : vector<8x128xf32>
    %541 = arith.mulf %447, %431 : vector<8x128xf32>
    %542 = arith.mulf %445, %443 : vector<8x128xf32>
    %543 = arith.addf %541, %542 : vector<8x128xf32>
    %c2_88 = arith.constant 2 : index
    %c0_89 = arith.constant 0 : index
    %544 = memref.load %arg1[%c2_88, %c0_89] : memref<4x16xf32, #tpu.memory_space<smem>>
    %545 = vector.broadcast %544 : f32 to vector<8x128xf32>
    %c3_90 = arith.constant 3 : index
    %c0_91 = arith.constant 0 : index
    %546 = memref.load %arg1[%c3_90, %c0_91] : memref<4x16xf32, #tpu.memory_space<smem>>
    %547 = vector.broadcast %546 : f32 to vector<8x128xf32>
    %548 = arith.mulf %545, %450 : vector<8x128xf32>
    %549 = arith.mulf %547, %456 : vector<8x128xf32>
    %550 = arith.subf %548, %549 : vector<8x128xf32>
    %551 = arith.mulf %545, %456 : vector<8x128xf32>
    %552 = arith.mulf %547, %450 : vector<8x128xf32>
    %553 = arith.addf %551, %552 : vector<8x128xf32>
    %c2_92 = arith.constant 2 : index
    %c1_93 = arith.constant 1 : index
    %554 = memref.load %arg1[%c2_92, %c1_93] : memref<4x16xf32, #tpu.memory_space<smem>>
    %555 = vector.broadcast %554 : f32 to vector<8x128xf32>
    %c3_94 = arith.constant 3 : index
    %c1_95 = arith.constant 1 : index
    %556 = memref.load %arg1[%c3_94, %c1_95] : memref<4x16xf32, #tpu.memory_space<smem>>
    %557 = vector.broadcast %556 : f32 to vector<8x128xf32>
    %558 = arith.mulf %555, %453 : vector<8x128xf32>
    %559 = arith.mulf %557, %459 : vector<8x128xf32>
    %560 = arith.subf %558, %559 : vector<8x128xf32>
    %561 = arith.mulf %555, %459 : vector<8x128xf32>
    %562 = arith.mulf %557, %453 : vector<8x128xf32>
    %563 = arith.addf %561, %562 : vector<8x128xf32>
    %c2_96 = arith.constant 2 : index
    %c2_97 = arith.constant 2 : index
    %564 = memref.load %arg1[%c2_96, %c2_97] : memref<4x16xf32, #tpu.memory_space<smem>>
    %565 = vector.broadcast %564 : f32 to vector<8x128xf32>
    %c3_98 = arith.constant 3 : index
    %c2_99 = arith.constant 2 : index
    %566 = memref.load %arg1[%c3_98, %c2_99] : memref<4x16xf32, #tpu.memory_space<smem>>
    %567 = vector.broadcast %566 : f32 to vector<8x128xf32>
    %568 = arith.mulf %565, %465 : vector<8x128xf32>
    %569 = arith.mulf %567, %471 : vector<8x128xf32>
    %570 = arith.subf %568, %569 : vector<8x128xf32>
    %571 = arith.mulf %565, %471 : vector<8x128xf32>
    %572 = arith.mulf %567, %465 : vector<8x128xf32>
    %573 = arith.addf %571, %572 : vector<8x128xf32>
    %c2_100 = arith.constant 2 : index
    %c3_101 = arith.constant 3 : index
    %574 = memref.load %arg1[%c2_100, %c3_101] : memref<4x16xf32, #tpu.memory_space<smem>>
    %575 = vector.broadcast %574 : f32 to vector<8x128xf32>
    %c3_102 = arith.constant 3 : index
    %c3_103 = arith.constant 3 : index
    %576 = memref.load %arg1[%c3_102, %c3_103] : memref<4x16xf32, #tpu.memory_space<smem>>
    %577 = vector.broadcast %576 : f32 to vector<8x128xf32>
    %578 = arith.mulf %575, %462 : vector<8x128xf32>
    %579 = arith.mulf %577, %468 : vector<8x128xf32>
    %580 = arith.subf %578, %579 : vector<8x128xf32>
    %581 = arith.mulf %575, %468 : vector<8x128xf32>
    %582 = arith.mulf %577, %462 : vector<8x128xf32>
    %583 = arith.addf %581, %582 : vector<8x128xf32>
    %c2_104 = arith.constant 2 : index
    %c4_105 = arith.constant 4 : index
    %584 = memref.load %arg1[%c2_104, %c4_105] : memref<4x16xf32, #tpu.memory_space<smem>>
    %585 = vector.broadcast %584 : f32 to vector<8x128xf32>
    %c3_106 = arith.constant 3 : index
    %c4_107 = arith.constant 4 : index
    %586 = memref.load %arg1[%c3_106, %c4_107] : memref<4x16xf32, #tpu.memory_space<smem>>
    %587 = vector.broadcast %586 : f32 to vector<8x128xf32>
    %588 = arith.mulf %585, %486 : vector<8x128xf32>
    %589 = arith.mulf %587, %492 : vector<8x128xf32>
    %590 = arith.subf %588, %589 : vector<8x128xf32>
    %591 = arith.mulf %585, %492 : vector<8x128xf32>
    %592 = arith.mulf %587, %486 : vector<8x128xf32>
    %593 = arith.addf %591, %592 : vector<8x128xf32>
    %c2_108 = arith.constant 2 : index
    %c5_109 = arith.constant 5 : index
    %594 = memref.load %arg1[%c2_108, %c5_109] : memref<4x16xf32, #tpu.memory_space<smem>>
    %595 = vector.broadcast %594 : f32 to vector<8x128xf32>
    %c3_110 = arith.constant 3 : index
    %c5_111 = arith.constant 5 : index
    %596 = memref.load %arg1[%c3_110, %c5_111] : memref<4x16xf32, #tpu.memory_space<smem>>
    %597 = vector.broadcast %596 : f32 to vector<8x128xf32>
    %598 = arith.mulf %595, %489 : vector<8x128xf32>
    %599 = arith.mulf %597, %495 : vector<8x128xf32>
    %600 = arith.subf %598, %599 : vector<8x128xf32>
    %601 = arith.mulf %595, %495 : vector<8x128xf32>
    %602 = arith.mulf %597, %489 : vector<8x128xf32>
    %603 = arith.addf %601, %602 : vector<8x128xf32>
    %c2_112 = arith.constant 2 : index
    %c6_113 = arith.constant 6 : index
    %604 = memref.load %arg1[%c2_112, %c6_113] : memref<4x16xf32, #tpu.memory_space<smem>>
    %605 = vector.broadcast %604 : f32 to vector<8x128xf32>
    %c3_114 = arith.constant 3 : index
    %c6_115 = arith.constant 6 : index
    %606 = memref.load %arg1[%c3_114, %c6_115] : memref<4x16xf32, #tpu.memory_space<smem>>
    %607 = vector.broadcast %606 : f32 to vector<8x128xf32>
    %608 = arith.mulf %605, %477 : vector<8x128xf32>
    %609 = arith.mulf %607, %483 : vector<8x128xf32>
    %610 = arith.subf %608, %609 : vector<8x128xf32>
    %611 = arith.mulf %605, %483 : vector<8x128xf32>
    %612 = arith.mulf %607, %477 : vector<8x128xf32>
    %613 = arith.addf %611, %612 : vector<8x128xf32>
    %c2_116 = arith.constant 2 : index
    %c7_117 = arith.constant 7 : index
    %614 = memref.load %arg1[%c2_116, %c7_117] : memref<4x16xf32, #tpu.memory_space<smem>>
    %615 = vector.broadcast %614 : f32 to vector<8x128xf32>
    %c3_118 = arith.constant 3 : index
    %c7_119 = arith.constant 7 : index
    %616 = memref.load %arg1[%c3_118, %c7_119] : memref<4x16xf32, #tpu.memory_space<smem>>
    %617 = vector.broadcast %616 : f32 to vector<8x128xf32>
    %618 = arith.mulf %615, %474 : vector<8x128xf32>
    %619 = arith.mulf %617, %480 : vector<8x128xf32>
    %620 = arith.subf %618, %619 : vector<8x128xf32>
    %621 = arith.mulf %615, %480 : vector<8x128xf32>
    %622 = arith.mulf %617, %474 : vector<8x128xf32>
    %623 = arith.addf %621, %622 : vector<8x128xf32>
    %c2_120 = arith.constant 2 : index
    %c8_121 = arith.constant 8 : index
    %624 = memref.load %arg1[%c2_120, %c8_121] : memref<4x16xf32, #tpu.memory_space<smem>>
    %625 = vector.broadcast %624 : f32 to vector<8x128xf32>
    %c3_122 = arith.constant 3 : index
    %c8_123 = arith.constant 8 : index
    %626 = memref.load %arg1[%c3_122, %c8_123] : memref<4x16xf32, #tpu.memory_space<smem>>
    %627 = vector.broadcast %626 : f32 to vector<8x128xf32>
    %628 = arith.mulf %625, %522 : vector<8x128xf32>
    %629 = arith.mulf %627, %528 : vector<8x128xf32>
    %630 = arith.subf %628, %629 : vector<8x128xf32>
    %631 = arith.mulf %625, %528 : vector<8x128xf32>
    %632 = arith.mulf %627, %522 : vector<8x128xf32>
    %633 = arith.addf %631, %632 : vector<8x128xf32>
    %c2_124 = arith.constant 2 : index
    %c9_125 = arith.constant 9 : index
    %634 = memref.load %arg1[%c2_124, %c9_125] : memref<4x16xf32, #tpu.memory_space<smem>>
    %635 = vector.broadcast %634 : f32 to vector<8x128xf32>
    %c3_126 = arith.constant 3 : index
    %c9_127 = arith.constant 9 : index
    %636 = memref.load %arg1[%c3_126, %c9_127] : memref<4x16xf32, #tpu.memory_space<smem>>
    %637 = vector.broadcast %636 : f32 to vector<8x128xf32>
    %638 = arith.mulf %635, %525 : vector<8x128xf32>
    %639 = arith.mulf %637, %531 : vector<8x128xf32>
    %640 = arith.subf %638, %639 : vector<8x128xf32>
    %641 = arith.mulf %635, %531 : vector<8x128xf32>
    %642 = arith.mulf %637, %525 : vector<8x128xf32>
    %643 = arith.addf %641, %642 : vector<8x128xf32>
    %c2_128 = arith.constant 2 : index
    %c10_129 = arith.constant 10 : index
    %644 = memref.load %arg1[%c2_128, %c10_129] : memref<4x16xf32, #tpu.memory_space<smem>>
    %645 = vector.broadcast %644 : f32 to vector<8x128xf32>
    %c3_130 = arith.constant 3 : index
    %c10_131 = arith.constant 10 : index
    %646 = memref.load %arg1[%c3_130, %c10_131] : memref<4x16xf32, #tpu.memory_space<smem>>
    %647 = vector.broadcast %646 : f32 to vector<8x128xf32>
    %648 = arith.mulf %645, %537 : vector<8x128xf32>
    %649 = arith.mulf %647, %543 : vector<8x128xf32>
    %650 = arith.subf %648, %649 : vector<8x128xf32>
    %651 = arith.mulf %645, %543 : vector<8x128xf32>
    %652 = arith.mulf %647, %537 : vector<8x128xf32>
    %653 = arith.addf %651, %652 : vector<8x128xf32>
    %c2_132 = arith.constant 2 : index
    %c11_133 = arith.constant 11 : index
    %654 = memref.load %arg1[%c2_132, %c11_133] : memref<4x16xf32, #tpu.memory_space<smem>>
    %655 = vector.broadcast %654 : f32 to vector<8x128xf32>
    %c3_134 = arith.constant 3 : index
    %c11_135 = arith.constant 11 : index
    %656 = memref.load %arg1[%c3_134, %c11_135] : memref<4x16xf32, #tpu.memory_space<smem>>
    %657 = vector.broadcast %656 : f32 to vector<8x128xf32>
    %658 = arith.mulf %655, %534 : vector<8x128xf32>
    %659 = arith.mulf %657, %540 : vector<8x128xf32>
    %660 = arith.subf %658, %659 : vector<8x128xf32>
    %661 = arith.mulf %655, %540 : vector<8x128xf32>
    %662 = arith.mulf %657, %534 : vector<8x128xf32>
    %663 = arith.addf %661, %662 : vector<8x128xf32>
    %c2_136 = arith.constant 2 : index
    %c12_137 = arith.constant 12 : index
    %664 = memref.load %arg1[%c2_136, %c12_137] : memref<4x16xf32, #tpu.memory_space<smem>>
    %665 = vector.broadcast %664 : f32 to vector<8x128xf32>
    %c3_138 = arith.constant 3 : index
    %c12_139 = arith.constant 12 : index
    %666 = memref.load %arg1[%c3_138, %c12_139] : memref<4x16xf32, #tpu.memory_space<smem>>
    %667 = vector.broadcast %666 : f32 to vector<8x128xf32>
    %668 = arith.mulf %665, %510 : vector<8x128xf32>
    %669 = arith.mulf %667, %516 : vector<8x128xf32>
    %670 = arith.subf %668, %669 : vector<8x128xf32>
    %671 = arith.mulf %665, %516 : vector<8x128xf32>
    %672 = arith.mulf %667, %510 : vector<8x128xf32>
    %673 = arith.addf %671, %672 : vector<8x128xf32>
    %c2_140 = arith.constant 2 : index
    %c13_141 = arith.constant 13 : index
    %674 = memref.load %arg1[%c2_140, %c13_141] : memref<4x16xf32, #tpu.memory_space<smem>>
    %675 = vector.broadcast %674 : f32 to vector<8x128xf32>
    %c3_142 = arith.constant 3 : index
    %c13_143 = arith.constant 13 : index
    %676 = memref.load %arg1[%c3_142, %c13_143] : memref<4x16xf32, #tpu.memory_space<smem>>
    %677 = vector.broadcast %676 : f32 to vector<8x128xf32>
    %678 = arith.mulf %675, %513 : vector<8x128xf32>
    %679 = arith.mulf %677, %519 : vector<8x128xf32>
    %680 = arith.subf %678, %679 : vector<8x128xf32>
    %681 = arith.mulf %675, %519 : vector<8x128xf32>
    %682 = arith.mulf %677, %513 : vector<8x128xf32>
    %683 = arith.addf %681, %682 : vector<8x128xf32>
    %c2_144 = arith.constant 2 : index
    %c14_145 = arith.constant 14 : index
    %684 = memref.load %arg1[%c2_144, %c14_145] : memref<4x16xf32, #tpu.memory_space<smem>>
    %685 = vector.broadcast %684 : f32 to vector<8x128xf32>
    %c3_146 = arith.constant 3 : index
    %c14_147 = arith.constant 14 : index
    %686 = memref.load %arg1[%c3_146, %c14_147] : memref<4x16xf32, #tpu.memory_space<smem>>
    %687 = vector.broadcast %686 : f32 to vector<8x128xf32>
    %688 = arith.mulf %685, %501 : vector<8x128xf32>
    %689 = arith.mulf %687, %507 : vector<8x128xf32>
    %690 = arith.subf %688, %689 : vector<8x128xf32>
    %691 = arith.mulf %685, %507 : vector<8x128xf32>
    %692 = arith.mulf %687, %501 : vector<8x128xf32>
    %693 = arith.addf %691, %692 : vector<8x128xf32>
    %c2_148 = arith.constant 2 : index
    %c15_149 = arith.constant 15 : index
    %694 = memref.load %arg1[%c2_148, %c15_149] : memref<4x16xf32, #tpu.memory_space<smem>>
    %695 = vector.broadcast %694 : f32 to vector<8x128xf32>
    %c3_150 = arith.constant 3 : index
    %c15_151 = arith.constant 15 : index
    %696 = memref.load %arg1[%c3_150, %c15_151] : memref<4x16xf32, #tpu.memory_space<smem>>
    %697 = vector.broadcast %696 : f32 to vector<8x128xf32>
    %698 = arith.mulf %695, %498 : vector<8x128xf32>
    %699 = arith.mulf %697, %504 : vector<8x128xf32>
    %700 = arith.subf %698, %699 : vector<8x128xf32>
    %701 = arith.mulf %695, %504 : vector<8x128xf32>
    %702 = arith.mulf %697, %498 : vector<8x128xf32>
    %703 = arith.addf %701, %702 : vector<8x128xf32>
    %c4_152 = arith.constant 4 : index
    %c0_153 = arith.constant 0 : index
    %704 = memref.load %arg2[%c4_152, %c0_153] : memref<8x2xf32, #tpu.memory_space<smem>>
    %705 = vector.broadcast %704 : f32 to vector<8x128xf32>
    %c4_154 = arith.constant 4 : index
    %c1_155 = arith.constant 1 : index
    %706 = memref.load %arg2[%c4_154, %c1_155] : memref<8x2xf32, #tpu.memory_space<smem>>
    %707 = vector.broadcast %706 : f32 to vector<8x128xf32>
    %708 = arith.mulf %705, %550 : vector<8x128xf32>
    %709 = arith.mulf %707, %630 : vector<8x128xf32>
    %710 = arith.subf %708, %709 : vector<8x128xf32>
    %711 = arith.mulf %707, %550 : vector<8x128xf32>
    %712 = arith.mulf %705, %630 : vector<8x128xf32>
    %713 = arith.addf %711, %712 : vector<8x128xf32>
    %714 = arith.mulf %705, %553 : vector<8x128xf32>
    %715 = arith.mulf %707, %633 : vector<8x128xf32>
    %716 = arith.subf %714, %715 : vector<8x128xf32>
    %717 = arith.mulf %707, %553 : vector<8x128xf32>
    %718 = arith.mulf %705, %633 : vector<8x128xf32>
    %719 = arith.addf %717, %718 : vector<8x128xf32>
    %720 = arith.mulf %705, %560 : vector<8x128xf32>
    %721 = arith.mulf %707, %640 : vector<8x128xf32>
    %722 = arith.subf %720, %721 : vector<8x128xf32>
    %723 = arith.mulf %707, %560 : vector<8x128xf32>
    %724 = arith.mulf %705, %640 : vector<8x128xf32>
    %725 = arith.addf %723, %724 : vector<8x128xf32>
    %726 = arith.mulf %705, %563 : vector<8x128xf32>
    %727 = arith.mulf %707, %643 : vector<8x128xf32>
    %728 = arith.subf %726, %727 : vector<8x128xf32>
    %729 = arith.mulf %707, %563 : vector<8x128xf32>
    %730 = arith.mulf %705, %643 : vector<8x128xf32>
    %731 = arith.addf %729, %730 : vector<8x128xf32>
    %732 = arith.mulf %705, %570 : vector<8x128xf32>
    %733 = arith.mulf %707, %650 : vector<8x128xf32>
    %734 = arith.subf %732, %733 : vector<8x128xf32>
    %735 = arith.mulf %707, %570 : vector<8x128xf32>
    %736 = arith.mulf %705, %650 : vector<8x128xf32>
    %737 = arith.addf %735, %736 : vector<8x128xf32>
    %738 = arith.mulf %705, %573 : vector<8x128xf32>
    %739 = arith.mulf %707, %653 : vector<8x128xf32>
    %740 = arith.subf %738, %739 : vector<8x128xf32>
    %741 = arith.mulf %707, %573 : vector<8x128xf32>
    %742 = arith.mulf %705, %653 : vector<8x128xf32>
    %743 = arith.addf %741, %742 : vector<8x128xf32>
    %744 = arith.mulf %705, %580 : vector<8x128xf32>
    %745 = arith.mulf %707, %660 : vector<8x128xf32>
    %746 = arith.subf %744, %745 : vector<8x128xf32>
    %747 = arith.mulf %707, %580 : vector<8x128xf32>
    %748 = arith.mulf %705, %660 : vector<8x128xf32>
    %749 = arith.addf %747, %748 : vector<8x128xf32>
    %750 = arith.mulf %705, %583 : vector<8x128xf32>
    %751 = arith.mulf %707, %663 : vector<8x128xf32>
    %752 = arith.subf %750, %751 : vector<8x128xf32>
    %753 = arith.mulf %707, %583 : vector<8x128xf32>
    %754 = arith.mulf %705, %663 : vector<8x128xf32>
    %755 = arith.addf %753, %754 : vector<8x128xf32>
    %756 = arith.mulf %705, %590 : vector<8x128xf32>
    %757 = arith.mulf %707, %670 : vector<8x128xf32>
    %758 = arith.subf %756, %757 : vector<8x128xf32>
    %759 = arith.mulf %707, %590 : vector<8x128xf32>
    %760 = arith.mulf %705, %670 : vector<8x128xf32>
    %761 = arith.addf %759, %760 : vector<8x128xf32>
    %762 = arith.mulf %705, %593 : vector<8x128xf32>
    %763 = arith.mulf %707, %673 : vector<8x128xf32>
    %764 = arith.subf %762, %763 : vector<8x128xf32>
    %765 = arith.mulf %707, %593 : vector<8x128xf32>
    %766 = arith.mulf %705, %673 : vector<8x128xf32>
    %767 = arith.addf %765, %766 : vector<8x128xf32>
    %768 = arith.mulf %705, %600 : vector<8x128xf32>
    %769 = arith.mulf %707, %680 : vector<8x128xf32>
    %770 = arith.subf %768, %769 : vector<8x128xf32>
    %771 = arith.mulf %707, %600 : vector<8x128xf32>
    %772 = arith.mulf %705, %680 : vector<8x128xf32>
    %773 = arith.addf %771, %772 : vector<8x128xf32>
    %774 = arith.mulf %705, %603 : vector<8x128xf32>
    %775 = arith.mulf %707, %683 : vector<8x128xf32>
    %776 = arith.subf %774, %775 : vector<8x128xf32>
    %777 = arith.mulf %707, %603 : vector<8x128xf32>
    %778 = arith.mulf %705, %683 : vector<8x128xf32>
    %779 = arith.addf %777, %778 : vector<8x128xf32>
    %780 = arith.mulf %705, %610 : vector<8x128xf32>
    %781 = arith.mulf %707, %690 : vector<8x128xf32>
    %782 = arith.subf %780, %781 : vector<8x128xf32>
    %783 = arith.mulf %707, %610 : vector<8x128xf32>
    %784 = arith.mulf %705, %690 : vector<8x128xf32>
    %785 = arith.addf %783, %784 : vector<8x128xf32>
    %786 = arith.mulf %705, %613 : vector<8x128xf32>
    %787 = arith.mulf %707, %693 : vector<8x128xf32>
    %788 = arith.subf %786, %787 : vector<8x128xf32>
    %789 = arith.mulf %707, %613 : vector<8x128xf32>
    %790 = arith.mulf %705, %693 : vector<8x128xf32>
    %791 = arith.addf %789, %790 : vector<8x128xf32>
    %792 = arith.mulf %705, %620 : vector<8x128xf32>
    %793 = arith.mulf %707, %700 : vector<8x128xf32>
    %794 = arith.subf %792, %793 : vector<8x128xf32>
    %795 = arith.mulf %707, %620 : vector<8x128xf32>
    %796 = arith.mulf %705, %700 : vector<8x128xf32>
    %797 = arith.addf %795, %796 : vector<8x128xf32>
    %798 = arith.mulf %705, %623 : vector<8x128xf32>
    %799 = arith.mulf %707, %703 : vector<8x128xf32>
    %800 = arith.subf %798, %799 : vector<8x128xf32>
    %801 = arith.mulf %707, %623 : vector<8x128xf32>
    %802 = arith.mulf %705, %703 : vector<8x128xf32>
    %803 = arith.addf %801, %802 : vector<8x128xf32>
    %c5_156 = arith.constant 5 : index
    %c0_157 = arith.constant 0 : index
    %804 = memref.load %arg2[%c5_156, %c0_157] : memref<8x2xf32, #tpu.memory_space<smem>>
    %805 = vector.broadcast %804 : f32 to vector<8x128xf32>
    %c5_158 = arith.constant 5 : index
    %c1_159 = arith.constant 1 : index
    %806 = memref.load %arg2[%c5_158, %c1_159] : memref<8x2xf32, #tpu.memory_space<smem>>
    %807 = vector.broadcast %806 : f32 to vector<8x128xf32>
    %808 = arith.mulf %805, %710 : vector<8x128xf32>
    %809 = arith.mulf %807, %758 : vector<8x128xf32>
    %810 = arith.subf %808, %809 : vector<8x128xf32>
    %811 = arith.mulf %807, %710 : vector<8x128xf32>
    %812 = arith.mulf %805, %758 : vector<8x128xf32>
    %813 = arith.addf %811, %812 : vector<8x128xf32>
    %814 = arith.mulf %805, %716 : vector<8x128xf32>
    %815 = arith.mulf %807, %764 : vector<8x128xf32>
    %816 = arith.subf %814, %815 : vector<8x128xf32>
    %817 = arith.mulf %807, %716 : vector<8x128xf32>
    %818 = arith.mulf %805, %764 : vector<8x128xf32>
    %819 = arith.addf %817, %818 : vector<8x128xf32>
    %820 = arith.mulf %805, %722 : vector<8x128xf32>
    %821 = arith.mulf %807, %770 : vector<8x128xf32>
    %822 = arith.subf %820, %821 : vector<8x128xf32>
    %823 = arith.mulf %807, %722 : vector<8x128xf32>
    %824 = arith.mulf %805, %770 : vector<8x128xf32>
    %825 = arith.addf %823, %824 : vector<8x128xf32>
    %826 = arith.mulf %805, %728 : vector<8x128xf32>
    %827 = arith.mulf %807, %776 : vector<8x128xf32>
    %828 = arith.subf %826, %827 : vector<8x128xf32>
    %829 = arith.mulf %807, %728 : vector<8x128xf32>
    %830 = arith.mulf %805, %776 : vector<8x128xf32>
    %831 = arith.addf %829, %830 : vector<8x128xf32>
    %832 = arith.mulf %805, %734 : vector<8x128xf32>
    %833 = arith.mulf %807, %782 : vector<8x128xf32>
    %834 = arith.subf %832, %833 : vector<8x128xf32>
    %835 = arith.mulf %807, %734 : vector<8x128xf32>
    %836 = arith.mulf %805, %782 : vector<8x128xf32>
    %837 = arith.addf %835, %836 : vector<8x128xf32>
    %838 = arith.mulf %805, %740 : vector<8x128xf32>
    %839 = arith.mulf %807, %788 : vector<8x128xf32>
    %840 = arith.subf %838, %839 : vector<8x128xf32>
    %841 = arith.mulf %807, %740 : vector<8x128xf32>
    %842 = arith.mulf %805, %788 : vector<8x128xf32>
    %843 = arith.addf %841, %842 : vector<8x128xf32>
    %844 = arith.mulf %805, %746 : vector<8x128xf32>
    %845 = arith.mulf %807, %794 : vector<8x128xf32>
    %846 = arith.subf %844, %845 : vector<8x128xf32>
    %847 = arith.mulf %807, %746 : vector<8x128xf32>
    %848 = arith.mulf %805, %794 : vector<8x128xf32>
    %849 = arith.addf %847, %848 : vector<8x128xf32>
    %850 = arith.mulf %805, %752 : vector<8x128xf32>
    %851 = arith.mulf %807, %800 : vector<8x128xf32>
    %852 = arith.subf %850, %851 : vector<8x128xf32>
    %853 = arith.mulf %807, %752 : vector<8x128xf32>
    %854 = arith.mulf %805, %800 : vector<8x128xf32>
    %855 = arith.addf %853, %854 : vector<8x128xf32>
    %856 = arith.mulf %805, %713 : vector<8x128xf32>
    %857 = arith.mulf %807, %761 : vector<8x128xf32>
    %858 = arith.subf %856, %857 : vector<8x128xf32>
    %859 = arith.mulf %807, %713 : vector<8x128xf32>
    %860 = arith.mulf %805, %761 : vector<8x128xf32>
    %861 = arith.addf %859, %860 : vector<8x128xf32>
    %862 = arith.mulf %805, %719 : vector<8x128xf32>
    %863 = arith.mulf %807, %767 : vector<8x128xf32>
    %864 = arith.subf %862, %863 : vector<8x128xf32>
    %865 = arith.mulf %807, %719 : vector<8x128xf32>
    %866 = arith.mulf %805, %767 : vector<8x128xf32>
    %867 = arith.addf %865, %866 : vector<8x128xf32>
    %868 = arith.mulf %805, %725 : vector<8x128xf32>
    %869 = arith.mulf %807, %773 : vector<8x128xf32>
    %870 = arith.subf %868, %869 : vector<8x128xf32>
    %871 = arith.mulf %807, %725 : vector<8x128xf32>
    %872 = arith.mulf %805, %773 : vector<8x128xf32>
    %873 = arith.addf %871, %872 : vector<8x128xf32>
    %874 = arith.mulf %805, %731 : vector<8x128xf32>
    %875 = arith.mulf %807, %779 : vector<8x128xf32>
    %876 = arith.subf %874, %875 : vector<8x128xf32>
    %877 = arith.mulf %807, %731 : vector<8x128xf32>
    %878 = arith.mulf %805, %779 : vector<8x128xf32>
    %879 = arith.addf %877, %878 : vector<8x128xf32>
    %880 = arith.mulf %805, %737 : vector<8x128xf32>
    %881 = arith.mulf %807, %785 : vector<8x128xf32>
    %882 = arith.subf %880, %881 : vector<8x128xf32>
    %883 = arith.mulf %807, %737 : vector<8x128xf32>
    %884 = arith.mulf %805, %785 : vector<8x128xf32>
    %885 = arith.addf %883, %884 : vector<8x128xf32>
    %886 = arith.mulf %805, %743 : vector<8x128xf32>
    %887 = arith.mulf %807, %791 : vector<8x128xf32>
    %888 = arith.subf %886, %887 : vector<8x128xf32>
    %889 = arith.mulf %807, %743 : vector<8x128xf32>
    %890 = arith.mulf %805, %791 : vector<8x128xf32>
    %891 = arith.addf %889, %890 : vector<8x128xf32>
    %892 = arith.mulf %805, %749 : vector<8x128xf32>
    %893 = arith.mulf %807, %797 : vector<8x128xf32>
    %894 = arith.subf %892, %893 : vector<8x128xf32>
    %895 = arith.mulf %807, %749 : vector<8x128xf32>
    %896 = arith.mulf %805, %797 : vector<8x128xf32>
    %897 = arith.addf %895, %896 : vector<8x128xf32>
    %898 = arith.mulf %805, %755 : vector<8x128xf32>
    %899 = arith.mulf %807, %803 : vector<8x128xf32>
    %900 = arith.subf %898, %899 : vector<8x128xf32>
    %901 = arith.mulf %807, %755 : vector<8x128xf32>
    %902 = arith.mulf %805, %803 : vector<8x128xf32>
    %903 = arith.addf %901, %902 : vector<8x128xf32>
    %c6_160 = arith.constant 6 : index
    %c0_161 = arith.constant 0 : index
    %904 = memref.load %arg2[%c6_160, %c0_161] : memref<8x2xf32, #tpu.memory_space<smem>>
    %905 = vector.broadcast %904 : f32 to vector<8x128xf32>
    %c6_162 = arith.constant 6 : index
    %c1_163 = arith.constant 1 : index
    %906 = memref.load %arg2[%c6_162, %c1_163] : memref<8x2xf32, #tpu.memory_space<smem>>
    %907 = vector.broadcast %906 : f32 to vector<8x128xf32>
    %908 = arith.mulf %905, %810 : vector<8x128xf32>
    %909 = arith.mulf %907, %834 : vector<8x128xf32>
    %910 = arith.subf %908, %909 : vector<8x128xf32>
    %911 = arith.mulf %907, %810 : vector<8x128xf32>
    %912 = arith.mulf %905, %834 : vector<8x128xf32>
    %913 = arith.addf %911, %912 : vector<8x128xf32>
    %914 = arith.mulf %905, %816 : vector<8x128xf32>
    %915 = arith.mulf %907, %840 : vector<8x128xf32>
    %916 = arith.subf %914, %915 : vector<8x128xf32>
    %917 = arith.mulf %907, %816 : vector<8x128xf32>
    %918 = arith.mulf %905, %840 : vector<8x128xf32>
    %919 = arith.addf %917, %918 : vector<8x128xf32>
    %920 = arith.mulf %905, %822 : vector<8x128xf32>
    %921 = arith.mulf %907, %846 : vector<8x128xf32>
    %922 = arith.subf %920, %921 : vector<8x128xf32>
    %923 = arith.mulf %907, %822 : vector<8x128xf32>
    %924 = arith.mulf %905, %846 : vector<8x128xf32>
    %925 = arith.addf %923, %924 : vector<8x128xf32>
    %926 = arith.mulf %905, %828 : vector<8x128xf32>
    %927 = arith.mulf %907, %852 : vector<8x128xf32>
    %928 = arith.subf %926, %927 : vector<8x128xf32>
    %929 = arith.mulf %907, %828 : vector<8x128xf32>
    %930 = arith.mulf %905, %852 : vector<8x128xf32>
    %931 = arith.addf %929, %930 : vector<8x128xf32>
    %932 = arith.mulf %905, %813 : vector<8x128xf32>
    %933 = arith.mulf %907, %837 : vector<8x128xf32>
    %934 = arith.subf %932, %933 : vector<8x128xf32>
    %935 = arith.mulf %907, %813 : vector<8x128xf32>
    %936 = arith.mulf %905, %837 : vector<8x128xf32>
    %937 = arith.addf %935, %936 : vector<8x128xf32>
    %938 = arith.mulf %905, %819 : vector<8x128xf32>
    %939 = arith.mulf %907, %843 : vector<8x128xf32>
    %940 = arith.subf %938, %939 : vector<8x128xf32>
    %941 = arith.mulf %907, %819 : vector<8x128xf32>
    %942 = arith.mulf %905, %843 : vector<8x128xf32>
    %943 = arith.addf %941, %942 : vector<8x128xf32>
    %944 = arith.mulf %905, %825 : vector<8x128xf32>
    %945 = arith.mulf %907, %849 : vector<8x128xf32>
    %946 = arith.subf %944, %945 : vector<8x128xf32>
    %947 = arith.mulf %907, %825 : vector<8x128xf32>
    %948 = arith.mulf %905, %849 : vector<8x128xf32>
    %949 = arith.addf %947, %948 : vector<8x128xf32>
    %950 = arith.mulf %905, %831 : vector<8x128xf32>
    %951 = arith.mulf %907, %855 : vector<8x128xf32>
    %952 = arith.subf %950, %951 : vector<8x128xf32>
    %953 = arith.mulf %907, %831 : vector<8x128xf32>
    %954 = arith.mulf %905, %855 : vector<8x128xf32>
    %955 = arith.addf %953, %954 : vector<8x128xf32>
    %956 = arith.mulf %905, %858 : vector<8x128xf32>
    %957 = arith.mulf %907, %882 : vector<8x128xf32>
    %958 = arith.subf %956, %957 : vector<8x128xf32>
    %959 = arith.mulf %907, %858 : vector<8x128xf32>
    %960 = arith.mulf %905, %882 : vector<8x128xf32>
    %961 = arith.addf %959, %960 : vector<8x128xf32>
    %962 = arith.mulf %905, %864 : vector<8x128xf32>
    %963 = arith.mulf %907, %888 : vector<8x128xf32>
    %964 = arith.subf %962, %963 : vector<8x128xf32>
    %965 = arith.mulf %907, %864 : vector<8x128xf32>
    %966 = arith.mulf %905, %888 : vector<8x128xf32>
    %967 = arith.addf %965, %966 : vector<8x128xf32>
    %968 = arith.mulf %905, %870 : vector<8x128xf32>
    %969 = arith.mulf %907, %894 : vector<8x128xf32>
    %970 = arith.subf %968, %969 : vector<8x128xf32>
    %971 = arith.mulf %907, %870 : vector<8x128xf32>
    %972 = arith.mulf %905, %894 : vector<8x128xf32>
    %973 = arith.addf %971, %972 : vector<8x128xf32>
    %974 = arith.mulf %905, %876 : vector<8x128xf32>
    %975 = arith.mulf %907, %900 : vector<8x128xf32>
    %976 = arith.subf %974, %975 : vector<8x128xf32>
    %977 = arith.mulf %907, %876 : vector<8x128xf32>
    %978 = arith.mulf %905, %900 : vector<8x128xf32>
    %979 = arith.addf %977, %978 : vector<8x128xf32>
    %980 = arith.mulf %905, %861 : vector<8x128xf32>
    %981 = arith.mulf %907, %885 : vector<8x128xf32>
    %982 = arith.subf %980, %981 : vector<8x128xf32>
    %983 = arith.mulf %907, %861 : vector<8x128xf32>
    %984 = arith.mulf %905, %885 : vector<8x128xf32>
    %985 = arith.addf %983, %984 : vector<8x128xf32>
    %986 = arith.mulf %905, %867 : vector<8x128xf32>
    %987 = arith.mulf %907, %891 : vector<8x128xf32>
    %988 = arith.subf %986, %987 : vector<8x128xf32>
    %989 = arith.mulf %907, %867 : vector<8x128xf32>
    %990 = arith.mulf %905, %891 : vector<8x128xf32>
    %991 = arith.addf %989, %990 : vector<8x128xf32>
    %992 = arith.mulf %905, %873 : vector<8x128xf32>
    %993 = arith.mulf %907, %897 : vector<8x128xf32>
    %994 = arith.subf %992, %993 : vector<8x128xf32>
    %995 = arith.mulf %907, %873 : vector<8x128xf32>
    %996 = arith.mulf %905, %897 : vector<8x128xf32>
    %997 = arith.addf %995, %996 : vector<8x128xf32>
    %998 = arith.mulf %905, %879 : vector<8x128xf32>
    %999 = arith.mulf %907, %903 : vector<8x128xf32>
    %1000 = arith.subf %998, %999 : vector<8x128xf32>
    %1001 = arith.mulf %907, %879 : vector<8x128xf32>
    %1002 = arith.mulf %905, %903 : vector<8x128xf32>
    %1003 = arith.addf %1001, %1002 : vector<8x128xf32>
    %c7_164 = arith.constant 7 : index
    %c0_165 = arith.constant 0 : index
    %1004 = memref.load %arg2[%c7_164, %c0_165] : memref<8x2xf32, #tpu.memory_space<smem>>
    %1005 = vector.broadcast %1004 : f32 to vector<8x128xf32>
    %c7_166 = arith.constant 7 : index
    %c1_167 = arith.constant 1 : index
    %1006 = memref.load %arg2[%c7_166, %c1_167] : memref<8x2xf32, #tpu.memory_space<smem>>
    %1007 = vector.broadcast %1006 : f32 to vector<8x128xf32>
    %1008 = arith.mulf %1005, %910 : vector<8x128xf32>
    %1009 = arith.mulf %1007, %922 : vector<8x128xf32>
    %1010 = arith.subf %1008, %1009 : vector<8x128xf32>
    %1011 = arith.mulf %1007, %910 : vector<8x128xf32>
    %1012 = arith.mulf %1005, %922 : vector<8x128xf32>
    %1013 = arith.addf %1011, %1012 : vector<8x128xf32>
    %1014 = arith.mulf %1005, %916 : vector<8x128xf32>
    %1015 = arith.mulf %1007, %928 : vector<8x128xf32>
    %1016 = arith.subf %1014, %1015 : vector<8x128xf32>
    %1017 = arith.mulf %1007, %916 : vector<8x128xf32>
    %1018 = arith.mulf %1005, %928 : vector<8x128xf32>
    %1019 = arith.addf %1017, %1018 : vector<8x128xf32>
    %1020 = arith.mulf %1005, %913 : vector<8x128xf32>
    %1021 = arith.mulf %1007, %925 : vector<8x128xf32>
    %1022 = arith.subf %1020, %1021 : vector<8x128xf32>
    %1023 = arith.mulf %1007, %913 : vector<8x128xf32>
    %1024 = arith.mulf %1005, %925 : vector<8x128xf32>
    %1025 = arith.addf %1023, %1024 : vector<8x128xf32>
    %1026 = arith.mulf %1005, %919 : vector<8x128xf32>
    %1027 = arith.mulf %1007, %931 : vector<8x128xf32>
    %1028 = arith.subf %1026, %1027 : vector<8x128xf32>
    %1029 = arith.mulf %1007, %919 : vector<8x128xf32>
    %1030 = arith.mulf %1005, %931 : vector<8x128xf32>
    %1031 = arith.addf %1029, %1030 : vector<8x128xf32>
    %1032 = arith.mulf %1005, %934 : vector<8x128xf32>
    %1033 = arith.mulf %1007, %946 : vector<8x128xf32>
    %1034 = arith.subf %1032, %1033 : vector<8x128xf32>
    %1035 = arith.mulf %1007, %934 : vector<8x128xf32>
    %1036 = arith.mulf %1005, %946 : vector<8x128xf32>
    %1037 = arith.addf %1035, %1036 : vector<8x128xf32>
    %1038 = arith.mulf %1005, %940 : vector<8x128xf32>
    %1039 = arith.mulf %1007, %952 : vector<8x128xf32>
    %1040 = arith.subf %1038, %1039 : vector<8x128xf32>
    %1041 = arith.mulf %1007, %940 : vector<8x128xf32>
    %1042 = arith.mulf %1005, %952 : vector<8x128xf32>
    %1043 = arith.addf %1041, %1042 : vector<8x128xf32>
    %1044 = arith.mulf %1005, %937 : vector<8x128xf32>
    %1045 = arith.mulf %1007, %949 : vector<8x128xf32>
    %1046 = arith.subf %1044, %1045 : vector<8x128xf32>
    %1047 = arith.mulf %1007, %937 : vector<8x128xf32>
    %1048 = arith.mulf %1005, %949 : vector<8x128xf32>
    %1049 = arith.addf %1047, %1048 : vector<8x128xf32>
    %1050 = arith.mulf %1005, %943 : vector<8x128xf32>
    %1051 = arith.mulf %1007, %955 : vector<8x128xf32>
    %1052 = arith.subf %1050, %1051 : vector<8x128xf32>
    %1053 = arith.mulf %1007, %943 : vector<8x128xf32>
    %1054 = arith.mulf %1005, %955 : vector<8x128xf32>
    %1055 = arith.addf %1053, %1054 : vector<8x128xf32>
    %1056 = arith.mulf %1005, %958 : vector<8x128xf32>
    %1057 = arith.mulf %1007, %970 : vector<8x128xf32>
    %1058 = arith.subf %1056, %1057 : vector<8x128xf32>
    %1059 = arith.mulf %1007, %958 : vector<8x128xf32>
    %1060 = arith.mulf %1005, %970 : vector<8x128xf32>
    %1061 = arith.addf %1059, %1060 : vector<8x128xf32>
    %1062 = arith.mulf %1005, %964 : vector<8x128xf32>
    %1063 = arith.mulf %1007, %976 : vector<8x128xf32>
    %1064 = arith.subf %1062, %1063 : vector<8x128xf32>
    %1065 = arith.mulf %1007, %964 : vector<8x128xf32>
    %1066 = arith.mulf %1005, %976 : vector<8x128xf32>
    %1067 = arith.addf %1065, %1066 : vector<8x128xf32>
    %1068 = arith.mulf %1005, %961 : vector<8x128xf32>
    %1069 = arith.mulf %1007, %973 : vector<8x128xf32>
    %1070 = arith.subf %1068, %1069 : vector<8x128xf32>
    %1071 = arith.mulf %1007, %961 : vector<8x128xf32>
    %1072 = arith.mulf %1005, %973 : vector<8x128xf32>
    %1073 = arith.addf %1071, %1072 : vector<8x128xf32>
    %1074 = arith.mulf %1005, %967 : vector<8x128xf32>
    %1075 = arith.mulf %1007, %979 : vector<8x128xf32>
    %1076 = arith.subf %1074, %1075 : vector<8x128xf32>
    %1077 = arith.mulf %1007, %967 : vector<8x128xf32>
    %1078 = arith.mulf %1005, %979 : vector<8x128xf32>
    %1079 = arith.addf %1077, %1078 : vector<8x128xf32>
    %1080 = arith.mulf %1005, %982 : vector<8x128xf32>
    %1081 = arith.mulf %1007, %994 : vector<8x128xf32>
    %1082 = arith.subf %1080, %1081 : vector<8x128xf32>
    %1083 = arith.mulf %1007, %982 : vector<8x128xf32>
    %1084 = arith.mulf %1005, %994 : vector<8x128xf32>
    %1085 = arith.addf %1083, %1084 : vector<8x128xf32>
    %1086 = arith.mulf %1005, %988 : vector<8x128xf32>
    %1087 = arith.mulf %1007, %1000 : vector<8x128xf32>
    %1088 = arith.subf %1086, %1087 : vector<8x128xf32>
    %1089 = arith.mulf %1007, %988 : vector<8x128xf32>
    %1090 = arith.mulf %1005, %1000 : vector<8x128xf32>
    %1091 = arith.addf %1089, %1090 : vector<8x128xf32>
    %1092 = arith.mulf %1005, %985 : vector<8x128xf32>
    %1093 = arith.mulf %1007, %997 : vector<8x128xf32>
    %1094 = arith.subf %1092, %1093 : vector<8x128xf32>
    %1095 = arith.mulf %1007, %985 : vector<8x128xf32>
    %1096 = arith.mulf %1005, %997 : vector<8x128xf32>
    %1097 = arith.addf %1095, %1096 : vector<8x128xf32>
    %1098 = arith.mulf %1005, %991 : vector<8x128xf32>
    %1099 = arith.mulf %1007, %1003 : vector<8x128xf32>
    %1100 = arith.subf %1098, %1099 : vector<8x128xf32>
    %1101 = arith.mulf %1007, %991 : vector<8x128xf32>
    %1102 = arith.mulf %1005, %1003 : vector<8x128xf32>
    %1103 = arith.addf %1101, %1102 : vector<8x128xf32>
    %1104 = arith.mulf %1010, %1010 : vector<8x128xf32>
    %1105 = arith.mulf %1016, %1016 : vector<8x128xf32>
    %1106 = arith.addf %1104, %1105 : vector<8x128xf32>
    %1107 = arith.mulf %1013, %1013 : vector<8x128xf32>
    %1108 = arith.mulf %1019, %1019 : vector<8x128xf32>
    %1109 = arith.addf %1107, %1108 : vector<8x128xf32>
    %1110 = arith.mulf %1022, %1022 : vector<8x128xf32>
    %1111 = arith.mulf %1028, %1028 : vector<8x128xf32>
    %1112 = arith.addf %1110, %1111 : vector<8x128xf32>
    %1113 = arith.mulf %1025, %1025 : vector<8x128xf32>
    %1114 = arith.mulf %1031, %1031 : vector<8x128xf32>
    %1115 = arith.addf %1113, %1114 : vector<8x128xf32>
    %1116 = arith.mulf %1034, %1034 : vector<8x128xf32>
    %1117 = arith.mulf %1040, %1040 : vector<8x128xf32>
    %1118 = arith.addf %1116, %1117 : vector<8x128xf32>
    %1119 = arith.mulf %1037, %1037 : vector<8x128xf32>
    %1120 = arith.mulf %1043, %1043 : vector<8x128xf32>
    %1121 = arith.addf %1119, %1120 : vector<8x128xf32>
    %1122 = arith.mulf %1046, %1046 : vector<8x128xf32>
    %1123 = arith.mulf %1052, %1052 : vector<8x128xf32>
    %1124 = arith.addf %1122, %1123 : vector<8x128xf32>
    %1125 = arith.mulf %1049, %1049 : vector<8x128xf32>
    %1126 = arith.mulf %1055, %1055 : vector<8x128xf32>
    %1127 = arith.addf %1125, %1126 : vector<8x128xf32>
    %1128 = arith.mulf %1058, %1058 : vector<8x128xf32>
    %1129 = arith.mulf %1064, %1064 : vector<8x128xf32>
    %1130 = arith.addf %1128, %1129 : vector<8x128xf32>
    %1131 = arith.mulf %1061, %1061 : vector<8x128xf32>
    %1132 = arith.mulf %1067, %1067 : vector<8x128xf32>
    %1133 = arith.addf %1131, %1132 : vector<8x128xf32>
    %1134 = arith.mulf %1070, %1070 : vector<8x128xf32>
    %1135 = arith.mulf %1076, %1076 : vector<8x128xf32>
    %1136 = arith.addf %1134, %1135 : vector<8x128xf32>
    %1137 = arith.mulf %1073, %1073 : vector<8x128xf32>
    %1138 = arith.mulf %1079, %1079 : vector<8x128xf32>
    %1139 = arith.addf %1137, %1138 : vector<8x128xf32>
    %1140 = arith.mulf %1082, %1082 : vector<8x128xf32>
    %1141 = arith.mulf %1088, %1088 : vector<8x128xf32>
    %1142 = arith.addf %1140, %1141 : vector<8x128xf32>
    %1143 = arith.mulf %1085, %1085 : vector<8x128xf32>
    %1144 = arith.mulf %1091, %1091 : vector<8x128xf32>
    %1145 = arith.addf %1143, %1144 : vector<8x128xf32>
    %1146 = arith.mulf %1094, %1094 : vector<8x128xf32>
    %1147 = arith.mulf %1100, %1100 : vector<8x128xf32>
    %1148 = arith.addf %1146, %1147 : vector<8x128xf32>
    %1149 = arith.mulf %1097, %1097 : vector<8x128xf32>
    %1150 = arith.mulf %1103, %1103 : vector<8x128xf32>
    %1151 = arith.addf %1149, %1150 : vector<8x128xf32>
    %1152 = arith.addf %1106, %1109 : vector<8x128xf32>
    %1153 = arith.addf %1152, %1112 : vector<8x128xf32>
    %1154 = arith.addf %1153, %1115 : vector<8x128xf32>
    %1155 = arith.addf %1154, %1118 : vector<8x128xf32>
    %1156 = arith.addf %1155, %1121 : vector<8x128xf32>
    %1157 = arith.addf %1156, %1124 : vector<8x128xf32>
    %1158 = arith.addf %1157, %1127 : vector<8x128xf32>
    %1159 = arith.subf %1158, %1130 : vector<8x128xf32>
    %1160 = arith.subf %1159, %1133 : vector<8x128xf32>
    %1161 = arith.subf %1160, %1136 : vector<8x128xf32>
    %1162 = arith.subf %1161, %1139 : vector<8x128xf32>
    %1163 = arith.subf %1162, %1142 : vector<8x128xf32>
    %1164 = arith.subf %1163, %1145 : vector<8x128xf32>
    %1165 = arith.subf %1164, %1148 : vector<8x128xf32>
    %1166 = arith.subf %1165, %1151 : vector<8x128xf32>
    %1167 = arith.addf %1106, %1109 : vector<8x128xf32>
    %1168 = arith.addf %1167, %1112 : vector<8x128xf32>
    %1169 = arith.addf %1168, %1115 : vector<8x128xf32>
    %1170 = arith.subf %1169, %1118 : vector<8x128xf32>
    %1171 = arith.subf %1170, %1121 : vector<8x128xf32>
    %1172 = arith.subf %1171, %1124 : vector<8x128xf32>
    %1173 = arith.subf %1172, %1127 : vector<8x128xf32>
    %1174 = arith.addf %1173, %1130 : vector<8x128xf32>
    %1175 = arith.addf %1174, %1133 : vector<8x128xf32>
    %1176 = arith.addf %1175, %1136 : vector<8x128xf32>
    %1177 = arith.addf %1176, %1139 : vector<8x128xf32>
    %1178 = arith.subf %1177, %1142 : vector<8x128xf32>
    %1179 = arith.subf %1178, %1145 : vector<8x128xf32>
    %1180 = arith.subf %1179, %1148 : vector<8x128xf32>
    %1181 = arith.subf %1180, %1151 : vector<8x128xf32>
    %1182 = arith.addf %1106, %1109 : vector<8x128xf32>
    %1183 = arith.subf %1182, %1112 : vector<8x128xf32>
    %1184 = arith.subf %1183, %1115 : vector<8x128xf32>
    %1185 = arith.addf %1184, %1118 : vector<8x128xf32>
    %1186 = arith.addf %1185, %1121 : vector<8x128xf32>
    %1187 = arith.subf %1186, %1124 : vector<8x128xf32>
    %1188 = arith.subf %1187, %1127 : vector<8x128xf32>
    %1189 = arith.addf %1188, %1130 : vector<8x128xf32>
    %1190 = arith.addf %1189, %1133 : vector<8x128xf32>
    %1191 = arith.subf %1190, %1136 : vector<8x128xf32>
    %1192 = arith.subf %1191, %1139 : vector<8x128xf32>
    %1193 = arith.addf %1192, %1142 : vector<8x128xf32>
    %1194 = arith.addf %1193, %1145 : vector<8x128xf32>
    %1195 = arith.subf %1194, %1148 : vector<8x128xf32>
    %1196 = arith.subf %1195, %1151 : vector<8x128xf32>
    %1197 = arith.subf %1106, %1109 : vector<8x128xf32>
    %1198 = arith.addf %1197, %1112 : vector<8x128xf32>
    %1199 = arith.subf %1198, %1115 : vector<8x128xf32>
    %1200 = arith.addf %1199, %1118 : vector<8x128xf32>
    %1201 = arith.subf %1200, %1121 : vector<8x128xf32>
    %1202 = arith.addf %1201, %1124 : vector<8x128xf32>
    %1203 = arith.subf %1202, %1127 : vector<8x128xf32>
    %1204 = arith.addf %1203, %1130 : vector<8x128xf32>
    %1205 = arith.subf %1204, %1133 : vector<8x128xf32>
    %1206 = arith.addf %1205, %1136 : vector<8x128xf32>
    %1207 = arith.subf %1206, %1139 : vector<8x128xf32>
    %1208 = arith.addf %1207, %1142 : vector<8x128xf32>
    %1209 = arith.subf %1208, %1145 : vector<8x128xf32>
    %1210 = arith.addf %1209, %1148 : vector<8x128xf32>
    %1211 = arith.subf %1210, %1151 : vector<8x128xf32>
    %1212 = vector.shape_cast %1166 : vector<8x128xf32> to vector<1x8x128xf32>
    %1213 = vector.shape_cast %1181 : vector<8x128xf32> to vector<1x8x128xf32>
    %1214 = vector.shape_cast %1196 : vector<8x128xf32> to vector<1x8x128xf32>
    %1215 = vector.shape_cast %1211 : vector<8x128xf32> to vector<1x8x128xf32>
    %1216 = tpu.concatenate %1212, %1213, %1214, %1215 in 0 : vector<1x8x128xf32>, vector<1x8x128xf32>, vector<1x8x128xf32>, vector<1x8x128xf32> -> vector<4x8x128xf32>
    %c0_168 = arith.constant 0 : index
    %c0_169 = arith.constant 0 : index
    %c0_170 = arith.constant 0 : index
    %1217 = vector.load %arg4[%c0_168, %c0_169, %c0_170] : memref<4x8x128xf32, #tpu.memory_space<vmem>>, vector<4x8x128xf32>
    tpu.vector_store %arg4[%c0_168, %c0_169, %c0_170], %1216 {strides = array<i32>} : memref<4x8x128xf32, #tpu.memory_space<vmem>>, vector<4x8x128xf32>,
    return
  }
  func.func @transform_0(%arg0: i32) -> (i32, i32) {
    %c0_i32 = arith.constant 0 : i32
    %c0_i32_0 = arith.constant 0 : i32
    %c0_i32_1 = arith.constant 0 : i32
    return %c0_i32, %c0_i32_0 : i32, i32
  }
  func.func @transform_1(%arg0: i32) -> (i32, i32) {
    %c0_i32 = arith.constant 0 : i32
    %c0_i32_0 = arith.constant 0 : i32
    %c0_i32_1 = arith.constant 0 : i32
    return %c0_i32, %c0_i32_0 : i32, i32
  }
  func.func @transform_2(%arg0: i32) -> (i32, i32, i32) {
    %c0_i32 = arith.constant 0 : i32
    %c0_i32_0 = arith.constant 0 : i32
    %c0_i32_1 = arith.constant 0 : i32
    return %c0_i32, %arg0, %c0_i32_0 : i32, i32, i32
  }
  func.func @transform_3(%arg0: i32) -> (i32, i32, i32) {
    %c0_i32 = arith.constant 0 : i32
    %c0_i32_0 = arith.constant 0 : i32
    %c0_i32_1 = arith.constant 0 : i32
    return %c0_i32, %arg0, %c0_i32_0 : i32, i32, i32
  }
}

</mosaic_0001>

<bundles_post_ra>
// kernel: tpu_custom_call.1
= control target key start
LH: loop header
LB: loop body
LE: loop exit
PB: predicated region body
PF: predicated region fallthrough
CT: control target
= control target key end

     0   :  { %s5640_s0 = inlined_call_operand.vmem [shape: f32[4,16], index: 0, kind: input, shape index: {}]   ;;  %s5641_s1 = inlined_call_operand.vmem [shape: f32[8,2], index: 1, kind: input, shape index: {}]   ;;  %s5642_s2 = inlined_call_operand.hbm [shape: f32[4,16,128], index: 2, kind: input, shape index: {}]   ;;  %s5643_s3 = inlined_call_operand.hbm [shape: f32[4,16,128], index: 3, kind: output, shape index: {}]  }
   0x1   :  { %5660 = sst [smem:[#allocation28_spill]] %s5640_s0 }
   0x2   :  { %5661 = sst [smem:[#allocation29_spill]] %s5641_s1 }
   0x3   :  { %5662 = sst [smem:[#allocation30_spill]] %s5642_s2 }
   0x4   :  { %5663 = sst [smem:[#allocation31_spill]] %s5643_s3 }
   0x5   :  { %8 = vsyncpa [#allocation5], 0 }
   0x6   :  { %9 = vsyncpa [#allocation7], 0 }
   0x7   :  { %10 = vsyncpa [#allocation3], 0 }
   0x8   :  { %12 = vsyncpa [#allocation3 + $0x1], 0 }
   0x9   :  { %13 = vsyncpa [#allocation4], 0 }
   0xa   :  { %15 = vsyncpa [#allocation4 + $0x1], 0  ;;  %s3133_s12 = smov 0   ;;  %s3135_s13 = smov 0  }
   0xb   :  { %s3137_s14 = smov 0   ;;  %s3139_s15 = smov 0  }
   0xc LB: > { %5664 = sst [smem:[#allocation14_spill]] %s3084_s12  ;;  %s3154_s16 = sadd.s32 4294967295, %s3096_s15   ;;  %s3096_s15 = sphi %s3139_s15, %s5711_s15   ;;  %s3092_s14 = sphi %s3137_s14, %s5714_s14   ;;  %s3088_s13 = sphi %s3135_s13, %s5713_s13   ;;  %s3084_s12 = sphi %s3133_s12, %s5712_s12  }
   0xd   : > { %5665 = sst [smem:[#allocation15_spill]] %s3088_s13  ;;  %s2758_s17 = sadd.s32 4294967294, %s3096_s15  }
   0xe   : > { %5666 = sst [smem:[#allocation16_spill]] %s3092_s14  ;;  %s3158_s18 = sadd.s32 1, %s3096_s15  }
   0xf   : > { %5667 = sst [smem:[#allocation17_spill]] %s3096_s15  ;;  %s70_s19 = sadd.s32 1, %s3092_s14 }
  0x10   : > { %5668 = sst [smem:[#allocation18_spill]] %s3154_s16  ;;  %s67_s20 = ssub.s32 %s3096_s15, %s3158_s18 }
  0x11   : > { %5669 = sst [smem:[#allocation19_spill]] %s3158_s18  ;;  %p77_p0 = scmp.ne.s32.totalorder %s3092_s14, %s3088_s13 }
  0x12   : > { %p68_p1 = scmp.eq.s32.totalorder %s67_s20, 0  ;;  %p78_p2 = scmp.eq.s32.totalorder %s3096_s15, 0 }
  0x13   : > { %p83_p3 = scmp.ne.s32.totalorder %s3088_s13, %s3084_s12  ;;  %p84_p4 = scmp.eq.s32.totalorder %s3154_s16, 0 }
  0x14   : > { %s3170_s21 = scalar_select %p68_p1, %s3092_s14, %s70_s19  }
  0x15   : > { %p3172_p5 = por %p78_p2, %p77_p0  ;;  %p3178_p6 = por %p84_p4, %p83_p3 }
  0x16   : > { %5670 = sst [smem:[#allocation20_spill]] %s3170_s21  ;;  %p107_p7 = scmp.eq.s32.totalorder %s3154_s16, 1 }
  0x17   : > { %p113_p8 = scmp.eq.s32.totalorder %s2758_s17, 1  ;;  %p2759_p9 = scmp.ge.s32.totalorder %s3096_s15, 1 }
  0x18   : > { %p120_p10 = scmp.lt.s32.totalorder %s3096_s15, 3  ;;  %p3185_p11 = por %p107_p7, %p77_p0 }
  0x19   : > { %p3189_p12 = por %p113_p8, %p83_p3  ;;  %s5678_s0 = sld [smem:[#allocation28_spill]] }
  0x1a   : > { %s5673_s24 = scalar_select %p3185_p11, 1, 0 }
  0x1b   : > { %s5675_s25 = scalar_select %p3189_p12, 1, 0 }
  0x1c   : > { %5674 = sst [smem:[#allocation21_spill]] %s5673_s24  ;;  %p3193_p13 = pnand %p2759_p9, %p120_p10 }
  0x1d   : > { %5676 = sst [smem:[#allocation22_spill]] %s5675_s25  ;;  %p2908_p2 = scmp.lt.s32.totalorder %s3096_s15, 2 }
  0x1e   : > { %p2891_p1 = pneg %p3193_p13  ;;  %s5679_s1 = sld [smem:[#allocation29_spill]] }
  0x1f   : > { %s132_s29 = sshll.u32 %s5678_s0, 4  ;;  %p3211_p7 = pnand %p2908_p2, %p3172_p5  ;;  %s133_s29 = int_to_ptr.vmem [resolvable:$true] %s132_s29 }
  0x20   : > { %p2892_p3 = pnand %p2891_p1, %p84_p4  ;;  %s3098_s7 = smov [#allocation2]  }
  0x21   : > { %s153_s8 = sand.u32 1, %s3092_s14   ;;  %s3099_s9 = smov [#allocation6]  }
  0x22   : > { %2894 = dma.vmem_to_smem (!%p2892_p3), %s133_s29, 64, %s3098_s7, [#allocation5]  }
  0x23   : > { %s2763_s10 = sshll.u32 %s153_s8, 5  ;;  %s2764_s11 = sshll.u32 %s3096_s15, 3 }
  0x24   : > { %s142_s5 = sshll.u32 %s5679_s1, 4  ;;  %s5681_s2 = sld [smem:[#allocation30_spill]]  ;;  %s143_s5 = int_to_ptr.vmem [resolvable:$true] %s142_s5 }
  0x25   : > { %2897 = dma.vmem_to_smem (!%p2892_p3), %s143_s5, 128, %s3099_s9, [#allocation7]  }
  0x26   : > { %s157_s27 = scalar_lea.vmem [#allocation8], %s2763_s10  ;;  %s154_s30 = scalar_lea.sflag [#allocation3], %s153_s8 }
  0x27   : > { %s164_s28 = sshll.u32 %s157_s27, 4  ;;  %p2996_p8 = pneg %p3211_p7  ;;  %s165_s28 = int_to_ptr.vmem [resolvable:$true] %s164_s28 }
  0x2a   : > { %s161_s20 = scalar_lea.hbm %s5681_s2, %s2764_s11  ;;  %s2999_s7 = scalar_lea.hbm %s5681_s2, 64 }
  0x2b   : > { %s162_s22 = sshll.u32 %s161_s20, 4  ;;  %s163_s22 = int_to_ptr.hbm [resolvable:$true] %s162_s22 }
  0x2c   : > { %s2992_s4 = sshra.s32 %s163_s22, 4  ;;  %s2993_s4 = int_to_ptr.hbm [resolvable:$true] %s2992_s4 }
  0x2d   : > { %s2994_s0 = scalar_lea.hbm %s2993_s4, 32  ;;  %p3000_p1 = scmp.lt.s32.totalorder %s2993_s4, %s5681_s2 }
  0x2e   : > { %p2995_p5 = scmp.ne.s32.totalorder %s2993_s4, %s2994_s0  ;;  %p3001_p2 = scmp.lt.s32.totalorder %s2999_s7, %s2994_s0 }
  0x30   : > { %p2997_p9 = pnand %p2996_p8, %p2995_p5  ;;  %p3002_p3 = por %p3001_p2, %p3000_p1 }
  0x32   : > { %p2998_p10 = pneg %p2997_p9 }
  0x34   : > { %p3003_p0 = pnand %p3002_p3, %p2998_p10 }
  0x36   : > { %3006 = shalt.err (!%p3003_p0)
}
  0x37   : > { %s3100_s8 = smov 256   ;;  %s3101_s10 = smov 128  }
  0x38   : > { %s3102_s17 = smov 8   ;;  %176 = sbr.rel (%p3193_p13) target bundleno = 528 (0x210), region = 32 }
  0x39   : > { %2901 = dma.hbm_to_vmem [thread:$0]  (!%p3211_p7), %s163_s22, 512, %s165_s28, %s154_s30, %s3100_s8, %s3101_s10, %s3102_s17  }
  0x3d   : > { %3067 = dma.done.wait (%p84_p4), [#allocation5], 64  }
  0x3e   : > { %3069 = vsyncadd (%p84_p4), [#allocation5], 4294967232 }
  0x3f   : > { %3071 = dma.done.wait (%p84_p4), [#allocation7], 128  }
  0x40   : > { %3073 = vsyncadd (%p84_p4), [#allocation7], 4294967168  ;;  %s3241_s0 = sand.u32 1, %s3088_s13  }
  0x41   : > { %5682 = sst [smem:[#allocation23_spill]] %s3241_s0  ;;  %s5644_s26 = sshll.u32 %s3241_s0, 5 }
  0x42   : > { %s189_s6 = scalar_lea.sflag [#allocation3], %s3241_s0  ;;  %s3247_s19 = scalar_lea.vmem [#allocation8], %s5644_s26 }
  0x43   : > { %3075 = dma.done.wait (%p3178_p6), %s189_s6, 512  }
  0x44   : > { %3077 = vsyncadd (%p3178_p6), %s189_s6, 4294966784 }
  0x45   : > { %198 = sfence }
  0x46   : > { %v3254_v0 = vld [vmem:[%s3247_s19] sm:$0xff]  ;;  %v3259_v4 = vld [vmem:[%s3247_s19 + $0x8] sm:$0xff]  ;;  %v3103_v17 = vmov 683565275   ;;  %v3104_v19 = vmov 2475754826  }
  0x47   : > { %v221_v1 = vand.u32 2139095040, %v3254_v0  ;;  %v218_v2 = vand.u32 2147483647, %v3254_v0  ;;  %v377_v6 = vand.u32 2139095040, %v3259_v4  ;;  %v3105_v21 = vmov 2131351028  }
  0x48   : > { %v3106_v23 = vmov 2102212464   ;;  %v3107_v25 = vmov 920167782   ;;  %v374_v27 = vand.u32 2147483647, %v3259_v4 }
  0x49   : > { %v222_v3 = vshrl.u32 %v221_v1, 23  ;;  %v225_v7 = vand.u32 8388607, %v218_v2  ;;  %v378_v9 = vshrl.u32 %v377_v6, 23  ;;  %v3108_v33 = vmov 1326507024  }
  0x4a   : > { %v3305_v43 = vld [vmem:[%s3247_s19 + $0x10] sm:$0xff]  ;;  %v381_v53 = vand.u32 8388607, %v374_v27  ;;  %s3700_s23 = sld [smem:[#allocation2]] }
  0x4b   : > { %v2770_v5 = vadd.s32 4294967169, %v222_v3  ;;  %v2774_v10 = vadd.s32 4294967169, %v378_v9  ;;  %v226_v12 = vor.u32 8388608, %v225_v7  ;;  %v533_v54 = vand.u32 2139095040, %v3305_v43  ;;  %s3702_s20 = sld [smem:[#allocation2 + $0x80]] }
  0x4c   : > { %v382_v6 = vor.u32 8388608, %v381_v53  ;;  %s3708_s27 = sld [smem:[#allocation2 + $0x1]] }
  0x4d   : > { %v228_v8 = vadd.s32 1, %v2770_v5  ;;  %v384_v15 = vadd.s32 1, %v2774_v10  ;;  %v3280_v31 = vshll.u32 %v226_v12, 8  ;;  %s3712_s28 = sld [smem:[#allocation2 + $0x81]] }
  0x4e   : > { %s3716_s22 = sld [smem:[#allocation2 + $0x2]] }
  0x4f   : > { %vm229_vm0 = vcmp.gt.s32.totalorder %v228_v8, 0  ;;  %vm385_vm3 = vcmp.gt.s32.totalorder %v384_v15, 0  ;;  %v267_v46 = vand.u32 65535, %v3280_v31  ;;  %v268_v49 = vshrl.u32 %v3280_v31, 16  ;;  %s3725_s30 = sld [smem:[#allocation2 + $0x82]] }
  0x50   : > { %v230_v11 = vsel %vm229_vm0, %v228_v8, 0  ;;  %v386_v40 = vsel %vm385_vm3, %v384_v15, 0  ;;  %v534_v8 = vshrl.u32 %v533_v54, 23  ;;  %s3731_s4 = sld [smem:[#allocation2 + $0x3]] }
  0x51   : > { %v232_v13 = vand.u32 31, %v230_v11  ;;  %v3264_v14 = vshrl.u32 %v230_v11, 5  ;;  %v388_v50 = vand.u32 31, %v386_v40  ;;  %s3736_s29 = sld [smem:[#allocation2 + $0x83]] }
  0x52   : > { %s3742_s5 = sld [smem:[#allocation2 + $0x4]] }
  0x53   : > { %v3266_v16 = vsub.s32 32, %v232_v13  ;;  %v235_v18 = vshll.u32 %v3103_v17, %v232_v13  ;;  %v238_v20 = vshll.u32 %v3104_v19, %v232_v13  ;;  %v241_v22 = vshll.u32 %v3105_v21, %v232_v13  ;;  %s3757_s7 = sld [smem:[#allocation2 + $0x84]] }
  0x54   : > { %v244_v24 = vshll.u32 %v3106_v23, %v232_v13  ;;  %v247_v26 = vshll.u32 %v3107_v25, %v232_v13  ;;  %vm250_vm1 = vcmp.lt.s32.totalorder %v3264_v14, 1  ;;  %vm253_vm2 = vcmp.lt.s32.totalorder %v3264_v14, 4  ;;  %s3762_s9 = sld [smem:[#allocation2 + $0x5]] }
  0x55   : > { %v236_v28 = vshrl.u32 %v3104_v19, %v3266_v16  ;;  %v239_v29 = vshrl.u32 %v3105_v21, %v3266_v16  ;;  %v242_v30 = vshrl.u32 %v3106_v23, %v3266_v16  ;;  %v245_v32 = vshrl.u32 %v3107_v25, %v3266_v16  ;;  %s3770_s11 = sld [smem:[#allocation2 + $0x85]] }
  0x56   : > { %v248_v34 = vshrl.u32 %v3108_v33, %v3266_v16  ;;  %vm252_vm4 = vcmp.lt.s32.totalorder %v3264_v14, 3  ;;  %vm251_vm5 = vcmp.lt.s32.totalorder %v3264_v14, 2  ;;  %v3329_v62 = vsub.s32 32, %v388_v50  ;;  %s3781_s8 = sld [smem:[#allocation2 + $0x6]] }
  0x57   : > { %v3288_v35 = vor.u32 %v236_v28, %v235_v18  ;;  %v3290_v36 = vor.u32 %v239_v29, %v238_v20  ;;  %v3292_v37 = vor.u32 %v242_v30, %v241_v22  ;;  %v246_v38 = vor.u32 %v245_v32, %v244_v24  ;;  %s3792_s10 = sld [smem:[#allocation2 + $0x86]] }
  0x58   : > { %v249_v39 = vor.u32 %v248_v34, %v247_v26  ;;  %v391_v7 = vshll.u32 %v3103_v17, %v388_v50  ;;  %v394_v12 = vshll.u32 %v3104_v19, %v388_v50  ;;  %v392_v18 = vshrl.u32 %v3104_v19, %v3329_v62  ;;  %s3802_s17 = sld [smem:[#allocation2 + $0x7]] }
  0x59   : > { %v258_v41 = vsel %vm250_vm1, %v3288_v35, %v3290_v36  ;;  %v262_v42 = vsel %vm250_vm1, %v3290_v36, %v3292_v37  ;;  %v259_v44 = vsel %vm253_vm2, %v246_v38, 920167782  ;;  %v3109_v20 = vmov 0   ;;  %s3812_s6 = sld [smem:[#allocation2 + $0x87]] }
  0x5a   : > { %v263_v45 = vsel %vm253_vm2, %v249_v39, 1326507024  ;;  %v260_v47 = vsel %vm252_vm4, %v3292_v37, %v259_v44  ;;  %v395_v26 = vshrl.u32 %v3105_v21, %v3329_v62  ;;  %v3346_v28 = vshrl.u32 %v386_v40, 5  ;;  %s3821_s26 = sld [smem:[#allocation2 + $0x8]] }
  0x5b   : > { %v264_v48 = vsel %vm252_vm4, %v246_v38, %v263_v45  ;;  %v261_v51 = vsel %vm251_vm5, %v258_v41, %v260_v47  ;;  %v397_v29 = vshll.u32 %v3105_v21, %v388_v50  ;;  %v2778_v30 = vadd.s32 4294967169, %v534_v8  ;;  %s3825_s1 = sld [smem:[#allocation2 + $0x88]] }
  0x5c   : > { %v265_v52 = vsel %vm251_vm5, %v262_v42, %v264_v48  ;;  %v291_v57 = vand.u32 65535, %v261_v51  ;;  %v292_v58 = vshrl.u32 %v261_v51, 16  ;;  %v3349_v38 = vshll.u32 %v382_v6, 8  ;;  %s3829_s2 = sld [smem:[#allocation2 + $0x9]] }
  0x5d   : > { %v269_v55 = vand.u32 65535, %v265_v52  ;;  %v270_v56 = vshrl.u32 %v265_v52, 16  ;;  %v3356_v42 = vor.u32 %v392_v18, %v391_v7  ;;  %v398_v40 = vshrl.u32 %v3106_v23, %v3329_v62  ;;  %s3835_s21 = sld [smem:[#allocation2 + $0x89]] }
  0x5e   : > { %v293_v63 = vmul.u32 %v291_v57, %v267_v46  ;;  %v3331_v1 = vmul.u32 %v292_v58, %v267_v46  ;;  %v3333_v3 = vmul.u32 %v291_v57, %v268_v49  ;;  %v296_v34 = vmul.u32 %v292_v58, %v268_v49  ;;  %s3847_s14 = sld [smem:[#allocation2 + $0xa]] }
  0x5f   : > { %v271_v59 = vmul.u32 %v269_v55, %v267_v46  ;;  %v3325_v60 = vmul.u32 %v270_v56, %v267_v46  ;;  %v3327_v61 = vmul.u32 %v269_v55, %v268_v49  ;;  %v274_v9 = vmul.u32 %v270_v56, %v268_v49  ;;  %s3849_s13 = sld [smem:[#allocation2 + $0x8a]] }
  0x60   : > { %v297_v11 = vshll.u32 %v3331_v1, 16  ;;  %v299_v15 = vshll.u32 %v3333_v3, 16  ;;  %v3360_v44 = vor.u32 %v395_v26, %v394_v12  ;;  %v400_v45 = vshll.u32 %v3106_v23, %v388_v50  ;;  %s3856_s18 = sld [smem:[#allocation2 + $0xb]] }
  0x61   : > { %v275_v5 = vshll.u32 %v3325_v60, 16  ;;  %v277_v10 = vshll.u32 %v3327_v61, 16  ;;  %v401_v46 = vshrl.u32 %v3107_v25, %v3329_v62  ;;  %v403_v47 = vshll.u32 %v3107_v25, %v388_v50  ;;  %s3861_s15 = sld [smem:[#allocation2 + $0x8b]] }
  0x62   : > { %vm301_vm7 = vc.u32 %v293_v63, %v297_v11  ;;  %v303_v24 = vadd.s32 %v297_v11, %v293_v63  ;;  %v399_v49 = vor.u32 %v398_v40, %v397_v29  ;;  %v404_v51 = vshrl.u32 %v3108_v33, %v3329_v62  ;;  %s3866_s25 = sld [smem:[#allocation2 + $0xc]] }
  0x63   : > { %vm279_vm6 = vc.u32 %v271_v59, %v275_v5  ;;  %v281_v13 = vadd.s32 %v275_v5, %v271_v59  ;;  %v302_v39 = vsel %vm301_vm7, 1, %v3109_v20  ;;  %vm406_vm10 = vcmp.lt.s32.totalorder %v3346_v28, 1  ;;  %s3877_s12 = sld [smem:[#allocation2 + $0xd]] }
  0x64   : > { %v280_v22 = vsel %vm279_vm6, 1, %v3109_v20  ;;  %vm3352_vm9 = vc.u32 %v303_v24, %v299_v15  ;;  %v304_v52 = vadd.s32 %v302_v39, %v296_v34  ;;  %v402_v53 = vor.u32 %v401_v46, %v400_v45  ;;  %s3885_s24 = sld [smem:[#allocation2 + $0x8d]] }
  0x65   : > { %v282_v32 = vadd.s32 %v280_v22, %v274_v9  ;;  %vm283_vm8 = vc.u32 %v281_v13, %v277_v10  ;;  %vm408_vm11 = vcmp.lt.s32.totalorder %v3346_v28, 3  ;;  %vm409_vm12 = vcmp.lt.s32.totalorder %v3346_v28, 4  ;;  %s3889_s3 = sld [smem:[#allocation2 + $0xe]] }
  0x66   : > { %v284_v48 = vsel %vm283_vm8, 1, %v3109_v20  ;;  %v234_v54 = vshrl.u32 %v3103_v17, %v3266_v16  ;;  %v306_v50 = vsel %vm3352_vm9, 1, %v3109_v20  ;;  %v405_v55 = vor.u32 %v404_v51, %v403_v47  ;;  %s3892_s0 = sld [smem:[#allocation2 + $0x8e]] }
  0x67   : > { %vm407_vm13 = vcmp.lt.s32.totalorder %v3346_v28, 2  ;;  %v276_v56 = vshrl.u32 %v3325_v60, 16  ;;  %v286_v57 = vadd.s32 %v284_v48, %v282_v32  ;;  %v414_v58 = vsel %vm406_vm10, %v3356_v42, %v3360_v44  ;;  %s3895_s16 = sld [smem:[#allocation2 + $0xf]] }
  0x68   : > { %v415_v59 = vsel %vm409_vm12, %v402_v53, 920167782  ;;  %v255_v16 = vsel %vm253_vm2, %v3292_v37, 2102212464  ;;  %v298_v63 = vshrl.u32 %v3331_v1, 16  ;;  %v423_v60 = vand.u32 65535, %v3349_v38 }
  0x69   : > { %v416_v5 = vsel %vm408_vm11, %v399_v49, %v415_v59  ;;  %v308_v6 = vadd.s32 %v306_v50, %v304_v52  ;;  %v418_v8 = vsel %vm406_vm10, %v3360_v44, %v399_v49  ;;  %v419_v9 = vsel %vm409_vm12, %v405_v55, 1326507024 }
  0x6a   : > { %v417_v7 = vsel %vm407_vm13, %v414_v58, %v416_v5  ;;  %v420_v37 = vsel %vm408_vm11, %v402_v53, %v419_v9  ;;  %v424_v1 = vshrl.u32 %v3349_v38, 16  ;;  %v278_v12 = vshrl.u32 %v3327_v61, 16 }
  0x6b   : > { %v447_v10 = vand.u32 65535, %v417_v7  ;;  %v448_v11 = vshrl.u32 %v417_v7, 16  ;;  %v287_v13 = vadd.s32 %v286_v57, %v276_v56  ;;  %v421_v18 = vsel %vm407_vm13, %v418_v8, %v420_v37  ;;  %5693 = sst [smem:[#allocation24_spill]] %s3889_s3 }
  0x6c   : > { %v540_v22 = vadd.s32 1, %v2778_v30  ;;  %v254_v26 = vsel %vm250_vm1, %v234_v54, %v3288_v35  ;;  %v256_v29 = vsel %vm252_vm4, %v3290_v36, %v255_v16  ;;  %v425_v32 = vand.u32 65535, %v421_v18  ;;  %5694 = sst [smem:[#allocation25_spill]] %s3892_s0 }
  0x6d   : > { %v426_v34 = vshrl.u32 %v421_v18, 16  ;;  %v300_v39 = vshrl.u32 %v3333_v3, 16  ;;  %v309_v41 = vadd.s32 %v308_v6, %v298_v63  ;;  %v450_v40 = vmul.u32 %v448_v11, %v423_v60  ;;  %s3899_s3 = sld [smem:[#allocation2 + $0x8f]] }
  0x6e   : > { %v451_v61 = vmul.u32 %v447_v10, %v424_v1  ;;  %v3412_v45 = vadd.s32 %v303_v24, %v299_v15  ;;  %v427_v46 = vmul.u32 %v425_v32, %v423_v60  ;;  %v3414_v30 = vadd.s32 %v287_v13, %v278_v12  ;;  %s3904_s0 = sld [smem:[#allocation6]] }
  0x6f   : > { %v428_v47 = vmul.u32 %v426_v34, %v423_v60  ;;  %v429_v48 = vmul.u32 %v425_v32, %v424_v1  ;;  %v449_v51 = vmul.u32 %v447_v10, %v423_v60  ;;  %v453_v35 = vshll.u32 %v450_v40, 16 }
  0x70   : > { %v257_v52 = vsel %vm251_vm5, %v254_v26, %v256_v29  ;;  %v390_v36 = vshrl.u32 %v3103_v17, %v3329_v62  ;;  %v430_v53 = vmul.u32 %v426_v34, %v424_v1  ;;  %v310_v54 = vadd.s32 %v309_v41, %v300_v39 }
  0x71   : > { %v431_v3 = vshll.u32 %v428_v47, 16  ;;  %v433_v50 = vshll.u32 %v429_v48, 16  ;;  %v455_v55 = vshll.u32 %v451_v61, 16  ;;  %vm541_vm14 = vcmp.gt.s32.totalorder %v540_v22, 0 }
  0x72   : > { %v411_v15 = vsel %vm409_vm12, %v399_v49, 2102212464  ;;  %v452_v56 = vmul.u32 %v448_v11, %v424_v1  ;;  %vm313_vm0 = vc.u32 %v3414_v30, %v3412_v45  ;;  %vm457_vm1 = vc.u32 %v449_v51, %v453_v35 }
  0x73   : > { %vm435_vm15 = vc.u32 %v427_v46, %v431_v3  ;;  %v437_v24 = vadd.s32 %v431_v3, %v427_v46  ;;  %v459_v57 = vadd.s32 %v453_v35, %v449_v51  ;;  %v432_v62 = vshrl.u32 %v428_v47, 16 }
  0x74   : > { %v436_v14 = vsel %vm435_vm15, 1, %v3109_v20  ;;  %v542_v59 = vsel %vm541_vm14, %v540_v22, 0  ;;  %v314_v16 = vadd.s32 1, %v310_v54  ;;  %v458_v5 = vsel %vm457_vm1, 1, %v3109_v20 }
  0x75   : > { %v438_v58 = vadd.s32 %v436_v14, %v430_v53  ;;  %vm439_vm2 = vc.u32 %v437_v24, %v433_v50  ;;  %vm461_vm3 = vc.u32 %v459_v57, %v455_v55  ;;  %v434_v49 = vshrl.u32 %v429_v48, 16 }
  0x76   : > { %v440_v63 = vsel %vm439_vm2, 1, %v3109_v20  ;;  %v454_v6 = vshrl.u32 %v450_v40, 16  ;;  %v460_v7 = vadd.s32 %v458_v5, %v452_v56  ;;  %v311_v8 = vmul.u32 %v3280_v31, %v257_v52 }
  0x77   : > { %v442_v60 = vadd.s32 %v440_v63, %v438_v58  ;;  %v410_v9 = vsel %vm406_vm10, %v390_v36, %v3356_v42  ;;  %v462_v37 = vsel %vm461_vm3, 1, %v3109_v20  ;;  %v544_v1 = vand.u32 31, %v542_v59 }
  0x78   : > { %v412_v10 = vsel %vm408_vm11, %v3360_v44, %v411_v15  ;;  %v456_v12 = vshrl.u32 %v451_v61, 16  ;;  %v464_v13 = vadd.s32 %v462_v37, %v460_v7  ;;  %v315_v18 = vsel %vm313_vm0, %v314_v16, %v310_v54 }
  0x79   : > { %v443_v11 = vadd.s32 %v442_v60, %v432_v62  ;;  %v3438_v22 = vadd.s32 %v459_v57, %v455_v55  ;;  %v530_v42 = vand.u32 2147483647, %v3305_v43  ;;  %v413_v29 = vsel %vm407_vm13, %v410_v9, %v412_v10 }
  0x7a   : > { %v465_v26 = vadd.s32 %v464_v13, %v454_v6  ;;  %v3445_v32 = vsub.s32 32, %v544_v1  ;;  %v316_v44 = vadd.s32 %v315_v18, %v311_v8  ;;  %v467_v39 = vmul.u32 %v3349_v38, %v413_v29 }
  0x7b   : > { %v3440_v31 = vadd.s32 %v443_v11, %v434_v49  ;;  %v537_v40 = vand.u32 8388607, %v530_v42  ;;  %v556_v61 = vshll.u32 %v3106_v23, %v544_v1  ;;  %v550_v46 = vshll.u32 %v3104_v19, %v544_v1 }
  0x7c   : > { %v466_v34 = vadd.s32 %v465_v26, %v456_v12  ;;  %v551_v28 = vshrl.u32 %v3105_v21, %v3445_v32  ;;  %v553_v47 = vshll.u32 %v3105_v21, %v544_v1  ;;  %v554_v48 = vshrl.u32 %v3106_v23, %v3445_v32 }
  0x7d   : > { %vm469_vm4 = vc.u32 %v3440_v31, %v3438_v22  ;;  %v317_v51 = vadd.s32 536870912, %v316_v44  ;;  %v3459_v52 = vshrl.u32 %v542_v59, 5  ;;  %v557_v38 = vshrl.u32 %v3107_v25, %v3445_v32 }
  0x7e   : > { %v470_v41 = vadd.s32 1, %v466_v34  ;;  %v547_v36 = vshll.u32 %v3103_v17, %v544_v1  ;;  %v548_v53 = vshrl.u32 %v3104_v19, %v3445_v32  ;;  %v559_v50 = vshll.u32 %v3107_v25, %v544_v1 }
  0x7f   : > { %v558_v54 = vor.u32 %v557_v38, %v556_v61  ;;  %v560_v55 = vshrl.u32 %v3108_v33, %v3445_v32  ;;  %v538_v15 = vor.u32 8388608, %v537_v40  ;;  %v3469_v24 = vor.u32 %v551_v28, %v550_v46 }
  0x80   : > { %v471_v35 = vsel %vm469_vm4, %v470_v41, %v466_v34  ;;  %v555_v56 = vor.u32 %v554_v48, %v553_v47  ;;  %v3471_v14 = vshrl.u32 %v317_v51, 30  ;;  %vm562_vm5 = vcmp.lt.s32.totalorder %v3459_v52, 1 }
  0x81   : > { %v472_v3 = vadd.s32 %v471_v35, %v467_v39  ;;  %v561_v57 = vor.u32 %v560_v55, %v559_v50  ;;  %vm565_vm6 = vcmp.lt.s32.totalorder %v3459_v52, 4  ;;  %v3475_v62 = vor.u32 %v548_v53, %v547_v36 }
  0x82   : > { %vm564_vm7 = vcmp.lt.s32.totalorder %v3459_v52, 3  ;;  %v571_v59 = vsel %vm565_vm6, %v558_v54, 920167782  ;;  %vm563_vm8 = vcmp.lt.s32.totalorder %v3459_v52, 2  ;;  %v574_v63 = vsel %vm562_vm5, %v3469_v24, %v555_v56 }
  0x83   : > { %v473_v58 = vadd.s32 536870912, %v472_v3  ;;  %v575_v16 = vsel %vm565_vm6, %v561_v57, 1326507024  ;;  %v319_v5 = vshll.u32 %v3471_v14, 30  ;;  %v3489_v60 = vshll.u32 %v538_v15, 8 }
  0x84   : > { %v576_v49 = vsel %vm564_vm7, %v558_v54, %v575_v16  ;;  %v570_v6 = vsel %vm562_vm5, %v3475_v62, %v3469_v24  ;;  %v572_v7 = vsel %vm564_vm7, %v555_v56, %v571_v59  ;;  %v3518_v59 = vld [vmem:[%s3247_s19 + $0x18] sm:$0xff]  ;;  %v312_v52 = vadd.s32 %v3412_v45, %v3414_v30 }
  0x85   : > { %v3497_v8 = vshrl.u32 %v473_v58, 30  ;;  %v577_v9 = vsel %vm563_vm8, %v574_v63, %v576_v49  ;;  %v579_v37 = vand.u32 65535, %v3489_v60  ;;  %v3502_v10 = vsub.s32 %v316_v44, %v319_v5 }
  0x86   : > { %v581_v1 = vand.u32 65535, %v577_v9  ;;  %v573_v11 = vsel %vm563_vm8, %v570_v6, %v572_v7  ;;  %v580_v12 = vshrl.u32 %v3489_v60, 16  ;;  %v582_v13 = vshrl.u32 %v577_v9, 16 }
  0x87   : > { %v475_v18 = vshll.u32 %v3497_v8, 30  ;;  %v604_v34 = vshrl.u32 %v573_v11, 16  ;;  %v322_v39 = vsub.s32 0, %v3502_v10  ;;  %vm321_vm9 = vcmp.lt.s32.totalorder %v3502_v10, 0 }
  0x88   : > { %v583_v26 = vmul.u32 %v581_v1, %v579_v37  ;;  %v584_v29 = vmul.u32 %v582_v13, %v579_v37  ;;  %v585_v41 = vmul.u32 %v581_v1, %v580_v12  ;;  %v603_v61 = vand.u32 65535, %v573_v11 }
  0x89   : > { %v3510_v44 = vsub.s32 %v472_v3, %v475_v18  ;;  %v586_v46 = vmul.u32 %v582_v13, %v580_v12  ;;  %v606_v47 = vmul.u32 %v604_v34, %v579_v37  ;;  %v323_v48 = vsel %vm321_vm9, %v322_v39, %v3502_v10 }
  0x8a   : > { %v587_v40 = vshll.u32 %v584_v29, 16  ;;  %v589_v51 = vshll.u32 %v585_v41, 16  ;;  %v607_v35 = vmul.u32 %v603_v61, %v580_v12  ;;  %v605_v54 = vmul.u32 %v603_v61, %v579_v37 }
  0x8b   : > { %v478_v38 = vsub.s32 0, %v3510_v44  ;;  %v324_v50 = vclz %v323_v48  ;;  %vm477_vm11 = vcmp.lt.s32.totalorder %v3510_v44, 0  ;;  %v609_v3 = vshll.u32 %v606_v47, 16 }
  0x8c   : > { %vm591_vm10 = vc.u32 %v583_v26, %v587_v40  ;;  %v593_v36 = vadd.s32 %v587_v40, %v583_v26  ;;  %v588_v55 = vshrl.u32 %v584_v29, 16  ;;  %v608_v15 = vmul.u32 %v604_v34, %v580_v12 }
  0x8d   : > { %v592_v28 = vsel %vm591_vm10, 1, %v3109_v20  ;;  %v611_v58 = vshll.u32 %v607_v35, 16  ;;  %v479_v16 = vsel %vm477_vm11, %v478_v38, %v3510_v44  ;;  %v546_v63 = vshrl.u32 %v3103_v17, %v3445_v32 }
  0x8e   : > { %v594_v53 = vadd.s32 %v592_v28, %v586_v46  ;;  %vm595_vm12 = vc.u32 %v593_v36, %v589_v51  ;;  %vm613_vm13 = vc.u32 %v605_v54, %v609_v3  ;;  %v2771_v49 = vadd.s32 4294967294, %v324_v50 }
  0x8f   : > { %v596_v57 = vsel %vm595_vm12, 1, %v3109_v20  ;;  %v567_v6 = vsel %vm565_vm6, %v555_v56, 2102212464  ;;  %v614_v7 = vsel %vm613_vm13, 1, %v3109_v20  ;;  %v615_v9 = vadd.s32 %v609_v3, %v605_v54 }
  0x90   : > { %v598_v5 = vadd.s32 %v596_v57, %v594_v53  ;;  %v590_v37 = vshrl.u32 %v585_v41, 16  ;;  %v616_v11 = vadd.s32 %v614_v7, %v608_v15  ;;  %v689_v12 = vand.u32 2139095040, %v3518_v59 }
  0x91   : > { %v480_v13 = vclz %v479_v16  ;;  %v610_v18 = vshrl.u32 %v606_v47, 16  ;;  %vm617_vm14 = vc.u32 %v615_v9, %v611_v58  ;;  %v566_v32 = vsel %vm562_vm5, %v546_v63, %v3475_v62 }
  0x92   : > { %v599_v1 = vadd.s32 %v598_v5, %v588_v55  ;;  %v568_v26 = vsel %vm564_vm7, %v3469_v24, %v567_v6  ;;  %v618_v56 = vsel %vm617_vm14, 1, %v3109_v20  ;;  %v690_v29 = vshrl.u32 %v689_v12, 23 }
  0x93   : > { %v612_v34 = vshrl.u32 %v607_v35, 16  ;;  %v620_v39 = vadd.s32 %v618_v56, %v616_v11  ;;  %vm2772_vm15 = vcmp.lt.s32.totalorder %v2771_v49, 0  ;;  %v3536_v40 = vadd.s32 %v615_v9, %v611_v58 }
  0x94   : > { %v3534_v41 = vadd.s32 %v599_v1, %v590_v37  ;;  %v2782_v61 = vadd.s32 4294967169, %v690_v29  ;;  %v2775_v46 = vadd.s32 4294967294, %v480_v13  ;;  %v569_v28 = vsel %vm563_vm8, %v566_v32, %v568_v26 }
  0x95   : > { %v621_v62 = vadd.s32 %v620_v39, %v610_v18  ;;  %v327_v48 = vsel %vm2772_vm15, 0, %v2771_v49  ;;  %v623_v24 = vmul.u32 %v3489_v60, %v569_v28  ;;  %v686_v53 = vand.u32 2147483647, %v3518_v59 }
  0x96   : > { %v696_v47 = vadd.s32 1, %v2782_v61  ;;  %vm625_vm0 = vc.u32 %v3534_v41, %v3536_v40  ;;  %vm2776_vm2 = vcmp.lt.s32.totalorder %v2775_v46, 0  ;;  %v332_v36 = vsub.s32 4294967266, %v327_v48 }
  0x97   : > { %v622_v51 = vadd.s32 %v621_v62, %v612_v34  ;;  %v328_v50 = vsub.s32 32, %v327_v48  ;;  %v3546_v55 = vsel %vm2776_vm2, 0, %v2775_v46  ;;  %v329_v57 = vshll.u32 %v3502_v10, %v327_v48 }
  0x98   : > { %vm697_vm1 = vcmp.gt.s32.totalorder %v696_v47, 0  ;;  %v333_v58 = vadd.s32 127, %v332_v36  ;;  %v693_v63 = vand.u32 8388607, %v686_v53  ;;  %v488_v49 = vsub.s32 4294967266, %v3546_v55 }
  0x99   : > { %v626_v35 = vadd.s32 1, %v622_v51  ;;  %v698_v38 = vsel %vm697_vm1, %v696_v47, 0  ;;  %v330_v5 = vshrl.u32 %v312_v52, %v328_v50  ;;  %v468_v18 = vadd.s32 %v3438_v22, %v3440_v31 }
  0x9a   : > { %v700_v54 = vand.u32 31, %v698_v38  ;;  %v3554_v6 = vshrl.u32 %v698_v38, 5  ;;  %v334_v13 = vshll.u32 %v333_v58, 23  ;;  %v484_v56 = vsub.s32 32, %v3546_v55 }
  0x9b   : > { %v627_v3 = vsel %vm625_vm0, %v626_v35, %v622_v51  ;;  %v331_v26 = vor.u32 %v330_v5, %v329_v57  ;;  %v489_v34 = vadd.s32 127, %v488_v49  ;;  %vm220_vm9 = vcmp.lt.s32.totalorder %v3254_v0, 0 }
  0x9c   : > { %v628_v15 = vadd.s32 %v627_v3, %v623_v24  ;;  %v3548_v60 = vsub.s32 32, %v700_v54  ;;  %v706_v45 = vshll.u32 %v3104_v19, %v700_v54  ;;  %v709_v9 = vshll.u32 %v3105_v21, %v700_v54 }
  0x9d   : > { %v703_v37 = vshll.u32 %v3103_v17, %v700_v54  ;;  %v712_v11 = vshll.u32 %v3106_v23, %v700_v54  ;;  %v715_v29 = vshll.u32 %v3107_v25, %v700_v54  ;;  %vm718_vm3 = vcmp.lt.s32.totalorder %v3554_v6, 1 }
  0x9e   : > { %v629_v16 = vadd.s32 536870912, %v628_v15  ;;  %v707_v7 = vshrl.u32 %v3105_v21, %v3548_v60  ;;  %v710_v10 = vshrl.u32 %v3106_v23, %v3548_v60  ;;  %v704_v1 = vshrl.u32 %v3104_v19, %v3548_v60 }
  0x9f   : > { %v713_v12 = vshrl.u32 %v3107_v25, %v3548_v60  ;;  %v694_v21 = vor.u32 8388608, %v693_v63  ;;  %v716_v19 = vshrl.u32 %v3108_v33, %v3548_v60  ;;  %v335_v28 = vor.u32 4788187, %v334_v13 }
  0xa0   : > { %v3557_v30 = vshrl.u32 %v629_v16, 30  ;;  %v3579_v39 = vor.u32 %v707_v7, %v706_v45  ;;  %v3581_v61 = vor.u32 %v710_v10, %v709_v9  ;;  %v3583_v46 = vor.u32 %v704_v1, %v703_v37 }
  0xa1   : > { %v714_v22 = vor.u32 %v713_v12, %v712_v11  ;;  %v717_v31 = vor.u32 %v716_v19, %v715_v29  ;;  %v3588_v62 = vshll.u32 %v694_v21, 8  ;;  %v485_v33 = vshll.u32 %v3510_v44, %v3546_v55 }
  0xa2   : > { %v631_v32 = vshll.u32 %v3557_v30, 30  ;;  %v486_v47 = vshrl.u32 %v468_v18, %v484_v56  ;;  %vm720_vm5 = vcmp.lt.s32.totalorder %v3554_v6, 3  ;;  %vm721_vm6 = vcmp.lt.s32.totalorder %v3554_v6, 4 }
  0xa3   : > { %v490_v48 = vshll.u32 %v489_v34, 23  ;;  %vm719_vm7 = vcmp.lt.s32.totalorder %v3554_v6, 2  ;;  %v730_v24 = vsel %vm718_vm3, %v3579_v39, %v3581_v61  ;;  %v726_v44 = vsel %vm718_vm3, %v3583_v46, %v3579_v39 }
  0xa4   : > { %v3577_v23 = vsub.s32 %v628_v15, %v631_v32  ;;  %v727_v38 = vsel %vm721_vm6, %v714_v22, 920167782  ;;  %v731_v36 = vsel %vm721_vm6, %v717_v31, 1326507024  ;;  %v735_v50 = vand.u32 65535, %v3588_v62 }
  0xa5   : > { %v728_v54 = vsel %vm720_vm5, %v3581_v61, %v727_v38  ;;  %v732_v52 = vsel %vm720_vm5, %v714_v22, %v731_v36  ;;  %v736_v3 = vshrl.u32 %v3588_v62, 16  ;;  %v338_v55 = vcvt.s32.f32 %v331_v26 }
  0xa6   : > { %vm633_vm4 = vcmp.lt.s32.totalorder %v3577_v23, 0  ;;  %v634_v25 = vsub.s32 0, %v3577_v23  ;;  %v733_v57 = vsel %vm719_vm7, %v730_v24, %v732_v52  ;;  %v336_v58 = vand.u32 2147483647, %v335_v28 }
  0xa7   : > { %v729_v16 = vsel %vm719_vm7, %v726_v44, %v728_v54  ;;  %v737_v63 = vand.u32 65535, %v733_v57  ;;  %v738_v5 = vshrl.u32 %v733_v57, 16  ;;  %v487_v49 = vor.u32 %v486_v47, %v485_v33 }
  0xa8   : > { %v635_v51 = vsel %vm633_vm4, %v634_v25, %v3577_v23  ;;  %v491_v45 = vor.u32 4788187, %v490_v48  ;;  %v759_v11 = vand.u32 65535, %v729_v16  ;;  %v760_v12 = vshrl.u32 %v729_v16, 16 }
  0xa9   : > { %v636_v35 = vclz %v635_v51  ;;  %v739_v9 = vmul.u32 %v737_v63, %v735_v50  ;;  %v740_v10 = vmul.u32 %v738_v5, %v735_v50  ;;  %v741_v37 = vmul.u32 %v737_v63, %v736_v3 }
  0xaa   : > { %v339_v13 = vmul.f32 %v338_v55, %v336_v58  ;;  %v742_v18 = vmul.u32 %v738_v5, %v736_v3  ;;  %v492_v21 = vand.u32 2147483647, %v491_v45  ;;  %v494_v26 = vcvt.s32.f32 %v487_v49 }
  0xab   : > { %v2779_v15 = vadd.s32 4294967294, %v636_v35  ;;  %v743_v32 = vshll.u32 %v740_v10, 16  ;;  %v624_v56 = vadd.s32 %v3536_v40, %v3534_v41  ;;  %v745_v29 = vshll.u32 %v741_v37, 16 }
  0xac   : > { %v702_v31 = vshrl.u32 %v3103_v17, %v3548_v60  ;;  %v761_v25 = vmul.u32 %v759_v11, %v735_v50  ;;  %v762_v33 = vmul.u32 %v760_v12, %v735_v50  ;;  %v744_v47 = vshrl.u32 %v740_v10, 16 }
  0xad   : > { %vm2780_vm8 = vcmp.lt.s32.totalorder %v2779_v15, 0  ;;  %vm747_vm10 = vc.u32 %v739_v9, %v743_v32  ;;  %v749_v22 = vadd.s32 %v743_v32, %v739_v9  ;;  %v763_v51 = vmul.u32 %v759_v11, %v736_v3 }
  0xae   : > { %v639_v7 = vsel %vm2780_vm8, 0, %v2779_v15  ;;  %v748_v28 = vsel %vm747_vm10, 1, %v3109_v20  ;;  %v764_v24 = vmul.u32 %v760_v12, %v736_v3  ;;  %v765_v35 = vshll.u32 %v762_v33, 16 }
  0xaf   : > { %v644_v1 = vsub.s32 4294967266, %v639_v7  ;;  %v640_v19 = vsub.s32 32, %v639_v7  ;;  %v750_v48 = vadd.s32 %v748_v28, %v742_v18  ;;  %vm751_vm11 = vc.u32 %v749_v22, %v745_v29 }
  0xb0   : > { %v641_v41 = vshll.u32 %v3577_v23, %v639_v7  ;;  %v752_v40 = vsel %vm751_vm11, 1, %v3109_v20  ;;  %v767_v54 = vshll.u32 %v763_v51, 16  ;;  %v495_v52 = vmul.f32 %v494_v26, %v492_v21 }
  0xb1   : > { %v645_v34 = vadd.s32 127, %v644_v1  ;;  %v642_v44 = vshrl.u32 %v624_v56, %v640_v19  ;;  %v754_v36 = vadd.s32 %v752_v40, %v750_v48  ;;  %v723_v17 = vsel %vm721_vm6, %v3581_v61, 2102212464 }
  0xb2   : > { %vm769_vm12 = vc.u32 %v761_v25, %v765_v35  ;;  %v771_v60 = vadd.s32 %v765_v35, %v761_v25  ;;  %v340_v50 = vxor.u32 2147483648, %v339_v13  ;;  %v746_v55 = vshrl.u32 %v741_v37, 16 }
  0xb3   : > { %v646_v38 = vshll.u32 %v645_v34, 23  ;;  %v755_v15 = vadd.s32 %v754_v36, %v744_v47  ;;  %v770_v23 = vsel %vm769_vm12, 1, %v3109_v20  ;;  %v722_v3 = vsel %vm718_vm3, %v702_v31, %v3583_v46 }
  0xb4   : > { %v766_v57 = vshrl.u32 %v762_v33, 16  ;;  %v772_v58 = vadd.s32 %v770_v23, %v764_v24  ;;  %vm773_vm13 = vc.u32 %v771_v60, %v767_v54  ;;  %v643_v16 = vor.u32 %v642_v44, %v641_v41 }
  0xb5   : > { %v647_v63 = vor.u32 4788187, %v646_v38  ;;  %v724_v61 = vsel %vm720_vm5, %v3579_v39, %v723_v17  ;;  %v774_v5 = vsel %vm773_vm13, 1, %v3109_v20  ;;  %v496_v49 = vxor.u32 2147483648, %v495_v52 }
  0xb6   : > { %v768_v45 = vshrl.u32 %v763_v51, 16  ;;  %v776_v7 = vadd.s32 %v774_v5, %v772_v58  ;;  %vm376_vm14 = vcmp.lt.s32.totalorder %v3259_v4, 0  ;;  %v756_v9 = vadd.s32 %v755_v15, %v746_v55 }
  0xb7   : > { %v775_v10 = vadd.s32 %v771_v60, %v767_v54  ;;  %vm3641_vm15 = vcmp.le.f32.partialorder %v218_v2, 0.7853982  ;;  %v341_v37 = vsel %vm220_vm9, %v340_v50, %v339_v13  ;;  %v725_v39 = vsel %vm719_vm7, %v722_v3, %v724_v61 }
  0xb8   : > { %v777_v20 = vadd.s32 %v776_v7, %v766_v57  ;;  %v648_v1 = vand.u32 2147483647, %v647_v63  ;;  %v650_v11 = vcvt.s32.f32 %v643_v16  ;;  %vm3651_vm0 = vcmp.le.f32.partialorder %v374_v27, 0.7853982 }
  0xb9   : > { %v497_v2 = vsel %vm376_vm14, %v496_v49, %v495_v52  ;;  %v3660_v13 = vsel %vm3641_vm15, %v3254_v0, %v341_v37  ;;  %v779_v6 = vmul.u32 %v3588_v62, %v725_v39  ;;  %vm781_vm1 = vc.u32 %v756_v9, %v775_v10 }
  0xba   : > { %v778_v18 = vadd.s32 %v777_v20, %v768_v45  ;;  %v3666_v27 = vsel %vm3651_vm0, %v3259_v4, %v497_v2  ;;  %v651_v21 = vmul.f32 %v650_v11, %v648_v1  ;;  %v346_v26 = vmul.f32 %v3660_v13, %v3660_v13 }
  0xbb   : > { %v502_v19 = vmul.f32 %v3666_v27, %v3666_v27  ;;  %vm532_vm2 = vcmp.lt.s32.totalorder %v3305_v43, 0  ;;  %vm3677_vm3 = vcmp.le.f32.partialorder %v530_v42, 0.7853982  ;;  %v780_v58 = vadd.s32 %v775_v10, %v756_v9 }
  0xbc   : > { %v782_v32 = vadd.s32 1, %v778_v18  ;;  %v652_v34 = vxor.u32 2147483648, %v651_v21  ;;  %v354_v31 = vmul.f32 -0.00019511016, %v346_v26  ;;  %v347_v25 = vmul.f32 -0.001358992, %v346_v26 }
  0xbd   : > { %v510_v28 = vmul.f32 -0.00019511016, %v502_v19  ;;  %v503_v41 = vmul.f32 -0.001358992, %v502_v19  ;;  %v342_v16 = vsub.s32 4, %v3471_v14  ;;  %v498_v61 = vsub.s32 4, %v3497_v8 }
  0xbe   : > { %v783_v56 = vsel %vm781_vm1, %v782_v32, %v778_v18  ;;  %v653_v47 = vsel %vm532_vm2, %v652_v34, %v651_v21  ;;  %v355_v51 = vadd.f32 0.008332121, %v354_v31  ;;  %v348_v44 = vadd.f32 0.041655596, %v347_v25 }
  0xbf   : > { %v784_v29 = vadd.s32 %v783_v56, %v779_v6  ;;  %v511_v24 = vadd.f32 0.008332121, %v510_v28  ;;  %v3687_v35 = vsel %vm3677_vm3, %v3305_v43, %v653_v47  ;;  %v504_v36 = vadd.f32 0.041655596, %v503_v41 }
  0xc0   : > { %v356_v38 = vmul.f32 %v355_v51, %v346_v26  ;;  %v3691_v54 = vmul.f32 %v3687_v35, %v3687_v35  ;;  %v349_v50 = vmul.f32 %v348_v44, %v346_v26  ;;  %v343_v9 = vsel %vm220_vm9, %v342_v16, %v3471_v14 }
  0xc1   : > { %v785_v22 = vadd.s32 536870912, %v784_v29  ;;  %v512_v17 = vmul.f32 %v511_v24, %v502_v19  ;;  %v505_v23 = vmul.f32 %v504_v36, %v502_v19  ;;  %v499_v56 = vsel %vm376_vm14, %v498_v61, %v3497_v8 }
  0xc2   : > { %v357_v55 = vadd.f32 -0.16666654, %v356_v38  ;;  %v666_v3 = vmul.f32 -0.00019511016, %v3691_v54  ;;  %v350_v63 = vadd.f32 -0.4999988, %v349_v50 }
  0xc3   : > { %v3673_v62 = vshrl.u32 %v785_v22, 30  ;;  %v513_v57 = vadd.f32 -0.16666654, %v512_v17  ;;  %v506_v39 = vadd.f32 -0.4999988, %v505_v23  ;;  %v345_v0 = vsel %vm3641_vm15, 0, %v343_v9 }
  0xc4   : > { %v358_v49 = vmul.f32 %v357_v55, %v346_v26  ;;  %v659_v20 = vmul.f32 -0.001358992, %v3691_v54  ;;  %v667_v1 = vadd.f32 0.008332121, %v666_v3  ;;  %v351_v10 = vmul.f32 %v350_v63, %v346_v26 }
  0xc5   : > { %v787_v48 = vshll.u32 %v3673_v62, 30  ;;  %v514_v11 = vmul.f32 %v513_v57, %v502_v19  ;;  %v3714_v28 = vand.u32 3, %v345_v0  ;;  %v654_v47 = vsub.s32 4, %v3557_v30 }
  0xc6   : > { %v359_v6 = vadd.f32 1.0, %v358_v49  ;;  %v660_v34 = vadd.f32 0.041655596, %v659_v20  ;;  %v668_v22 = vmul.f32 %v667_v1, %v3691_v54  ;;  %v3718_v4 = vadd.f32 1.0, %v351_v10 }
  0xc7   : > { %v788_v40 = vsub.s32 %v784_v29, %v787_v48  ;;  %v507_v29 = vmul.f32 %v506_v39, %v502_v19  ;;  %v515_v14 = vadd.f32 1.0, %v514_v11  ;;  %v501_v19 = vsel %vm3651_vm0, 0, %v499_v56 }
  0xc8   : > { %v3721_v8 = vmul.f32 %v359_v6, %v3660_v13  ;;  %v661_v48 = vmul.f32 %v660_v34, %v3691_v54  ;;  %v669_v51 = vadd.f32 -0.16666654, %v668_v22  ;;  %v518_v13 = vand.u32 3, %v501_v19  ;;  %v2960_v6 = vld [vmem:[%s3247_s19 + $0x8] sm:$0xff] }
  0xc9   : > { %vm789_vm4 = vcmp.lt.s32.totalorder %v788_v40, 0  ;;  %v790_v42 = vsub.s32 0, %v788_v40  ;;  %v3727_v46 = vadd.f32 1.0, %v507_v29  ;;  %v3734_v41 = vmul.f32 %v515_v14, %v3666_v27 }
  0xca   : > { %vm363_vm6 = vcmp.lt.s32.totalorder %v3714_v28, 2  ;;  %vm364_vm7 = vcmp.eq.s32.totalorder %v3714_v28, 0  ;;  %vm367_vm8 = vcmp.eq.s32.totalorder %v3714_v28, 2  ;;  %vm688_vm9 = vcmp.lt.s32.totalorder %v3518_v59, 0 }
  0xcb   : > { %v791_v52 = vsel %vm789_vm4, %v790_v42, %v788_v40  ;;  %v365_v12 = vxor.u32 2147483648, %v3721_v8  ;;  %v368_v24 = vxor.u32 2147483648, %v3718_v4  ;;  %vm3748_vm10 = vcmp.le.f32.partialorder %v686_v53, 0.7853982 }
  0xcc   : > { %v792_v60 = vclz %v791_v52  ;;  %v524_v42 = vxor.u32 2147483648, %v3727_v46  ;;  %v655_v38 = vsel %vm532_vm2, %v654_v47, %v3557_v30  ;;  %v662_v36 = vadd.f32 -0.4999988, %v661_v48 }
  0xcd   : > { %v670_v52 = vmul.f32 %v669_v51, %v3691_v54  ;;  %vm519_vm11 = vcmp.lt.s32.totalorder %v518_v13, 2  ;;  %v521_v17 = vxor.u32 2147483648, %v3734_v41  ;;  %vm523_vm12 = vcmp.eq.s32.totalorder %v518_v13, 2 }
  0xce   : > { %v2783_v15 = vadd.s32 4294967294, %v792_v60  ;;  %vm520_vm13 = vcmp.eq.s32.totalorder %v518_v13, 0  ;;  %v810_v60 = vsub.s32 4, %v3673_v62  ;;  %v984_v30 = vadd.s32 3, %v345_v0 }
  0xcf   : > { %v369_v50 = vsel %vm367_vm8, %v368_v24, %v3721_v8  ;;  %v657_v55 = vsel %vm3677_vm3, 0, %v655_v38  ;;  %v1139_v23 = vadd.s32 3, %v501_v19  ;;  %v366_v3 = vsel %vm364_vm7, %v3718_v4, %v365_v12 }
  0xd0   : > { %vm2784_vm5 = vcmp.lt.s32.totalorder %v2783_v15, 0  ;;  %v525_v57 = vsel %vm523_vm12, %v524_v42, %v3734_v41  ;;  %v671_v33 = vadd.f32 1.0, %v670_v52  ;;  %v522_v16 = vsel %vm520_vm13, %v3727_v46, %v521_v17 }
  0xd1   : > { %v795_v5 = vsel %vm2784_vm5, 0, %v2783_v15  ;;  %v3797_v63 = vand.u32 3, %v657_v55  ;;  %v811_v49 = vsel %vm688_vm9, %v810_v60, %v3673_v62  ;;  %v1140_v39 = vand.u32 3, %v1139_v23  ;;  %v3815_v62 = vld [vmem:[%s3247_s19] sm:$0xff] }
  0xd2   : > { %v796_v45 = vsub.s32 32, %v795_v5  ;;  %v797_v7 = vshll.u32 %v788_v40, %v795_v5  ;;  %v800_v37 = vsub.s32 4294967266, %v795_v5  ;;  %v3806_v20 = vsel %vm363_vm6, %v366_v3, %v369_v50 }
  0xd3   : > { %v3809_v1 = vsel %vm519_vm11, %v522_v16, %v525_v57  ;;  %vm361_vm14 = vweird.f32 %v3815_v62  ;;  %vm676_vm15 = vcmp.eq.s32.totalorder %v3797_v63, 0  ;;  %vm517_vm0 = vweird.f32 %v2960_v6 }
  0xd4   : > { %v798_v2 = vshrl.u32 %v780_v58, %v796_v45  ;;  %v801_v18 = vadd.s32 127, %v800_v37  ;;  %v663_v58 = vmul.f32 %v662_v36, %v3691_v54  ;;  %v985_v45 = vand.u32 3, %v984_v30 }
  0xd5   : > { %vm679_vm1 = vcmp.eq.s32.totalorder %v3797_v63, 2  ;;  %vm1142_vm4 = vcmp.eq.s32.totalorder %v1140_v39, 0  ;;  %vm1145_vm5 = vcmp.eq.s32.totalorder %v1140_v39, 2  ;;  %vm1141_vm7 = vcmp.lt.s32.totalorder %v1140_v39, 2 }
  0xd6   : > { %v799_v32 = vor.u32 %v798_v2, %v797_v7  ;;  %v802_v21 = vshll.u32 %v801_v18, 23  ;;  %v1294_v7 = vadd.s32 3, %v657_v55  ;;  %v664_v11 = vadd.f32 1.0, %v663_v58 }
  0xd7   : > { %v672_v2 = vmul.f32 %v671_v33, %v3687_v35  ;;  %v813_v18 = vsel %vm3748_vm10, 0, %v811_v49  ;;  %vm987_vm2 = vcmp.eq.s32.totalorder %v985_v45, 0  ;;  %vm990_vm3 = vcmp.eq.s32.totalorder %v985_v45, 2 }
  0xd8   : > { %v803_v26 = vor.u32 4788187, %v802_v21  ;;  %v806_v31 = vcvt.s32.f32 %v799_v32  ;;  %v1295_v35 = vand.u32 3, %v1294_v7  ;;  %v680_v29 = vxor.u32 2147483648, %v664_v11 }
  0xd9   : > { %v677_v56 = vxor.u32 2147483648, %v672_v2  ;;  %v3827_v34 = vand.u32 3, %v813_v18  ;;  %v1449_v22 = vadd.s32 3, %v813_v18  ;;  %vm986_vm6 = vcmp.lt.s32.totalorder %v985_v45, 2 }
  0xda   : > { %v804_v25 = vand.u32 2147483647, %v803_v26  ;;  %v989_v26 = vsel %vm987_vm2, %v3718_v4, %v365_v12  ;;  %v1144_v28 = vsel %vm1142_vm4, %v3727_v46, %v521_v17  ;;  %v1147_v19 = vsel %vm1145_vm5, %v524_v42, %v3734_v41  ;;  %v2961_v46 = vld [vmem:[%s3247_s19 + $0x10] sm:$0xff]  ;;  %s3872_s19 = sld [smem:[#allocation2 + $0x8c]] }
  0xdb   : > { %vm1297_vm8 = vcmp.eq.s32.totalorder %v1295_v35, 0  ;;  %v678_v4 = vsel %vm676_vm15, %v664_v11, %v677_v56  ;;  %v1450_v48 = vand.u32 3, %v1449_v22  ;;  %vm673_vm11 = vweird.f32 %v2961_v46 }
  0xdc   : > { %v807_v40 = vmul.f32 %v806_v31, %v804_v25  ;;  %v992_v31 = vsel %vm990_vm3, %v368_v24, %v3721_v8  ;;  %v681_v8 = vsel %vm679_vm1, %v680_v29, %v672_v2  ;;  %vm1296_vm12 = vcmp.lt.s32.totalorder %v1295_v35, 2 }
  0xdd   : > { %v993_v41 = vsel %vm986_vm6, %v989_v26, %v992_v31  ;;  %v1299_v12 = vsel %vm1297_vm8, %v664_v11, %v677_v56  ;;  %vm832_vm13 = vcmp.eq.s32.totalorder %v3827_v34, 0  ;;  %vm835_vm15 = vcmp.eq.s32.totalorder %v3827_v34, 2 }
  0xde   : > { %v808_v44 = vxor.u32 2147483648, %v807_v40  ;;  %v371_v42 = vsel %vm361_vm14, nan, %v3806_v20  ;;  %vm1452_vm1 = vcmp.eq.s32.totalorder %v1450_v48, 0  ;;  %vm1455_vm2 = vcmp.eq.s32.totalorder %v1450_v48, 2 }
  0xdf   : > { %v527_v38 = vsel %vm517_vm0, nan, %v3809_v1  ;;  %v994_v36 = vsel %vm361_vm14, nan, %v993_v41  ;;  %vm831_vm3 = vcmp.lt.s32.totalorder %v3827_v34, 2  ;;  %vm829_vm4 = vweird.f32 %v3518_v59 }
  0xe0   : > { %v809_v53 = vsel %vm688_vm9, %v808_v44, %v807_v40  ;;  %vm1300_vm9 = vcmp.eq.s32.totalorder %v1295_v35, 2  ;;  %v1148_v40 = vsel %vm1141_vm7, %v1144_v28, %v1147_v19  ;;  %vm1451_vm14 = vcmp.lt.s32.totalorder %v1450_v48, 2 }
  0xe1   : > { %v3768_v43 = vsel %vm3748_vm10, %v3518_v59, %v809_v53  ;;  %vm675_vm10 = vcmp.lt.s32.totalorder %v3797_v63, 2  ;;  %v1302_v24 = vsel %vm1300_vm9, %v680_v29, %v672_v2  ;;  %v1149_v52 = vsel %vm517_vm0, nan, %v1148_v40 }
  0xe2   : > { %v814_v15 = vmul.f32 %v3768_v43, %v3768_v43  ;;  %v682_v27 = vsel %vm675_vm10, %v678_v4, %v681_v8  ;;  %v1303_v17 = vsel %vm1296_vm12, %v1299_v12, %v1302_v24  ;;  %v1461_v23 = vmul.f32 %v1149_v52, %v371_v42 }
  0xe3   : > { %v683_v53 = vsel %vm673_vm11, nan, %v682_v27  ;;  %v1304_v55 = vsel %vm673_vm11, nan, %v1303_v17  ;;  %v1462_v3 = vmul.f32 %v994_v36, %v527_v38  ;;  %v1463_v58 = vmul.f32 %v1149_v52, %v994_v36 }
  0xe4   : > { %v815_v61 = vmul.f32 -0.001358992, %v814_v15  ;;  %v822_v5 = vmul.f32 -0.00019511016, %v814_v15  ;;  %v1485_v33 = vstv %s3700_s23  ;;  %v1488_v16 = vstv %s3702_s20  ;;  %s3910_s23 = sld [smem:[#allocation6 + $0x1]] }
  0xe5   : > { %v1497_v49 = vstv %s3716_s22  ;;  %v1500_v45 = vstv %s3725_s30  ;;  %v1503_v7 = vstv %s3731_s4  ;;  %v1512_v20 = vstv %s3757_s7  ;;  %s5695_s20 = sld [smem:[#allocation24_spill]] }
  0xe6   : > { %v816_v54 = vadd.f32 0.041655596, %v815_v61  ;;  %v823_v37 = vadd.f32 0.008332121, %v822_v5  ;;  %v1491_v61 = vstv %s3708_s27  ;;  %v1494_v5 = vstv %s3712_s28  ;;  %s5696_s27 = sld [smem:[#allocation25_spill]] }
  0xe7   : > { %v1515_v1 = vstv %s3762_s9  ;;  %v1518_v11 = vstv %s3770_s11  ;;  %v1521_v62 = vstv %s3781_s8  ;;  %v1524_v18 = vstv %s3792_s10  ;;  %s4659_s28 = sld [smem:[#allocation2 + $0x104]] }
  0xe8   : > { %v817_v9 = vmul.f32 %v816_v54, %v814_v15  ;;  %v824_v10 = vmul.f32 %v823_v37, %v814_v15  ;;  %v1506_v54 = vstv %s3736_s29  ;;  %v1509_v37 = vstv %s3742_s5  ;;  %s4669_s22 = sld [smem:[#allocation2 + $0x184]] }
  0xe9   : > { %v1533_v6 = vstv %s3821_s26  ;;  %v1536_v35 = vstv %s3825_s1  ;;  %v1542_v56 = vstv %s3835_s21  ;;  %v1545_v59 = vstv %s3847_s14  ;;  %s4047_s1 = sld [smem:[#allocation6 + $0x80]] }
  0xea   : > { %v818_v32 = vadd.f32 -0.4999988, %v817_v9  ;;  %v825_v21 = vadd.f32 -0.16666654, %v824_v10  ;;  %v1527_v9 = vstv %s3802_s17  ;;  %v1530_v10 = vstv %s3812_s6  ;;  %s4388_s14 = sld [smem:[#allocation6 + $0x181]] }
  0xeb   : > { %v1548_v29 = vstv %s3849_s13  ;;  %v1554_v26 = vstv %s3861_s15  ;;  %v1557_v31 = vstv %s3866_s25  ;;  %v1560_v28 = vstv %s3872_s19  ;;  %s4379_s13 = sld [smem:[#allocation6 + $0x180]] }
  0xec   : > { %v819_v0 = vmul.f32 %v818_v32, %v814_v15  ;;  %v826_v14 = vmul.f32 %v825_v21, %v814_v15  ;;  %v1460_v15 = vmul.f32 %v527_v38, %v371_v42  ;;  %v1539_v32 = vstv %s3829_s2  ;;  %s4055_s2 = sld [smem:[#allocation6 + $0x81]] }
  0xed   : > { %v1563_v19 = vstv %s3877_s12  ;;  %v1572_v4 = vstv %s5696_s27  ;;  %v1575_v8 = vstv %s3895_s16  ;;  %v3943_v41 = vstv %s3910_s23  ;;  %s4213_s12 = sld [smem:[#allocation6 + $0x101]] }
  0xee   : > { %v820_v25 = vadd.f32 1.0, %v819_v0  ;;  %v827_v47 = vadd.f32 1.0, %v826_v14  ;;  %v1551_v14 = vstv %s3856_s18  ;;  %5698 = vst [vmem:[#allocation27_spill] sm:$0xff] %v3943_v41  ;;  %s4579_s15 = sld [smem:[#allocation2 + $0x100]] }
  0xef   : > { %s4589_s16 = sld [smem:[#allocation2 + $0x180]] }
  0xf0   : > { %v828_v51 = vmul.f32 %v827_v47, %v3768_v43  ;;  %v836_v13 = vxor.u32 2147483648, %v820_v25  ;;  %v1569_v47 = vstv %s5695_s20  ;;  %s4599_s18 = sld [smem:[#allocation2 + $0x101]] }
  0xf1   : > { %s4609_s21 = sld [smem:[#allocation2 + $0x181]] }
  0xf2   : > { %v833_v44 = vxor.u32 2147483648, %v828_v51  ;;  %v837_v43 = vsel %vm835_vm15, %v836_v13, %v828_v51  ;;  %v1457_v50 = vsel %vm1455_vm2, %v836_v13, %v828_v51  ;;  %v3940_v51 = vstv %s3904_s0  ;;  %s4629_s25 = sld [smem:[#allocation2 + $0x182]] }
  0xf3   : > { %5697 = vst [vmem:[#allocation26_spill] sm:$0xff] %v3940_v51  ;;  %s4639_s0 = sld [smem:[#allocation2 + $0x103]] }
  0xf4   : > { %v834_v60 = vsel %vm832_vm13, %v820_v25, %v833_v44  ;;  %v1454_v30 = vsel %vm1452_vm1, %v820_v25, %v833_v44  ;;  %v1566_v25 = vstv %s3885_s24  ;;  %s4619_s24 = sld [smem:[#allocation2 + $0x102]] }
  0xf5   : > { %v838_v57 = vsel %vm831_vm3, %v834_v60, %v837_v43  ;;  %v1458_v63 = vsel %vm1451_vm14, %v1454_v30, %v1457_v50  ;;  %s4649_s26 = sld [smem:[#allocation2 + $0x183]] }
  0xf6   : > { %v839_v39 = vsel %vm829_vm4, nan, %v838_v57  ;;  %v1459_v2 = vsel %vm829_vm4, nan, %v1458_v63  ;;  %s4679_s30 = sld [smem:[#allocation2 + $0x105]] }
  0xf7   : > { %v1464_v21 = vmul.f32 %v839_v39, %v683_v53  ;;  %v1465_v34 = vmul.f32 %v1459_v2, %v683_v53  ;;  %v1466_v22 = vmul.f32 %v1304_v55, %v839_v39  ;;  %v1467_v0 = vmul.f32 %v1459_v2, %v1304_v55  ;;  %s4689_s4 = sld [smem:[#allocation2 + $0x185]] }
  0xf8   : > { %s4697_s29 = sld [smem:[#allocation2 + $0x106]] }
  0xf9   : > { %v1468_v48 = vmul.f32 %v1464_v21, %v1460_v15  ;;  %v1469_v13 = vmul.f32 %v1465_v34, %v1460_v15  ;;  %v1470_v40 = vmul.f32 %v1466_v22, %v1460_v15  ;;  %v1471_v12 = vmul.f32 %v1467_v0, %v1460_v15  ;;  %s4705_s5 = sld [smem:[#allocation2 + $0x186]] }
  0xfa   : > { %v1472_v24 = vmul.f32 %v1464_v21, %v1461_v23  ;;  %v1473_v27 = vmul.f32 %v1465_v34, %v1461_v23  ;;  %v1474_v44 = vmul.f32 %v1466_v22, %v1461_v23  ;;  %v1475_v42 = vmul.f32 %v1467_v0, %v1461_v23  ;;  %s4713_s7 = sld [smem:[#allocation2 + $0x107]] }
  0xfb   : > { %v1476_v38 = vmul.f32 %v1464_v21, %v1462_v3  ;;  %v1477_v36 = vmul.f32 %v1465_v34, %v1462_v3  ;;  %v1478_v52 = vmul.f32 %v1466_v22, %v1462_v3  ;;  %v1479_v17 = vmul.f32 %v1467_v0, %v1462_v3  ;;  %s4719_s9 = sld [smem:[#allocation2 + $0x187]] }
  0xfc   : > { %v1480_v53 = vmul.f32 %v1464_v21, %v1463_v58  ;;  %v1481_v60 = vmul.f32 %v1465_v34, %v1463_v58  ;;  %v1482_v43 = vmul.f32 %v1466_v22, %v1463_v58  ;;  %v1483_v30 = vmul.f32 %v1467_v0, %v1463_v58  ;;  %s4725_s11 = sld [smem:[#allocation2 + $0x108]] }
  0xfd   : > { %v1486_v50 = vmul.f32 %v1485_v33, %v1468_v48  ;;  %v1489_v55 = vmul.f32 %v1488_v16, %v1468_v48  ;;  %v1492_v57 = vmul.f32 %v1491_v61, %v1469_v13  ;;  %v1495_v63 = vmul.f32 %v1494_v5, %v1469_v13  ;;  %s4731_s8 = sld [smem:[#allocation2 + $0x188]] }
  0xfe   : > { %v1498_v39 = vmul.f32 %v1497_v49, %v1470_v40  ;;  %v1501_v2 = vmul.f32 %v1500_v45, %v1470_v40  ;;  %v3945_v46 = vmul.f32 %v1503_v7, %v1471_v12  ;;  %v3947_v15 = vmul.f32 %v1506_v54, %v1471_v12  ;;  %s4737_s10 = sld [smem:[#allocation2 + $0x109]] }
  0xff   : > { %v3949_v41 = vmul.f32 %v1509_v37, %v1472_v24  ;;  %v3951_v23 = vmul.f32 %v1512_v20, %v1472_v24  ;;  %v3953_v51 = vmul.f32 %v1515_v1, %v1473_v27  ;;  %v3955_v3 = vmul.f32 %v1518_v11, %v1473_v27  ;;  %s4747_s17 = sld [smem:[#allocation2 + $0x189]] }
 0x100   : > { %v3957_v21 = vmul.f32 %v1521_v62, %v1474_v44  ;;  %v3959_v58 = vmul.f32 %v1524_v18, %v1474_v44  ;;  %v3961_v33 = vmul.f32 %v1527_v9, %v1475_v42  ;;  %v3963_v16 = vmul.f32 %v1530_v10, %v1475_v42  ;;  %s4755_s6 = sld [smem:[#allocation2 + $0x10a]] }
 0x101   : > { %v1534_v61 = vmul.f32 %v1533_v6, %v1476_v38  ;;  %v1537_v5 = vmul.f32 %v1536_v35, %v1476_v38  ;;  %v1540_v49 = vmul.f32 %v1539_v32, %v1477_v36  ;;  %v1543_v45 = vmul.f32 %v1542_v56, %v1477_v36  ;;  %v5699_v6 = vld [vmem:[#allocation26_spill] sm:$0xff]  ;;  %v5700_v32 = vld [vmem:[#allocation27_spill] sm:$0xff]  ;;  %s4763_s19 = sld [smem:[#allocation2 + $0x18a]] }
 0x102   : > { %v1546_v7 = vmul.f32 %v1545_v59, %v1478_v52  ;;  %v1549_v54 = vmul.f32 %v1548_v29, %v1478_v52  ;;  %v1552_v37 = vmul.f32 %v1551_v14, %v1479_v17  ;;  %v1555_v20 = vmul.f32 %v1554_v26, %v1479_v17  ;;  %s4771_s23 = sld [smem:[#allocation2 + $0x10b]] }
 0x103   : > { %v1558_v1 = vmul.f32 %v1557_v31, %v1480_v53  ;;  %v1561_v34 = vmul.f32 %v1560_v28, %v1480_v53  ;;  %v3965_v11 = vmul.f32 %v1563_v19, %v1481_v60  ;;  %v3967_v62 = vmul.f32 %v1566_v25, %v1481_v60  ;;  %s4777_s20 = sld [smem:[#allocation2 + $0x18b]] }
 0x104   : > { %v3969_v18 = vmul.f32 %v1569_v47, %v1482_v43  ;;  %v3971_v9 = vmul.f32 %v1572_v4, %v1482_v43  ;;  %v3973_v10 = vmul.f32 %v1575_v8, %v1483_v30  ;;  %v1584_v35 = vmul.f32 %v5699_v6, %v1486_v50  ;;  %s4783_s27 = sld [smem:[#allocation2 + $0x10c]] }
 0x105   : > { %v1585_v56 = vmul.f32 %v5700_v32, %v1534_v61  ;;  %v1587_v59 = vmul.f32 %v5700_v32, %v1486_v50  ;;  %v1588_v29 = vmul.f32 %v5699_v6, %v1534_v61  ;;  %v1590_v22 = vmul.f32 %v5699_v6, %v1489_v55 }
 0x106   : > { %v1591_v0 = vmul.f32 %v5700_v32, %v1537_v5  ;;  %v1593_v14 = vmul.f32 %v5700_v32, %v1489_v55  ;;  %v1594_v26 = vmul.f32 %v5699_v6, %v1537_v5  ;;  %v1596_v31 = vmul.f32 %v5699_v6, %v1492_v57 }
 0x107   : > { %v1597_v28 = vmul.f32 %v5700_v32, %v1540_v49  ;;  %v1599_v19 = vmul.f32 %v5700_v32, %v1492_v57  ;;  %v1600_v25 = vmul.f32 %v5699_v6, %v1540_v49  ;;  %v1602_v47 = vmul.f32 %v5699_v6, %v1495_v63 }
 0x108   : > { %v1603_v4 = vmul.f32 %v5700_v32, %v1543_v45  ;;  %v1605_v8 = vmul.f32 %v5700_v32, %v1495_v63  ;;  %v1606_v48 = vmul.f32 %v5699_v6, %v1543_v45  ;;  %v1608_v13 = vmul.f32 %v5699_v6, %v1498_v39 }
 0x109   : > { %v1609_v40 = vmul.f32 %v5700_v32, %v1546_v7  ;;  %v1611_v12 = vmul.f32 %v5700_v32, %v1498_v39  ;;  %v1612_v24 = vmul.f32 %v5699_v6, %v1546_v7  ;;  %v1614_v27 = vmul.f32 %v5699_v6, %v1501_v2 }
 0x10a   : > { %v1615_v44 = vmul.f32 %v5700_v32, %v1549_v54  ;;  %v5701_v42 = vstv %s3899_s3  ;;  %v4001_v36 = vsub.f32 %v1584_v35, %v1585_v56  ;;  %v1617_v52 = vmul.f32 %v5700_v32, %v1501_v2  ;;  %s4203_s3 = sld [smem:[#allocation6 + $0x100]] }
 0x10b   : > { %v3999_v38 = vmul.f32 %v5701_v42, %v1483_v30  ;;  %v1618_v17 = vmul.f32 %v5699_v6, %v1549_v54  ;;  %v4005_v53 = vadd.f32 %v1588_v29, %v1587_v59  ;;  %v4007_v60 = vsub.f32 %v1590_v22, %v1591_v0 }
 0x10c   : > { %v1620_v43 = vmul.f32 %v5699_v6, %v3945_v46  ;;  %v1621_v50 = vmul.f32 %v5700_v32, %v1552_v37  ;;  %v4012_v55 = vadd.f32 %v1594_v26, %v1593_v14  ;;  %v4014_v57 = vsub.f32 %v1596_v31, %v1597_v28 }
 0x10d   : > { %v4016_v30 = vadd.f32 %v1600_v25, %v1599_v19  ;;  %v4018_v63 = vsub.f32 %v1602_v47, %v1603_v4  ;;  %v4020_v39 = vadd.f32 %v1606_v48, %v1605_v8  ;;  %v4022_v2 = vsub.f32 %v1608_v13, %v1609_v40 }
 0x10e   : > { %v4024_v61 = vadd.f32 %v1612_v24, %v1611_v12  ;;  %v4026_v5 = vsub.f32 %v1614_v27, %v1615_v44  ;;  %v4028_v49 = vadd.f32 %v1618_v17, %v1617_v52  ;;  %v1623_v45 = vmul.f32 %v5700_v32, %v3945_v46 }
 0x10f   : > { %v1624_v7 = vmul.f32 %v5699_v6, %v1552_v37  ;;  %v1626_v54 = vmul.f32 %v5699_v6, %v3947_v15  ;;  %v4035_v35 = vsub.f32 %v1620_v43, %v1621_v50  ;;  %v1627_v56 = vmul.f32 %v5700_v32, %v1555_v20 }
 0x110   : > { %v1629_v59 = vmul.f32 %v5700_v32, %v3947_v15  ;;  %v1630_v29 = vmul.f32 %v5699_v6, %v1555_v20  ;;  %v1632_v22 = vmul.f32 %v5699_v6, %v3949_v41  ;;  %v1633_v0 = vmul.f32 %v5700_v32, %v1558_v1 }
 0x111   : > { %v1635_v46 = vmul.f32 %v5700_v32, %v3949_v41  ;;  %v1636_v37 = vmul.f32 %v5699_v6, %v1558_v1  ;;  %v1638_v14 = vmul.f32 %v5699_v6, %v3951_v23  ;;  %v1639_v26 = vmul.f32 %v5700_v32, %v1561_v34 }
 0x112   : > { %v1641_v15 = vmul.f32 %v5700_v32, %v3951_v23  ;;  %v1642_v20 = vmul.f32 %v5699_v6, %v1561_v34  ;;  %v1644_v31 = vmul.f32 %v5699_v6, %v3953_v51  ;;  %v1645_v41 = vmul.f32 %v5700_v32, %v3965_v11 }
 0x113   : > { %v1647_v1 = vmul.f32 %v5700_v32, %v3953_v51  ;;  %v1648_v28 = vmul.f32 %v5699_v6, %v3965_v11  ;;  %v1650_v19 = vmul.f32 %v5699_v6, %v3955_v3  ;;  %v1651_v23 = vmul.f32 %v5700_v32, %v3967_v62 }
 0x114   : > { %v1653_v34 = vmul.f32 %v5700_v32, %v3955_v3  ;;  %v1654_v25 = vmul.f32 %v5699_v6, %v3967_v62  ;;  %v1656_v47 = vmul.f32 %v5699_v6, %v3957_v21  ;;  %v1657_v51 = vmul.f32 %v5700_v32, %v3969_v18 }
 0x115   : > { %v1659_v11 = vmul.f32 %v5700_v32, %v3957_v21  ;;  %v1660_v4 = vmul.f32 %v5699_v6, %v3969_v18  ;;  %v4081_v8 = vadd.f32 %v1624_v7, %v1623_v45  ;;  %v4083_v48 = vsub.f32 %v1626_v54, %v1627_v56 }
 0x116   : > { %v4085_v3 = vadd.f32 %v1630_v29, %v1629_v59  ;;  %v1634_v62 = vsub.f32 %v1632_v22, %v1633_v0  ;;  %v4087_v13 = vadd.f32 %v1636_v37, %v1635_v46  ;;  %v1640_v40 = vsub.f32 %v1638_v14, %v1639_v26 }
 0x117   : > { %v1662_v12 = vmul.f32 %v5699_v6, %v3959_v58  ;;  %v1663_v21 = vmul.f32 %v5700_v32, %v3971_v9  ;;  %v4093_v24 = vadd.f32 %v1642_v20, %v1641_v15  ;;  %v1646_v18 = vsub.f32 %v1644_v31, %v1645_v41 }
 0x118   : > { %v4095_v27 = vadd.f32 %v1648_v28, %v1647_v1  ;;  %v1652_v44 = vsub.f32 %v1650_v19, %v1651_v23  ;;  %v4097_v42 = vadd.f32 %v1654_v25, %v1653_v34  ;;  %v1658_v52 = vsub.f32 %v1656_v47, %v1657_v51 }
 0x119   : > { %v4099_v17 = vadd.f32 %v1660_v4, %v1659_v11  ;;  %v1665_v43 = vmul.f32 %v5700_v32, %v3959_v58  ;;  %v1666_v50 = vmul.f32 %v5699_v6, %v3971_v9  ;;  %v1668_v45 = vmul.f32 %v5699_v6, %v3961_v33 }
 0x11a   : > { %v4108_v7 = vstv %s4047_s1  ;;  %v4111_v54 = vstv %s4055_s2  ;;  %v1664_v56 = vsub.f32 %v1662_v12, %v1663_v21  ;;  %v1669_v59 = vmul.f32 %v5700_v32, %v3973_v10  ;;  %s4789_s1 = sld [smem:[#allocation2 + $0x18c]] }
 0x11b   : > { %v1671_v29 = vmul.f32 %v5700_v32, %v3961_v33  ;;  %v1672_v58 = vmul.f32 %v5699_v6, %v3973_v10  ;;  %v1674_v9 = vmul.f32 %v5699_v6, %v3963_v16  ;;  %v1675_v22 = vmul.f32 %v5700_v32, %v3999_v38  ;;  %s4795_s2 = sld [smem:[#allocation2 + $0x10d]] }
 0x11c   : > { %v1677_v0 = vmul.f32 %v5700_v32, %v3963_v16  ;;  %v1678_v46 = vmul.f32 %v5699_v6, %v3999_v38  ;;  %v1684_v37 = vmul.f32 %v4108_v7, %v4001_v36  ;;  %v1685_v33 = vmul.f32 %v4111_v54, %v1634_v62 }
 0x11d   : > { %v1687_v10 = vmul.f32 %v4111_v54, %v4001_v36  ;;  %v1688_v14 = vmul.f32 %v4108_v7, %v1634_v62  ;;  %v1690_v26 = vmul.f32 %v4108_v7, %v4007_v60  ;;  %v1691_v15 = vmul.f32 %v4111_v54, %v1640_v40 }
 0x11e   : > { %v1693_v16 = vmul.f32 %v4111_v54, %v4007_v60  ;;  %v1694_v6 = vmul.f32 %v4108_v7, %v1640_v40  ;;  %v1696_v32 = vmul.f32 %v4108_v7, %v4014_v57  ;;  %v1697_v38 = vmul.f32 %v4111_v54, %v1646_v18 }
 0x11f   : > { %v1699_v36 = vmul.f32 %v4111_v54, %v4014_v57  ;;  %v1700_v20 = vmul.f32 %v4108_v7, %v1646_v18  ;;  %v1702_v31 = vmul.f32 %v4108_v7, %v4018_v63  ;;  %v1703_v41 = vmul.f32 %v4111_v54, %v1652_v44 }
 0x120   : > { %v1705_v60 = vmul.f32 %v4111_v54, %v4018_v63  ;;  %v1706_v1 = vmul.f32 %v4108_v7, %v1652_v44  ;;  %v4151_v28 = vadd.f32 %v1666_v50, %v1665_v43  ;;  %v1670_v19 = vsub.f32 %v1668_v45, %v1669_v59 }
 0x121   : > { %v1708_v23 = vmul.f32 %v4108_v7, %v4022_v2  ;;  %v1709_v57 = vmul.f32 %v4111_v54, %v1658_v52  ;;  %v4156_v34 = vadd.f32 %v1672_v58, %v1671_v29  ;;  %v1676_v25 = vsub.f32 %v1674_v9, %v1675_v22 }
 0x122   : > { %v4158_v47 = vadd.f32 %v1678_v46, %v1677_v0  ;;  %v4160_v51 = vsub.f32 %v1684_v37, %v1685_v33  ;;  %v4162_v11 = vadd.f32 %v1688_v14, %v1687_v10  ;;  %v4164_v63 = vsub.f32 %v1690_v26, %v1691_v15 }
 0x123   : > { %v4166_v4 = vadd.f32 %v1694_v6, %v1693_v16  ;;  %v4168_v62 = vsub.f32 %v1696_v32, %v1697_v38  ;;  %v4170_v40 = vadd.f32 %v1700_v20, %v1699_v36  ;;  %v4172_v12 = vsub.f32 %v1702_v31, %v1703_v41 }
 0x124   : > { %v4174_v21 = vadd.f32 %v1706_v1, %v1705_v60  ;;  %v1711_v18 = vmul.f32 %v4111_v54, %v4022_v2  ;;  %v4178_v44 = vsub.f32 %v1708_v23, %v1709_v57  ;;  %v1712_v43 = vmul.f32 %v4108_v7, %v1658_v52 }
 0x125   : > { %v1714_v50 = vmul.f32 %v4108_v7, %v4026_v5  ;;  %v1715_v45 = vmul.f32 %v4111_v54, %v1664_v56  ;;  %v1717_v59 = vmul.f32 %v4111_v54, %v4026_v5  ;;  %v1718_v29 = vmul.f32 %v4108_v7, %v1664_v56 }
 0x126   : > { %v1720_v58 = vmul.f32 %v4108_v7, %v4035_v35  ;;  %v1721_v9 = vmul.f32 %v4111_v54, %v1670_v19  ;;  %v1723_v2 = vmul.f32 %v4111_v54, %v4035_v35  ;;  %v1724_v52 = vmul.f32 %v4108_v7, %v1670_v19 }
 0x127   : > { %v1726_v22 = vmul.f32 %v4108_v7, %v4083_v48  ;;  %v1727_v0 = vmul.f32 %v4111_v54, %v1676_v25  ;;  %v1729_v5 = vmul.f32 %v4111_v54, %v4083_v48  ;;  %v1730_v56 = vmul.f32 %v4108_v7, %v1676_v25 }
 0x128   : > { %v1732_v46 = vmul.f32 %v4108_v7, %v4005_v53  ;;  %v1733_v37 = vmul.f32 %v4111_v54, %v4087_v13  ;;  %v1735_v35 = vmul.f32 %v4111_v54, %v4005_v53  ;;  %v1736_v33 = vmul.f32 %v4108_v7, %v4087_v13 }
 0x129   : > { %v1738_v10 = vmul.f32 %v4108_v7, %v4012_v55  ;;  %v1739_v48 = vmul.f32 %v4111_v54, %v4093_v24  ;;  %v1741_v14 = vmul.f32 %v4111_v54, %v4012_v55  ;;  %v1742_v26 = vmul.f32 %v4108_v7, %v4093_v24 }
 0x12a   : > { %v1744_v53 = vmul.f32 %v4108_v7, %v4016_v30  ;;  %v1745_v13 = vmul.f32 %v4111_v54, %v4095_v27  ;;  %v4223_v15 = vadd.f32 %v1712_v43, %v1711_v18  ;;  %v1716_v16 = vsub.f32 %v1714_v50, %v1715_v45 }
 0x12b   : > { %v1747_v6 = vmul.f32 %v4111_v54, %v4016_v30  ;;  %v1748_v32 = vmul.f32 %v4108_v7, %v4095_v27  ;;  %v4229_v38 = vadd.f32 %v1718_v29, %v1717_v59  ;;  %v1722_v55 = vsub.f32 %v1720_v58, %v1721_v9 }
 0x12c   : > { %v1750_v24 = vmul.f32 %v4108_v7, %v4020_v39  ;;  %v1751_v36 = vmul.f32 %v4111_v54, %v4097_v42  ;;  %v4235_v20 = vadd.f32 %v1724_v52, %v1723_v2  ;;  %v1728_v31 = vsub.f32 %v1726_v22, %v1727_v0 }
 0x12d   : > { %v4237_v41 = vadd.f32 %v1730_v56, %v1729_v5  ;;  %v4239_v60 = vsub.f32 %v1732_v46, %v1733_v37  ;;  %v4241_v30 = vadd.f32 %v1736_v33, %v1735_v35  ;;  %v4243_v27 = vsub.f32 %v1738_v10, %v1739_v48 }
 0x12e   : > { %v4245_v1 = vadd.f32 %v1742_v26, %v1741_v14  ;;  %v4247_v19 = vsub.f32 %v1744_v53, %v1745_v13  ;;  %v4249_v23 = vadd.f32 %v1748_v32, %v1747_v6  ;;  %v1753_v57 = vmul.f32 %v4111_v54, %v4020_v39 }
 0x12f   : > { %v1754_v25 = vmul.f32 %v4108_v7, %v4097_v42  ;;  %v1756_v18 = vmul.f32 %v4108_v7, %v4024_v61  ;;  %v4257_v43 = vsub.f32 %v1750_v24, %v1751_v36  ;;  %v1757_v50 = vmul.f32 %v4111_v54, %v4099_v17 }
 0x130   : > { %v1759_v45 = vmul.f32 %v4111_v54, %v4024_v61  ;;  %v1760_v59 = vmul.f32 %v4108_v7, %v4099_v17  ;;  %v1762_v39 = vmul.f32 %v4108_v7, %v4028_v49  ;;  %v1763_v42 = vmul.f32 %v4111_v54, %v4151_v28 }
 0x131   : > { %v4270_v29 = vstv %s4203_s3  ;;  %v4273_v58 = vstv %s4213_s12  ;;  %v1765_v9 = vmul.f32 %v4111_v54, %v4028_v49  ;;  %v1766_v2 = vmul.f32 %v4108_v7, %v4151_v28  ;;  %s4801_s3 = sld [smem:[#allocation2 + $0x18d]] }
 0x132   : > { %v1768_v61 = vmul.f32 %v4108_v7, %v4081_v8  ;;  %v1769_v17 = vmul.f32 %v4111_v54, %v4156_v34  ;;  %v1771_v52 = vmul.f32 %v4111_v54, %v4081_v8  ;;  %v1772_v22 = vmul.f32 %v4108_v7, %v4156_v34  ;;  %s4807_s12 = sld [smem:[#allocation2 + $0x10e]] }
 0x133   : > { %v1774_v0 = vmul.f32 %v4108_v7, %v4085_v3  ;;  %v1775_v49 = vmul.f32 %v4111_v54, %v4158_v47  ;;  %v1777_v28 = vmul.f32 %v4111_v54, %v4085_v3  ;;  %v1778_v5 = vmul.f32 %v4108_v7, %v4158_v47 }
 0x134   : > { %v1784_v56 = vmul.f32 %v4270_v29, %v4160_v51  ;;  %v1785_v8 = vmul.f32 %v4273_v58, %v4178_v44  ;;  %v1787_v34 = vmul.f32 %v4273_v58, %v4160_v51  ;;  %v1788_v46 = vmul.f32 %v4270_v29, %v4178_v44 }
 0x135   : > { %v1790_v37 = vmul.f32 %v4270_v29, %v4164_v63  ;;  %v1791_v3 = vmul.f32 %v4273_v58, %v1716_v16  ;;  %v1793_v7 = vmul.f32 %v4273_v58, %v4164_v63  ;;  %v1794_v54 = vmul.f32 %v4270_v29, %v1716_v16 }
 0x136   : > { %v1796_v47 = vmul.f32 %v4270_v29, %v4168_v62  ;;  %v1797_v35 = vmul.f32 %v4273_v58, %v1722_v55  ;;  %v4312_v33 = vadd.f32 %v1754_v25, %v1753_v57  ;;  %v1758_v51 = vsub.f32 %v1756_v18, %v1757_v50 }
 0x137   : > { %v4314_v10 = vadd.f32 %v1760_v59, %v1759_v45  ;;  %v1764_v44 = vsub.f32 %v1762_v39, %v1763_v42  ;;  %v4316_v48 = vadd.f32 %v1766_v2, %v1765_v9  ;;  %v1770_v14 = vsub.f32 %v1768_v61, %v1769_v17 }
 0x138   : > { %v4318_v26 = vadd.f32 %v1772_v22, %v1771_v52  ;;  %v1776_v53 = vsub.f32 %v1774_v0, %v1775_v49  ;;  %v4320_v63 = vadd.f32 %v1778_v5, %v1777_v28  ;;  %v4322_v13 = vsub.f32 %v1784_v56, %v1785_v8 }
 0x139   : > { %v4324_v16 = vadd.f32 %v1788_v46, %v1787_v34  ;;  %v4326_v6 = vsub.f32 %v1790_v37, %v1791_v3  ;;  %v4328_v32 = vadd.f32 %v1794_v54, %v1793_v7  ;;  %v4330_v24 = vsub.f32 %v1796_v47, %v1797_v35 }
 0x13a   : > { %v1799_v36 = vmul.f32 %v4273_v58, %v4168_v62  ;;  %v1800_v57 = vmul.f32 %v4270_v29, %v1722_v55  ;;  %v1802_v25 = vmul.f32 %v4270_v29, %v4172_v12  ;;  %v1803_v18 = vmul.f32 %v4273_v58, %v1728_v31 }
 0x13b   : > { %v1805_v50 = vmul.f32 %v4273_v58, %v4172_v12  ;;  %v1806_v45 = vmul.f32 %v4270_v29, %v1728_v31  ;;  %v1808_v59 = vmul.f32 %v4270_v29, %v4162_v11  ;;  %v1809_v39 = vmul.f32 %v4273_v58, %v4223_v15 }
 0x13c   : > { %v1811_v62 = vmul.f32 %v4273_v58, %v4162_v11  ;;  %v1812_v55 = vmul.f32 %v4270_v29, %v4223_v15  ;;  %v1814_v42 = vmul.f32 %v4270_v29, %v4166_v4  ;;  %v1815_v12 = vmul.f32 %v4273_v58, %v4229_v38 }
 0x13d   : > { %v1817_v31 = vmul.f32 %v4273_v58, %v4166_v4  ;;  %v1818_v9 = vmul.f32 %v4270_v29, %v4229_v38  ;;  %v1820_v2 = vmul.f32 %v4270_v29, %v4170_v40  ;;  %v1821_v11 = vmul.f32 %v4273_v58, %v4235_v20 }
 0x13e   : > { %v1823_v15 = vmul.f32 %v4273_v58, %v4170_v40  ;;  %v1824_v61 = vmul.f32 %v4270_v29, %v4235_v20  ;;  %v1826_v17 = vmul.f32 %v4270_v29, %v4174_v21  ;;  %v1827_v4 = vmul.f32 %v4273_v58, %v4237_v41 }
 0x13f   : > { %v1829_v38 = vmul.f32 %v4273_v58, %v4174_v21  ;;  %v1830_v52 = vmul.f32 %v4270_v29, %v4237_v41  ;;  %v1832_v22 = vmul.f32 %v4270_v29, %v4239_v60  ;;  %v1833_v40 = vmul.f32 %v4273_v58, %v1758_v51 }
 0x140   : > { %v1835_v20 = vmul.f32 %v4273_v58, %v4239_v60  ;;  %v1836_v0 = vmul.f32 %v4270_v29, %v1758_v51  ;;  %v4381_v49 = vadd.f32 %v1800_v57, %v1799_v36  ;;  %v4383_v28 = vsub.f32 %v1802_v25, %v1803_v18 }
 0x141   : > { %v1838_v21 = vmul.f32 %v4270_v29, %v4243_v27  ;;  %v1839_v41 = vmul.f32 %v4273_v58, %v1764_v44  ;;  %v4390_v5 = vadd.f32 %v1806_v45, %v1805_v50  ;;  %v4392_v56 = vsub.f32 %v1808_v59, %v1809_v39 }
 0x142   : > { %v4394_v60 = vadd.f32 %v1812_v55, %v1811_v62  ;;  %v4396_v8 = vsub.f32 %v1814_v42, %v1815_v12  ;;  %v4398_v34 = vadd.f32 %v1818_v9, %v1817_v31  ;;  %v4400_v46 = vsub.f32 %v1820_v2, %v1821_v11 }
 0x143   : > { %v4402_v37 = vadd.f32 %v1824_v61, %v1823_v15  ;;  %v4404_v3 = vsub.f32 %v1826_v17, %v1827_v4  ;;  %v4406_v7 = vadd.f32 %v1830_v52, %v1829_v38  ;;  %v4408_v54 = vsub.f32 %v1832_v22, %v1833_v40 }
 0x144   : > { %v4410_v47 = vadd.f32 %v1836_v0, %v1835_v20  ;;  %v1841_v35 = vmul.f32 %v4273_v58, %v4243_v27  ;;  %v4414_v51 = vsub.f32 %v1838_v21, %v1839_v41  ;;  %v1842_v36 = vmul.f32 %v4270_v29, %v1764_v44 }
 0x145   : > { %v1844_v57 = vmul.f32 %v4270_v29, %v4247_v19  ;;  %v1845_v25 = vmul.f32 %v4273_v58, %v1770_v14  ;;  %v1847_v18 = vmul.f32 %v4273_v58, %v4247_v19  ;;  %v1848_v50 = vmul.f32 %v4270_v29, %v1770_v14 }
 0x146   : > { %v1850_v45 = vmul.f32 %v4270_v29, %v4257_v43  ;;  %v1851_v27 = vmul.f32 %v4273_v58, %v1776_v53  ;;  %v1853_v44 = vmul.f32 %v4273_v58, %v4257_v43  ;;  %v1854_v59 = vmul.f32 %v4270_v29, %v1776_v53 }
 0x147   : > { %v1856_v39 = vmul.f32 %v4270_v29, %v4241_v30  ;;  %v1857_v62 = vmul.f32 %v4273_v58, %v4314_v10  ;;  %v1859_v19 = vmul.f32 %v4273_v58, %v4241_v30  ;;  %v1860_v14 = vmul.f32 %v4270_v29, %v4314_v10 }
 0x148   : > { %v1862_v55 = vmul.f32 %v4270_v29, %v4245_v1  ;;  %v1863_v43 = vmul.f32 %v4273_v58, %v4316_v48  ;;  %v1865_v53 = vmul.f32 %v4273_v58, %v4245_v1  ;;  %v1866_v42 = vmul.f32 %v4270_v29, %v4316_v48 }
 0x149   : > { %v4446_v12 = vstv %s4379_s13  ;;  %v4449_v31 = vstv %s4388_s14  ;;  %v1868_v30 = vmul.f32 %v4270_v29, %v4249_v23  ;;  %v1869_v10 = vmul.f32 %v4273_v58, %v4318_v26  ;;  %s4813_s13 = sld [smem:[#allocation2 + $0x18e]] }
 0x14a   : > { %v1871_v9 = vmul.f32 %v4273_v58, %v4249_v23  ;;  %v1872_v2 = vmul.f32 %v4270_v29, %v4318_v26  ;;  %v1874_v1 = vmul.f32 %v4270_v29, %v4312_v33  ;;  %v1875_v48 = vmul.f32 %v4273_v58, %v4320_v63  ;;  %s4835_s14 = sld [smem:[#allocation2 + $0x10f]] }
 0x14b   : > { %v1877_v11 = vmul.f32 %v4273_v58, %v4312_v33  ;;  %v1878_v15 = vmul.f32 %v4270_v29, %v4320_v63  ;;  %v4467_v61 = vadd.f32 %v1842_v36, %v1841_v35  ;;  %v4469_v17 = vsub.f32 %v1844_v57, %v1845_v25 }
 0x14c   : > { %v1884_v23 = vmul.f32 %v4446_v12, %v4322_v13  ;;  %v1885_v26 = vmul.f32 %v4449_v31, %v4330_v24  ;;  %v4475_v4 = vadd.f32 %v1848_v50, %v1847_v18  ;;  %v4477_v38 = vsub.f32 %v1850_v45, %v1851_v27 }
 0x14d   : > { %v4479_v52 = vadd.f32 %v1854_v59, %v1853_v44  ;;  %v4481_v58 = vsub.f32 %v1856_v39, %v1857_v62  ;;  %v4483_v33 = vadd.f32 %v1860_v14, %v1859_v19  ;;  %v4485_v29 = vsub.f32 %v1862_v55, %v1863_v43 }
 0x14e   : > { %v4487_v63 = vadd.f32 %v1866_v42, %v1865_v53  ;;  %v4489_v22 = vsub.f32 %v1868_v30, %v1869_v10  ;;  %v4491_v40 = vadd.f32 %v1872_v2, %v1871_v9  ;;  %v4493_v20 = vsub.f32 %v1874_v1, %v1875_v48 }
 0x14f   : > { %v4495_v0 = vadd.f32 %v1878_v15, %v1877_v11  ;;  %v1887_v21 = vmul.f32 %v4449_v31, %v4322_v13  ;;  %v4499_v41 = vsub.f32 %v1884_v23, %v1885_v26  ;;  %v1888_v35 = vmul.f32 %v4446_v12, %v4330_v24 }
 0x150   : > { %v1890_v36 = vmul.f32 %v4446_v12, %v4326_v6  ;;  %v1891_v57 = vmul.f32 %v4449_v31, %v4383_v28  ;;  %v1893_v25 = vmul.f32 %v4449_v31, %v4326_v6  ;;  %v1894_v18 = vmul.f32 %v4446_v12, %v4383_v28 }
 0x151   : > { %v1896_v13 = vmul.f32 %v4446_v12, %v4324_v16  ;;  %v1897_v50 = vmul.f32 %v4449_v31, %v4381_v49  ;;  %v1899_v24 = vmul.f32 %v4449_v31, %v4324_v16  ;;  %v1900_v45 = vmul.f32 %v4446_v12, %v4381_v49 }
 0x152   : > { %v1902_v27 = vmul.f32 %v4446_v12, %v4328_v32  ;;  %v1903_v6 = vmul.f32 %v4449_v31, %v4390_v5  ;;  %v1905_v28 = vmul.f32 %v4449_v31, %v4328_v32  ;;  %v1906_v44 = vmul.f32 %v4446_v12, %v4390_v5 }
 0x153   : > { %v1908_v59 = vmul.f32 %v4446_v12, %v4392_v56  ;;  %v1909_v16 = vmul.f32 %v4449_v31, %v4400_v46  ;;  %v1911_v49 = vmul.f32 %v4449_v31, %v4392_v56  ;;  %v1912_v39 = vmul.f32 %v4446_v12, %v4400_v46 }
 0x154   : > { %v1914_v62 = vmul.f32 %v4446_v12, %v4396_v8  ;;  %v1915_v32 = vmul.f32 %v4449_v31, %v4404_v3  ;;  %v1917_v5 = vmul.f32 %v4449_v31, %v4396_v8  ;;  %v1918_v19 = vmul.f32 %v4446_v12, %v4404_v3 }
 0x155   : > { %v1920_v14 = vmul.f32 %v4446_v12, %v4394_v60  ;;  %v1921_v56 = vmul.f32 %v4449_v31, %v4402_v37  ;;  %v4547_v55 = vadd.f32 %v1888_v35, %v1887_v21  ;;  %v4549_v46 = vsub.f32 %v1890_v36, %v1891_v57 }
 0x156   : > { %v1923_v43 = vmul.f32 %v4449_v31, %v4394_v60  ;;  %v1924_v53 = vmul.f32 %v4446_v12, %v4402_v37  ;;  %v4555_v8 = vadd.f32 %v1894_v18, %v1893_v25  ;;  %v4557_v42 = vsub.f32 %v1896_v13, %v1897_v50 }
 0x157   : > { %v1926_v3 = vmul.f32 %v4446_v12, %v4398_v34  ;;  %v1927_v30 = vmul.f32 %v4449_v31, %v4406_v7  ;;  %v4563_v10 = vadd.f32 %v1900_v45, %v1899_v24  ;;  %v4565_v9 = vsub.f32 %v1902_v27, %v1903_v6 }
 0x158   : > { %v4567_v2 = vadd.f32 %v1906_v44, %v1905_v28  ;;  %v4569_v60 = vsub.f32 %v1908_v59, %v1909_v16  ;;  %v4571_v1 = vadd.f32 %v1912_v39, %v1911_v49  ;;  %v4573_v37 = vsub.f32 %v1914_v62, %v1915_v32 }
 0x159   : > { %v4575_v48 = vadd.f32 %v1918_v19, %v1917_v5  ;;  %v4577_v11 = vsub.f32 %v1920_v14, %v1921_v56  ;;  %v4581_v15 = vadd.f32 %v1924_v53, %v1923_v43  ;;  %v1929_v23 = vmul.f32 %v4449_v31, %v4398_v34 }
 0x15a   : > { %v1930_v26 = vmul.f32 %v4446_v12, %v4406_v7  ;;  %v1932_v21 = vmul.f32 %v4446_v12, %v4408_v54  ;;  %v4591_v35 = vsub.f32 %v1926_v3, %v1927_v30  ;;  %v1933_v36 = vmul.f32 %v4449_v31, %v4469_v17 }
 0x15b   : > { %v1935_v57 = vmul.f32 %v4449_v31, %v4408_v54  ;;  %v1936_v25 = vmul.f32 %v4446_v12, %v4469_v17  ;;  %v1938_v34 = vmul.f32 %v4446_v12, %v4414_v51  ;;  %v1939_v7 = vmul.f32 %v4449_v31, %v4477_v38 }
 0x15c   : > { %v1941_v18 = vmul.f32 %v4449_v31, %v4414_v51  ;;  %v1942_v13 = vmul.f32 %v4446_v12, %v4477_v38  ;;  %v1944_v54 = vmul.f32 %v4446_v12, %v4410_v47  ;;  %v1945_v17 = vmul.f32 %v4449_v31, %v4475_v4 }
 0x15d   : > { %v1947_v50 = vmul.f32 %v4449_v31, %v4410_v47  ;;  %v1948_v24 = vmul.f32 %v4446_v12, %v4475_v4  ;;  %v1950_v51 = vmul.f32 %v4446_v12, %v4467_v61  ;;  %v1951_v38 = vmul.f32 %v4449_v31, %v4479_v52 }
 0x15e   : > { %v1953_v45 = vmul.f32 %v4449_v31, %v4467_v61  ;;  %v1954_v27 = vmul.f32 %v4446_v12, %v4479_v52  ;;  %v1956_v47 = vmul.f32 %v4446_v12, %v4481_v58  ;;  %v1957_v4 = vmul.f32 %v4449_v31, %v4489_v22 }
 0x15f   : > { %v1959_v6 = vmul.f32 %v4449_v31, %v4481_v58  ;;  %v1960_v28 = vmul.f32 %v4446_v12, %v4489_v22  ;;  %v1962_v61 = vmul.f32 %v4446_v12, %v4485_v29  ;;  %v1963_v52 = vmul.f32 %v4449_v31, %v4493_v20 }
 0x160   : > { %v1965_v44 = vmul.f32 %v4449_v31, %v4485_v29  ;;  %v1966_v59 = vmul.f32 %v4446_v12, %v4493_v20  ;;  %v4651_v58 = vadd.f32 %v1930_v26, %v1929_v23  ;;  %v4653_v16 = vsub.f32 %v1932_v21, %v1933_v36 }
 0x161   : > { %v4655_v22 = vadd.f32 %v1936_v25, %v1935_v57  ;;  %v4657_v49 = vsub.f32 %v1938_v34, %v1939_v7  ;;  %v4661_v39 = vadd.f32 %v1942_v13, %v1941_v18  ;;  %v4663_v62 = vsub.f32 %v1944_v54, %v1945_v17 }
 0x162   : > { %v1968_v29 = vmul.f32 %v4446_v12, %v4483_v33  ;;  %v1969_v20 = vmul.f32 %v4449_v31, %v4491_v40  ;;  %v4671_v32 = vadd.f32 %v1948_v24, %v1947_v50  ;;  %v4673_v5 = vsub.f32 %v1950_v51, %v1951_v38 }
 0x163   : > { %v4675_v19 = vadd.f32 %v1954_v27, %v1953_v45  ;;  %v4677_v14 = vsub.f32 %v1956_v47, %v1957_v4  ;;  %v4681_v56 = vadd.f32 %v1960_v28, %v1959_v6  ;;  %v4683_v43 = vsub.f32 %v1962_v61, %v1963_v52 }
 0x164   : > { %v4685_v53 = vadd.f32 %v1966_v59, %v1965_v44  ;;  %v1971_v3 = vmul.f32 %v4449_v31, %v4483_v33  ;;  %v1972_v30 = vmul.f32 %v4446_v12, %v4491_v40  ;;  %v1974_v23 = vmul.f32 %v4446_v12, %v4487_v63 }
 0x165   : > { %v1981_v26 = vstv %s4579_s15  ;;  %v1983_v21 = vstv %s4589_s16  ;;  %v4699_v36 = vsub.f32 %v1968_v29, %v1969_v20  ;;  %v1975_v57 = vmul.f32 %v4449_v31, %v4495_v0  ;;  %s4842_s15 = sld [smem:[#allocation2 + $0x18f]] }
 0x166   : > { %v1991_v33 = vstv %s4599_s18  ;;  %v1993_v25 = vstv %s4609_s21  ;;  %v1977_v40 = vmul.f32 %v4449_v31, %v4487_v63  ;;  %v1978_v34 = vmul.f32 %v4446_v12, %v4495_v0  ;;  %s4849_s16 = sld [smem:[#allocation6 + $0x200]] }
 0x167   : > { %v2001_v7 = vstv %s4619_s24  ;;  %v2003_v18 = vstv %s4629_s25  ;;  %v1984_v13 = vmul.f32 %v1981_v26, %v4499_v41  ;;  %v1985_v54 = vmul.f32 %v1983_v21, %v4549_v46  ;;  %s4855_s18 = sld [smem:[#allocation6 + $0x201]] }
 0x168   : > { %v2011_v17 = vstv %s4639_s0  ;;  %v2013_v50 = vstv %s4649_s26  ;;  %v1987_v24 = vmul.f32 %v1981_v26, %v4549_v46  ;;  %v1988_v51 = vmul.f32 %v1983_v21, %v4499_v41  ;;  %s4869_s21 = sld [smem:[#allocation6 + $0x280]] }
 0x169   : > { %v1994_v31 = vmul.f32 %v1991_v33, %v4547_v55  ;;  %v1995_v12 = vmul.f32 %v1993_v25, %v4555_v8  ;;  %v1997_v63 = vmul.f32 %v1991_v33, %v4555_v8  ;;  %v1998_v0 = vmul.f32 %v1993_v25, %v4547_v55  ;;  %s4891_s24 = sld [smem:[#allocation6 + $0x281]] }
 0x16a   : > { %v2004_v38 = vmul.f32 %v2001_v7, %v4563_v10  ;;  %v2005_v45 = vmul.f32 %v2003_v18, %v4567_v2  ;;  %v2007_v41 = vmul.f32 %v2001_v7, %v4567_v2  ;;  %v2008_v46 = vmul.f32 %v2003_v18, %v4563_v10  ;;  %s5165_s25 = sld [smem:[#allocation6 + $0x300]] }
 0x16b   : > { %v2014_v27 = vmul.f32 %v2011_v17, %v4557_v42  ;;  %v2015_v8 = vmul.f32 %v2013_v50, %v4565_v9  ;;  %v4739_v55 = vadd.f32 %v1972_v30, %v1971_v3  ;;  %v4741_v47 = vsub.f32 %v1974_v23, %v1975_v57  ;;  %s5171_s0 = sld [smem:[#allocation6 + $0x301]] }
 0x16c   : > { %v4743_v4 = vadd.f32 %v1978_v34, %v1977_v40  ;;  %v4745_v6 = vsub.f32 %v1984_v13, %v1985_v54  ;;  %v4749_v2 = vadd.f32 %v1988_v51, %v1987_v24  ;;  %v4751_v10 = vsub.f32 %v1994_v31, %v1995_v12  ;;  %s5343_s26 = sld [smem:[#allocation6 + $0x380]] }
 0x16d   : > { %v2021_v28 = vstv %s4659_s28  ;;  %v2023_v61 = vstv %s4669_s22  ;;  %v4757_v52 = vadd.f32 %v1998_v0, %v1997_v63  ;;  %v4759_v44 = vsub.f32 %v2004_v38, %v2005_v45  ;;  %s5351_s28 = sld [smem:[#allocation6 + $0x381]] }
 0x16e   : > { %v2031_v59 = vstv %s4679_s30  ;;  %v2033_v29 = vstv %s4689_s4  ;;  %v4765_v20 = vadd.f32 %v2008_v46, %v2007_v41  ;;  %v4767_v3 = vsub.f32 %v2014_v27, %v2015_v8  ;;  %s5702_s22 = sld [smem:[#allocation18_spill]] }
 0x16f   : > { %v2017_v30 = vmul.f32 %v2011_v17, %v4565_v9  ;;  %v2018_v23 = vmul.f32 %v2013_v50, %v4557_v42  ;;  %v2024_v26 = vmul.f32 %v2021_v28, %v4577_v11  ;;  %v2025_v21 = vmul.f32 %v2023_v61, %v4591_v35  ;;  %s5703_s30 = sld [smem:[#allocation23_spill]] }
 0x170   : > { %v2041_v57 = vstv %s4697_s29  ;;  %v2043_v33 = vstv %s4705_s5  ;;  %v2027_v25 = vmul.f32 %v2021_v28, %v4591_v35  ;;  %v2028_v40 = vmul.f32 %v2023_v61, %v4577_v11 }
 0x171   : > { %v2034_v9 = vmul.f32 %v2031_v59, %v4581_v15  ;;  %v2035_v42 = vmul.f32 %v2033_v29, %v4651_v58  ;;  %v2037_v34 = vmul.f32 %v2031_v59, %v4651_v58  ;;  %v2038_v7 = vmul.f32 %v2033_v29, %v4581_v15 }
 0x172   : > { %v2051_v18 = vstv %s4713_s7  ;;  %v2053_v13 = vstv %s4719_s9  ;;  %v2044_v35 = vmul.f32 %v2041_v57, %v4571_v1  ;;  %v2045_v11 = vmul.f32 %v2043_v33, %v4575_v48  ;;  %s5704_s7 = sld [smem:[#allocation31_spill]] }
 0x173   : > { %v2061_v54 = vstv %s4725_s11  ;;  %v2063_v17 = vstv %s4731_s8  ;;  %v2047_v50 = vmul.f32 %v2041_v57, %v4575_v48  ;;  %v2048_v24 = vmul.f32 %v2043_v33, %v4571_v1 }
 0x174   : > { %v2071_v51 = vstv %s4737_s10  ;;  %v2073_v58 = vstv %s4747_s17  ;;  %v2054_v15 = vmul.f32 %v2051_v18, %v4569_v60  ;;  %v2055_v31 = vmul.f32 %v2053_v13, %v4573_v37  ;;  %s2876_s4 = sshll.u32 %s5702_s22, 3 }
 0x175   : > { %v2057_v12 = vmul.f32 %v2051_v18, %v4573_v37  ;;  %v2058_v63 = vmul.f32 %v2053_v13, %v4569_v60  ;;  %v2064_v0 = vmul.f32 %v2061_v54, %v4677_v14  ;;  %v2065_v1 = vmul.f32 %v2063_v17, %v4683_v43  ;;  %s5705_s11 = sshll.u32 %s5703_s30, 5 }
 0x176   : > { %v2067_v48 = vmul.f32 %v2061_v54, %v4683_v43  ;;  %v2068_v38 = vmul.f32 %v2063_v17, %v4677_v14  ;;  %v4815_v45 = vadd.f32 %v2018_v23, %v2017_v30  ;;  %v4817_v41 = vsub.f32 %v2024_v26, %v2025_v21  ;;  %s216_s8 = scalar_lea.vmem [#allocation9], %s5705_s11 }
 0x177   : > { %v2074_v60 = vmul.f32 %v2071_v51, %v4681_v56  ;;  %v2075_v37 = vmul.f32 %v2073_v58, %v4685_v53  ;;  %v4821_v46 = vadd.f32 %v2028_v40, %v2027_v25  ;;  %v4823_v27 = vsub.f32 %v2034_v9, %v2035_v42  ;;  %s2660_s10 = sshll.u32 %s216_s8, 4  ;;  %s2661_s10 = int_to_ptr.vmem [resolvable:$true] %s2660_s10 }
 0x178   : > { %v4825_v8 = vadd.f32 %v2038_v7, %v2037_v34  ;;  %v4827_v43 = vsub.f32 %v2044_v35, %v2045_v11  ;;  %v4829_v14 = vadd.f32 %v2048_v24, %v2047_v50  ;;  %v4831_v28 = vsub.f32 %v2054_v15, %v2055_v31  ;;  %s2659_s9 = scalar_lea.hbm %s5704_s7, %s2876_s4 }
 0x179   : > { %v2081_v61 = vstv %s4755_s6  ;;  %v2083_v59 = vstv %s4763_s19  ;;  %v4837_v29 = vadd.f32 %v2058_v63, %v2057_v12  ;;  %v2066_v30 = vsub.f32 %v2064_v0, %v2065_v1  ;;  %s2662_s17 = sshll.u32 %s2659_s9, 4  ;;  %s2649_s19 = scalar_lea.sflag [#allocation4], %s5703_s30  ;;  %s2663_s17 = int_to_ptr.hbm [resolvable:$true] %s2662_s17 }
 0x17a   : > { %v4839_v23 = vadd.f32 %v2068_v38, %v2067_v48  ;;  %v2077_v26 = vmul.f32 %v2071_v51, %v4685_v53  ;;  %v4844_v21 = vsub.f32 %v2074_v60, %v2075_v37  ;;  %v2078_v57 = vmul.f32 %v2073_v58, %v4681_v56 }
 0x17b   : > { %v2091_v33 = vstv %s4771_s23  ;;  %v2093_v25 = vstv %s4777_s20  ;;  %v2084_v40 = vmul.f32 %v2081_v61, %v4739_v55  ;;  %v2085_v9 = vmul.f32 %v2083_v59, %v4743_v4  ;;  %s3036_s23 = sshra.s32 %s2663_s17, 4  ;;  %s3037_s23 = int_to_ptr.hbm [resolvable:$true] %s3036_s23 }
 0x17c   : > { %v2101_v42 = vstv %s4783_s27  ;;  %v2103_v34 = vstv %s4789_s1  ;;  %v2087_v53 = vmul.f32 %v2081_v61, %v4743_v4  ;;  %v2088_v7 = vmul.f32 %v2083_v59, %v4739_v55  ;;  %s3038_s20 = scalar_lea.hbm %s3037_s23, 32  ;;  %p3043_p0 = scmp.lt.s32.totalorder %s3037_s23, %s5704_s7 }
 0x17d   : > { %v2111_v18 = vstv %s4795_s2  ;;  %v2113_v13 = vstv %s4801_s3  ;;  %v2094_v56 = vmul.f32 %v2091_v33, %v4699_v36  ;;  %v2095_v35 = vmul.f32 %v2093_v25, %v4741_v47  ;;  %p3039_p4 = scmp.ne.s32.totalorder %s3037_s23, %s3038_s20  ;;  %s3042_s2 = scalar_lea.hbm %s5704_s7, 64 }
 0x17e   : > { %v2121_v11 = vstv %s4807_s12  ;;  %v2123_v54 = vstv %s4813_s13  ;;  %v2097_v17 = vmul.f32 %v2091_v33, %v4741_v47  ;;  %v2098_v50 = vmul.f32 %v2093_v25, %v4699_v36  ;;  %p3044_p7 = scmp.lt.s32.totalorder %s3042_s2, %s3038_s20 }
 0x17f   : > { %v2104_v24 = vmul.f32 %v2101_v42, %v4663_v62  ;;  %v2105_v51 = vmul.f32 %v2103_v34, %v4673_v5  ;;  %v2107_v55 = vmul.f32 %v2101_v42, %v4673_v5  ;;  %v2108_v4 = vmul.f32 %v2103_v34, %v4663_v62  ;;  %p3040_p6 = pnand %p3039_p4, %p3185_p11 }
 0x180   : > { %v2114_v58 = vmul.f32 %v2111_v18, %v4671_v32  ;;  %v2115_v15 = vmul.f32 %v2113_v13, %v4675_v19  ;;  %v2117_v36 = vmul.f32 %v2111_v18, %v4675_v19  ;;  %v2118_v47 = vmul.f32 %v2113_v13, %v4671_v32  ;;  %p3045_p5 = por %p3044_p7, %p3043_p0 }
 0x181   : > { %v2124_v31 = vmul.f32 %v2121_v11, %v4655_v22  ;;  %v2125_v12 = vmul.f32 %v2123_v54, %v4661_v39  ;;  %v2079_v63 = vadd.f32 %v2078_v57, %v2077_v26  ;;  %v2086_v0 = vsub.f32 %v2084_v40, %v2085_v9  ;;  %p3041_p13 = pneg %p3040_p6 }
 0x182   : > { %v2127_v5 = vmul.f32 %v2121_v11, %v4661_v39  ;;  %v2128_v62 = vmul.f32 %v2123_v54, %v4655_v22  ;;  %v2089_v1 = vadd.f32 %v2088_v7, %v2087_v53  ;;  %v2096_v48 = vsub.f32 %v2094_v56, %v2095_v35 }
 0x183   : > { %v2131_v38 = vstv %s4835_s14  ;;  %v2133_v60 = vstv %s4842_s15  ;;  %v2099_v37 = vadd.f32 %v2098_v50, %v2097_v17  ;;  %v4883_v61 = vsub.f32 %v2104_v24, %v2105_v51  ;;  %p3046_p8 = pnand %p3045_p5, %p3041_p13 }
 0x184   : > { %v4886_v19 = vstv %s4849_s16  ;;  %v4889_v32 = vstv %s4855_s18  ;;  %v4893_v59 = vadd.f32 %v2108_v4, %v2107_v55  ;;  %v4895_v26 = vsub.f32 %v2114_v58, %v2115_v15 }
 0x185   : > { %v4897_v39 = vadd.f32 %v2118_v47, %v2117_v36  ;;  %v4899_v22 = vsub.f32 %v2124_v31, %v2125_v12  ;;  %v4901_v57 = vadd.f32 %v2128_v62, %v2127_v5  ;;  %v2134_v33 = vmul.f32 %v2131_v38, %v4653_v16 }
 0x186   : > { %v2135_v25 = vmul.f32 %v2133_v60, %v4657_v49  ;;  %v2137_v40 = vmul.f32 %v2131_v38, %v4657_v49  ;;  %v2138_v9 = vmul.f32 %v2133_v60, %v4653_v16  ;;  %v2144_v42 = vmul.f32 %v4886_v19, %v4745_v6 }
 0x187   : > { %v2145_v34 = vmul.f32 %v4889_v32, %v2066_v30  ;;  %v4911_v53 = vstv %s4869_s21  ;;  %v2147_v7 = vmul.f32 %v4889_v32, %v4745_v6  ;;  %v2148_v18 = vmul.f32 %v4886_v19, %v2066_v30 }
 0x188   : > { %v2150_v13 = vmul.f32 %v4886_v19, %v4749_v2  ;;  %v2151_v49 = vmul.f32 %v4889_v32, %v4839_v23  ;;  %v2153_v16 = vmul.f32 %v4889_v32, %v4749_v2  ;;  %v2154_v56 = vmul.f32 %v4886_v19, %v4839_v23 }
 0x189   : > { %v2156_v35 = vmul.f32 %v4886_v19, %v4751_v10  ;;  %v2157_v6 = vmul.f32 %v4889_v32, %v4844_v21  ;;  %v2159_v30 = vmul.f32 %v4889_v32, %v4751_v10  ;;  %v2160_v11 = vmul.f32 %v4886_v19, %v4844_v21 }
 0x18a   : > { %v2162_v54 = vmul.f32 %v4886_v19, %v4757_v52  ;;  %v2163_v2 = vmul.f32 %v4889_v32, %v2079_v63  ;;  %v2165_v23 = vmul.f32 %v4889_v32, %v4757_v52  ;;  %v2166_v17 = vmul.f32 %v4886_v19, %v2079_v63 }
 0x18b   : > { %v2168_v50 = vmul.f32 %v4886_v19, %v4759_v44  ;;  %v2169_v24 = vmul.f32 %v4889_v32, %v2086_v0  ;;  %v4941_v51 = vsub.f32 %v2134_v33, %v2135_v25  ;;  %v2171_v10 = vmul.f32 %v4889_v32, %v4759_v44 }
 0x18c   : > { %v2172_v21 = vmul.f32 %v4886_v19, %v2086_v0  ;;  %v4947_v55 = vstv %s4891_s24  ;;  %v4949_v4 = vadd.f32 %v2138_v9, %v2137_v40  ;;  %v4951_v58 = vsub.f32 %v2144_v42, %v2145_v34 }
 0x18d   : > { %v2174_v52 = vmul.f32 %v4886_v19, %v4765_v20  ;;  %v2175_v15 = vmul.f32 %v4889_v32, %v2089_v1  ;;  %v4956_v36 = vadd.f32 %v2148_v18, %v2147_v7  ;;  %v4958_v47 = vsub.f32 %v2150_v13, %v2151_v49 }
 0x18e   : > { %v4960_v31 = vadd.f32 %v2154_v56, %v2153_v16  ;;  %v4962_v44 = vsub.f32 %v2156_v35, %v2157_v6  ;;  %v4964_v12 = vadd.f32 %v2160_v11, %v2159_v30  ;;  %v4966_v63 = vsub.f32 %v2162_v54, %v2163_v2 }
 0x18f   : > { %v4968_v0 = vadd.f32 %v2166_v17, %v2165_v23  ;;  %v4970_v5 = vsub.f32 %v2168_v50, %v2169_v24  ;;  %v4972_v62 = vadd.f32 %v2172_v21, %v2171_v10  ;;  %v2177_v38 = vmul.f32 %v4889_v32, %v4765_v20 }
 0x190   : > { %v2178_v60 = vmul.f32 %v4886_v19, %v2089_v1  ;;  %v2180_v33 = vmul.f32 %v4886_v19, %v4767_v3  ;;  %v4979_v25 = vsub.f32 %v2174_v52, %v2175_v15  ;;  %v2181_v40 = vmul.f32 %v4889_v32, %v2096_v48 }
 0x191   : > { %v2183_v9 = vmul.f32 %v4889_v32, %v4767_v3  ;;  %v2184_v42 = vmul.f32 %v4886_v19, %v2096_v48  ;;  %v2186_v34 = vmul.f32 %v4886_v19, %v4815_v45  ;;  %v2187_v7 = vmul.f32 %v4889_v32, %v2099_v37 }
 0x192   : > { %v2189_v20 = vmul.f32 %v4889_v32, %v4815_v45  ;;  %v2190_v1 = vmul.f32 %v4886_v19, %v2099_v37  ;;  %v2192_v18 = vmul.f32 %v4886_v19, %v4817_v41  ;;  %v2193_v13 = vmul.f32 %v4889_v32, %v4883_v61 }
 0x193   : > { %v2195_v3 = vmul.f32 %v4889_v32, %v4817_v41  ;;  %v2196_v48 = vmul.f32 %v4886_v19, %v4883_v61  ;;  %v2198_v49 = vmul.f32 %v4886_v19, %v4821_v46  ;;  %v2199_v45 = vmul.f32 %v4889_v32, %v4893_v59 }
 0x194   : > { %v2201_v37 = vmul.f32 %v4889_v32, %v4821_v46  ;;  %v2202_v16 = vmul.f32 %v4886_v19, %v4893_v59  ;;  %v2204_v56 = vmul.f32 %v4886_v19, %v4823_v27  ;;  %v2205_v41 = vmul.f32 %v4889_v32, %v4895_v26 }
 0x195   : > { %v2207_v61 = vmul.f32 %v4889_v32, %v4823_v27  ;;  %v2208_v35 = vmul.f32 %v4886_v19, %v4895_v26  ;;  %v2210_v6 = vmul.f32 %v4886_v19, %v4825_v8  ;;  %v2211_v46 = vmul.f32 %v4889_v32, %v4897_v39 }
 0x196   : > { %v2213_v59 = vmul.f32 %v4889_v32, %v4825_v8  ;;  %v2214_v30 = vmul.f32 %v4886_v19, %v4897_v39  ;;  %v5023_v11 = vadd.f32 %v2178_v60, %v2177_v38  ;;  %v5025_v54 = vsub.f32 %v2180_v33, %v2181_v40 }
 0x197   : > { %v2216_v27 = vmul.f32 %v4886_v19, %v4827_v43  ;;  %v2217_v26 = vmul.f32 %v4889_v32, %v4899_v22  ;;  %v5031_v2 = vadd.f32 %v2184_v42, %v2183_v9  ;;  %v5033_v23 = vsub.f32 %v2186_v34, %v2187_v7 }
 0x198   : > { %v5035_v17 = vadd.f32 %v2190_v1, %v2189_v20  ;;  %v2194_v8 = vsub.f32 %v2192_v18, %v2193_v13  ;;  %v5037_v50 = vadd.f32 %v2196_v48, %v2195_v3  ;;  %v2200_v39 = vsub.f32 %v2198_v49, %v2199_v45 }
 0x199   : > { %v5039_v24 = vadd.f32 %v2202_v16, %v2201_v37  ;;  %v2206_v10 = vsub.f32 %v2204_v56, %v2205_v41  ;;  %v5041_v21 = vadd.f32 %v2208_v35, %v2207_v61  ;;  %v2212_v52 = vsub.f32 %v2210_v6, %v2211_v46 }
 0x19a   : > { %v5043_v15 = vadd.f32 %v2214_v30, %v2213_v59  ;;  %v2219_v38 = vmul.f32 %v4889_v32, %v4827_v43  ;;  %v2218_v60 = vsub.f32 %v2216_v27, %v2217_v26  ;;  %v2220_v33 = vmul.f32 %v4886_v19, %v4899_v22 }
 0x19b   : > { %v2222_v40 = vmul.f32 %v4886_v19, %v4829_v14  ;;  %v2223_v9 = vmul.f32 %v4889_v32, %v4901_v57  ;;  %v2225_v42 = vmul.f32 %v4889_v32, %v4829_v14  ;;  %v2226_v34 = vmul.f32 %v4886_v19, %v4901_v57 }
 0x19c   : > { %v2228_v7 = vmul.f32 %v4886_v19, %v4831_v28  ;;  %v2229_v43 = vmul.f32 %v4889_v32, %v4941_v51  ;;  %v2231_v22 = vmul.f32 %v4889_v32, %v4831_v28  ;;  %v2232_v20 = vmul.f32 %v4886_v19, %v4941_v51 }
 0x19d   : > { %v2234_v1 = vmul.f32 %v4886_v19, %v4837_v29  ;;  %v2235_v14 = vmul.f32 %v4889_v32, %v4949_v4  ;;  %v2237_v57 = vmul.f32 %v4889_v32, %v4837_v29  ;;  %v2238_v18 = vmul.f32 %v4886_v19, %v4949_v4 }
 0x19e   : > { %v2244_v13 = vmul.f32 %v4911_v53, %v4951_v58  ;;  %v2245_v28 = vmul.f32 %v4947_v55, %v2194_v8  ;;  %v2247_v51 = vmul.f32 %v4947_v55, %v4951_v58  ;;  %v2248_v3 = vmul.f32 %v4911_v53, %v2194_v8 }
 0x19f   : > { %v2250_v48 = vmul.f32 %v4911_v53, %v4958_v47  ;;  %v2251_v49 = vmul.f32 %v4947_v55, %v2200_v39  ;;  %v2253_v29 = vmul.f32 %v4947_v55, %v4958_v47  ;;  %v2254_v19 = vmul.f32 %v4911_v53, %v2200_v39 }
 0x1a0   : > { %v2256_v32 = vmul.f32 %v4911_v53, %v4962_v44  ;;  %v2257_v4 = vmul.f32 %v4947_v55, %v2206_v10  ;;  %v5088_v45 = vadd.f32 %v2220_v33, %v2219_v38  ;;  %v2224_v58 = vsub.f32 %v2222_v40, %v2223_v9 }
 0x1a1   : > { %v2259_v37 = vmul.f32 %v4947_v55, %v4962_v44  ;;  %v2260_v16 = vmul.f32 %v4911_v53, %v2206_v10  ;;  %v5093_v56 = vadd.f32 %v2226_v34, %v2225_v42  ;;  %v2230_v41 = vsub.f32 %v2228_v7, %v2229_v43 }
 0x1a2   : > { %v2262_v47 = vmul.f32 %v4911_v53, %v4966_v63  ;;  %v2263_v61 = vmul.f32 %v4947_v55, %v2212_v52  ;;  %v5098_v35 = vadd.f32 %v2232_v20, %v2231_v22  ;;  %v2236_v6 = vsub.f32 %v2234_v1, %v2235_v14 }
 0x1a3   : > { %v5100_v46 = vadd.f32 %v2238_v18, %v2237_v57  ;;  %v5102_v59 = vsub.f32 %v2244_v13, %v2245_v28  ;;  %v5104_v30 = vadd.f32 %v2248_v3, %v2247_v51  ;;  %v5106_v44 = vsub.f32 %v2250_v48, %v2251_v49 }
 0x1a4   : > { %v5108_v27 = vadd.f32 %v2254_v19, %v2253_v29  ;;  %v5110_v26 = vsub.f32 %v2256_v32, %v2257_v4  ;;  %v5112_v8 = vadd.f32 %v2260_v16, %v2259_v37  ;;  %v2265_v39 = vmul.f32 %v4947_v55, %v4966_v63 }
 0x1a5   : > { %v2266_v10 = vmul.f32 %v4911_v53, %v2212_v52  ;;  %v2268_v38 = vmul.f32 %v4911_v53, %v4970_v5  ;;  %v5119_v33 = vsub.f32 %v2262_v47, %v2263_v61  ;;  %v2269_v40 = vmul.f32 %v4947_v55, %v2218_v60 }
 0x1a6   : > { %v2271_v9 = vmul.f32 %v4947_v55, %v4970_v5  ;;  %v2272_v42 = vmul.f32 %v4911_v53, %v2218_v60  ;;  %v2274_v34 = vmul.f32 %v4911_v53, %v4979_v25  ;;  %v2275_v7 = vmul.f32 %v4947_v55, %v2224_v58 }
 0x1a7   : > { %v2277_v63 = vmul.f32 %v4947_v55, %v4979_v25  ;;  %v2278_v52 = vmul.f32 %v4911_v53, %v2224_v58  ;;  %v2280_v43 = vmul.f32 %v4911_v53, %v5025_v54  ;;  %v2281_v22 = vmul.f32 %v4947_v55, %v2230_v41 }
 0x1a8   : > { %v2283_v5 = vmul.f32 %v4947_v55, %v5025_v54  ;;  %v2284_v60 = vmul.f32 %v4911_v53, %v2230_v41  ;;  %v2286_v20 = vmul.f32 %v4911_v53, %v5033_v23  ;;  %v2287_v1 = vmul.f32 %v4947_v55, %v2236_v6 }
 0x1a9   : > { %v2289_v25 = vmul.f32 %v4947_v55, %v5033_v23  ;;  %v2290_v14 = vmul.f32 %v4911_v53, %v2236_v6  ;;  %v2292_v57 = vmul.f32 %v4911_v53, %v4956_v36  ;;  %v2293_v18 = vmul.f32 %v4947_v55, %v5037_v50 }
 0x1aa   : > { %v2295_v54 = vmul.f32 %v4947_v55, %v4956_v36  ;;  %v2296_v13 = vmul.f32 %v4911_v53, %v5037_v50  ;;  %v2298_v28 = vmul.f32 %v4911_v53, %v4960_v31  ;;  %v2299_v23 = vmul.f32 %v4947_v55, %v5039_v24 }
 0x1ab   : > { %v2301_v51 = vmul.f32 %v4947_v55, %v4960_v31  ;;  %v2302_v3 = vmul.f32 %v4911_v53, %v5039_v24  ;;  %v5159_v48 = vadd.f32 %v2266_v10, %v2265_v39  ;;  %v2270_v49 = vsub.f32 %v2268_v38, %v2269_v40 }
 0x1ac   : > { %v2304_v36 = vmul.f32 %v4911_v53, %v4964_v12  ;;  %v2305_v50 = vmul.f32 %v4947_v55, %v5041_v21  ;;  %v5167_v29 = vadd.f32 %v2272_v42, %v2271_v9  ;;  %v2276_v19 = vsub.f32 %v2274_v34, %v2275_v7 }
 0x1ad   : > { %v5169_v32 = vadd.f32 %v2278_v52, %v2277_v63  ;;  %v2282_v31 = vsub.f32 %v2280_v43, %v2281_v22  ;;  %v5173_v24 = vadd.f32 %v2284_v60, %v2283_v5  ;;  %v2288_v4 = vsub.f32 %v2286_v20, %v2287_v1 }
 0x1ae   : > { %v5175_v58 = vadd.f32 %v2290_v14, %v2289_v25  ;;  %v5177_v37 = vsub.f32 %v2292_v57, %v2293_v18  ;;  %v5179_v16 = vadd.f32 %v2296_v13, %v2295_v54  ;;  %v5181_v41 = vsub.f32 %v2298_v28, %v2299_v23 }
 0x1af   : > { %v5183_v47 = vadd.f32 %v2302_v3, %v2301_v51  ;;  %v2307_v61 = vmul.f32 %v4947_v55, %v4964_v12  ;;  %v5187_v6 = vsub.f32 %v2304_v36, %v2305_v50  ;;  %v2308_v39 = vmul.f32 %v4911_v53, %v5041_v21 }
 0x1b0   : > { %v2310_v10 = vmul.f32 %v4911_v53, %v4968_v0  ;;  %v2311_v38 = vmul.f32 %v4947_v55, %v5043_v15  ;;  %v2313_v40 = vmul.f32 %v4947_v55, %v4968_v0  ;;  %v2314_v9 = vmul.f32 %v4911_v53, %v5043_v15 }
 0x1b1   : > { %v2316_v12 = vmul.f32 %v4911_v53, %v4972_v62  ;;  %v2317_v42 = vmul.f32 %v4947_v55, %v5088_v45  ;;  %v2319_v21 = vmul.f32 %v4947_v55, %v4972_v62  ;;  %v2320_v34 = vmul.f32 %v4911_v53, %v5088_v45 }
 0x1b2   : > { %v2322_v0 = vmul.f32 %v4911_v53, %v5023_v11  ;;  %v2323_v15 = vmul.f32 %v4947_v55, %v5093_v56  ;;  %v2325_v7 = vmul.f32 %v4947_v55, %v5023_v11  ;;  %v2326_v63 = vmul.f32 %v4911_v53, %v5093_v56 }
 0x1b3   : > { %v2328_v52 = vmul.f32 %v4911_v53, %v5031_v2  ;;  %v2329_v62 = vmul.f32 %v4947_v55, %v5098_v35  ;;  %v2331_v45 = vmul.f32 %v4947_v55, %v5031_v2  ;;  %v2332_v43 = vmul.f32 %v4911_v53, %v5098_v35 }
 0x1b4   : > { %v2334_v22 = vmul.f32 %v4911_v53, %v5035_v17  ;;  %v2335_v11 = vmul.f32 %v4947_v55, %v5100_v46  ;;  %v5227_v5 = vadd.f32 %v2308_v39, %v2307_v61  ;;  %v5229_v56 = vsub.f32 %v2310_v10, %v2311_v38 }
 0x1b5   : > { %v5232_v60 = vstv %s5165_s25  ;;  %v5235_v20 = vstv %s5171_s0  ;;  %v5237_v1 = vadd.f32 %v2314_v9, %v2313_v40  ;;  %v2318_v2 = vsub.f32 %v2316_v12, %v2317_v42 }
 0x1b6   : > { %v5239_v25 = vadd.f32 %v2320_v34, %v2319_v21  ;;  %v2324_v35 = vsub.f32 %v2322_v0, %v2323_v15  ;;  %v5241_v14 = vadd.f32 %v2326_v63, %v2325_v7  ;;  %v5243_v57 = vsub.f32 %v2328_v52, %v2329_v62 }
 0x1b7   : > { %v2337_v18 = vmul.f32 %v4947_v55, %v5035_v17  ;;  %v2338_v54 = vmul.f32 %v4911_v53, %v5100_v46  ;;  %v5249_v13 = vadd.f32 %v2332_v43, %v2331_v45  ;;  %v5251_v28 = vsub.f32 %v2334_v22, %v2335_v11 }
 0x1b8   : > { %v2344_v23 = vmul.f32 %v5232_v60, %v5102_v59  ;;  %v2345_v51 = vmul.f32 %v5235_v20, %v2270_v49  ;;  %v2347_v3 = vmul.f32 %v5235_v20, %v5102_v59  ;;  %v2348_v36 = vmul.f32 %v5232_v60, %v2270_v49 }
 0x1b9   : > { %v2350_v55 = vmul.f32 %v5232_v60, %v5106_v44  ;;  %v2351_v17 = vmul.f32 %v5235_v20, %v2276_v19  ;;  %v2353_v53 = vmul.f32 %v5235_v20, %v5106_v44  ;;  %v2354_v46 = vmul.f32 %v5232_v60, %v2276_v19 }
 0x1ba   : > { %v2356_v50 = vmul.f32 %v5232_v60, %v5110_v26  ;;  %v2357_v61 = vmul.f32 %v5235_v20, %v2282_v31  ;;  %v2359_v59 = vmul.f32 %v5235_v20, %v5110_v26  ;;  %v2360_v49 = vmul.f32 %v5232_v60, %v2282_v31 }
 0x1bb   : > { %v2362_v39 = vmul.f32 %v5232_v60, %v5119_v33  ;;  %v2363_v10 = vmul.f32 %v5235_v20, %v2288_v4  ;;  %v2365_v44 = vmul.f32 %v5235_v20, %v5119_v33  ;;  %v2366_v19 = vmul.f32 %v5232_v60, %v2288_v4 }
 0x1bc   : > { %v2368_v38 = vmul.f32 %v5232_v60, %v5104_v30  ;;  %v2369_v40 = vmul.f32 %v5235_v20, %v5167_v29  ;;  %v2371_v26 = vmul.f32 %v5235_v20, %v5104_v30  ;;  %v2372_v31 = vmul.f32 %v5232_v60, %v5167_v29 }
 0x1bd   : > { %v2374_v9 = vmul.f32 %v5232_v60, %v5108_v27  ;;  %v2375_v33 = vmul.f32 %v5235_v20, %v5169_v32  ;;  %v5289_v12 = vadd.f32 %v2338_v54, %v2337_v18  ;;  %v5291_v4 = vsub.f32 %v2344_v23, %v2345_v51 }
 0x1be   : > { %v2377_v42 = vmul.f32 %v5235_v20, %v5108_v27  ;;  %v2378_v21 = vmul.f32 %v5232_v60, %v5169_v32  ;;  %v5297_v30 = vadd.f32 %v2348_v36, %v2347_v3  ;;  %v5299_v34 = vsub.f32 %v2350_v55, %v2351_v17 }
 0x1bf   : > { %v2380_v29 = vmul.f32 %v5232_v60, %v5112_v8  ;;  %v2381_v0 = vmul.f32 %v5235_v20, %v5173_v24  ;;  %v5305_v15 = vadd.f32 %v2354_v46, %v2353_v53  ;;  %v5307_v7 = vsub.f32 %v2356_v50, %v2357_v61 }
 0x1c0   : > { %v5309_v63 = vadd.f32 %v2360_v49, %v2359_v59  ;;  %v5311_v27 = vsub.f32 %v2362_v39, %v2363_v10  ;;  %v5313_v52 = vadd.f32 %v2366_v19, %v2365_v44  ;;  %v5315_v32 = vsub.f32 %v2368_v38, %v2369_v40 }
 0x1c1   : > { %v5317_v62 = vadd.f32 %v2372_v31, %v2371_v26  ;;  %v5319_v45 = vsub.f32 %v2374_v9, %v2375_v33  ;;  %v5321_v43 = vadd.f32 %v2378_v21, %v2377_v42  ;;  %v2383_v22 = vmul.f32 %v5235_v20, %v5112_v8 }
 0x1c2   : > { %v2384_v11 = vmul.f32 %v5232_v60, %v5173_v24  ;;  %v2386_v18 = vmul.f32 %v5232_v60, %v5159_v48  ;;  %v5329_v54 = vsub.f32 %v2380_v29, %v2381_v0  ;;  %v2387_v23 = vmul.f32 %v5235_v20, %v5175_v58 }
 0x1c3   : > { %v2389_v51 = vmul.f32 %v5235_v20, %v5159_v48  ;;  %v2390_v3 = vmul.f32 %v5232_v60, %v5175_v58  ;;  %v2392_v8 = vmul.f32 %v5232_v60, %v5177_v37  ;;  %v2393_v36 = vmul.f32 %v5235_v20, %v2318_v2 }
 0x1c4   : > { %v2395_v24 = vmul.f32 %v5235_v20, %v5177_v37  ;;  %v2396_v55 = vmul.f32 %v5232_v60, %v2318_v2  ;;  %v2398_v17 = vmul.f32 %v5232_v60, %v5181_v41  ;;  %v2399_v48 = vmul.f32 %v5235_v20, %v2324_v35 }
 0x1c5   : > { %v2401_v58 = vmul.f32 %v5235_v20, %v5181_v41  ;;  %v2402_v53 = vmul.f32 %v5232_v60, %v2324_v35  ;;  %v2404_v46 = vmul.f32 %v5232_v60, %v5187_v6  ;;  %v2405_v37 = vmul.f32 %v5235_v20, %v5243_v57 }
 0x1c6   : > { %v2407_v2 = vmul.f32 %v5235_v20, %v5187_v6  ;;  %v2408_v50 = vmul.f32 %v5232_v60, %v5243_v57  ;;  %v2410_v61 = vmul.f32 %v5232_v60, %v5229_v56  ;;  %v2411_v41 = vmul.f32 %v5235_v20, %v5251_v28 }
 0x1c7   : > { %v2413_v35 = vmul.f32 %v5235_v20, %v5229_v56  ;;  %v2414_v59 = vmul.f32 %v5232_v60, %v5251_v28  ;;  %v2416_v49 = vmul.f32 %v5232_v60, %v5179_v16  ;;  %v2417_v6 = vmul.f32 %v5235_v20, %v5239_v25 }
 0x1c8   : > { %v2419_v57 = vmul.f32 %v5235_v20, %v5179_v16  ;;  %v2420_v39 = vmul.f32 %v5232_v60, %v5239_v25  ;;  %v5377_v10 = vadd.f32 %v2384_v11, %v2383_v22  ;;  %v5379_v44 = vsub.f32 %v2386_v18, %v2387_v23 }
 0x1c9   : > { %v5381_v56 = vadd.f32 %v2390_v3, %v2389_v51  ;;  %v5383_v28 = vsub.f32 %v2392_v8, %v2393_v36  ;;  %v5385_v19 = vadd.f32 %v2396_v55, %v2395_v24  ;;  %v5387_v38 = vsub.f32 %v2398_v17, %v2399_v48 }
 0x1ca   : > { %v2422_v16 = vmul.f32 %v5232_v60, %v5183_v47  ;;  %v2423_v25 = vmul.f32 %v5235_v20, %v5241_v14  ;;  %v5393_v40 = vadd.f32 %v2402_v53, %v2401_v58  ;;  %v5395_v26 = vsub.f32 %v2404_v46, %v2405_v37 }
 0x1cb   : > { %v5397_v31 = vadd.f32 %v2408_v50, %v2407_v2  ;;  %v5399_v9 = vsub.f32 %v2410_v61, %v2411_v41  ;;  %v5401_v33 = vadd.f32 %v2414_v59, %v2413_v35  ;;  %v5403_v42 = vsub.f32 %v2416_v49, %v2417_v6 }
 0x1cc   : > { %v5405_v21 = vadd.f32 %v2420_v39, %v2419_v57  ;;  %v2425_v29 = vmul.f32 %v5235_v20, %v5183_v47  ;;  %v2426_v0 = vmul.f32 %v5232_v60, %v5241_v14  ;;  %v2428_v22 = vmul.f32 %v5232_v60, %v5227_v5 }
 0x1cd   : > { %v5414_v11 = vstv %s5343_s26  ;;  %v5417_v18 = vstv %s5351_s28  ;;  %v5419_v23 = vsub.f32 %v2422_v16, %v2423_v25  ;;  %v2429_v51 = vmul.f32 %v5235_v20, %v5249_v13 }
 0x1ce   : > { %v2431_v3 = vmul.f32 %v5235_v20, %v5227_v5  ;;  %v2432_v47 = vmul.f32 %v5232_v60, %v5249_v13  ;;  %v2434_v14 = vmul.f32 %v5232_v60, %v5237_v1  ;;  %v2435_v8 = vmul.f32 %v5235_v20, %v5289_v12 }
 0x1cf   : > { %v2437_v36 = vmul.f32 %v5235_v20, %v5237_v1  ;;  %v2438_v24 = vmul.f32 %v5232_v60, %v5289_v12  ;;  %v2444_v55 = vmul.f32 %v5414_v11, %v5291_v4  ;;  %v2445_v5 = vmul.f32 %v5417_v18, %v5307_v7 }
 0x1d0   : > { %v2447_v13 = vmul.f32 %v5417_v18, %v5291_v4  ;;  %v2448_v17 = vmul.f32 %v5414_v11, %v5307_v7  ;;  %v2450_v48 = vmul.f32 %v5414_v11, %v5299_v34  ;;  %v2451_v20 = vmul.f32 %v5417_v18, %v5311_v27 }
 0x1d1   : > { %v2453_v60 = vmul.f32 %v5417_v18, %v5299_v34  ;;  %v2454_v1 = vmul.f32 %v5414_v11, %v5311_v27  ;;  %v2456_v12 = vmul.f32 %v5414_v11, %v5297_v30  ;;  %v2457_v4 = vmul.f32 %v5417_v18, %v5309_v63 }
 0x1d2   : > { %v2459_v7 = vmul.f32 %v5417_v18, %v5297_v30  ;;  %v2460_v58 = vmul.f32 %v5414_v11, %v5309_v63  ;;  %v2462_v53 = vmul.f32 %v5414_v11, %v5305_v15  ;;  %v2463_v34 = vmul.f32 %v5417_v18, %v5313_v52 }
 0x1d3   : > { %v2465_v27 = vmul.f32 %v5417_v18, %v5305_v15  ;;  %v2466_v46 = vmul.f32 %v5414_v11, %v5313_v52  ;;  %v5467_v37 = vadd.f32 %v2426_v0, %v2425_v29  ;;  %v5469_v2 = vsub.f32 %v2428_v22, %v2429_v51 }
 0x1d4   : > { %v2468_v30 = vmul.f32 %v5414_v11, %v5315_v32  ;;  %v2469_v63 = vmul.f32 %v5417_v18, %v5329_v54  ;;  %v5475_v50 = vadd.f32 %v2432_v47, %v2431_v3  ;;  %v5477_v61 = vsub.f32 %v2434_v14, %v2435_v8 }
 0x1d5   : > { %v5479_v41 = vadd.f32 %v2438_v24, %v2437_v36  ;;  %v2446_v15 = vsub.f32 %v2444_v55, %v2445_v5  ;;  %v2449_v35 = vadd.f32 %v2448_v17, %v2447_v13  ;;  %v2452_v59 = vsub.f32 %v2450_v48, %v2451_v20 }
 0x1d6   : > { %v2455_v52 = vadd.f32 %v2454_v1, %v2453_v60  ;;  %v2458_v49 = vsub.f32 %v2456_v12, %v2457_v4  ;;  %v2461_v6 = vadd.f32 %v2460_v58, %v2459_v7  ;;  %v2464_v57 = vsub.f32 %v2462_v53, %v2463_v34 }
 0x1d7   : > { %v2467_v39 = vadd.f32 %v2466_v46, %v2465_v27  ;;  %v2471_v16 = vmul.f32 %v5417_v18, %v5315_v32  ;;  %v5483_v25 = vsub.f32 %v2468_v30, %v2469_v63  ;;  %v2472_v29 = vmul.f32 %v5414_v11, %v5329_v54 }
 0x1d8   : > { %v2474_v0 = vmul.f32 %v5414_v11, %v5319_v45  ;;  %v2475_v22 = vmul.f32 %v5417_v18, %v5379_v44  ;;  %v2477_v51 = vmul.f32 %v5417_v18, %v5319_v45  ;;  %v2478_v3 = vmul.f32 %v5414_v11, %v5379_v44 }
 0x1d9   : > { %v2480_v32 = vmul.f32 %v5414_v11, %v5317_v62  ;;  %v2481_v47 = vmul.f32 %v5417_v18, %v5377_v10  ;;  %v2483_v54 = vmul.f32 %v5417_v18, %v5317_v62  ;;  %v2484_v14 = vmul.f32 %v5414_v11, %v5377_v10 }
 0x1da   : > { %v2486_v8 = vmul.f32 %v5414_v11, %v5321_v43  ;;  %v2487_v45 = vmul.f32 %v5417_v18, %v5381_v56  ;;  %v2489_v44 = vmul.f32 %v5417_v18, %v5321_v43  ;;  %v2490_v36 = vmul.f32 %v5414_v11, %v5381_v56 }
 0x1db   : > { %v2492_v24 = vmul.f32 %v5414_v11, %v5383_v28  ;;  %v2493_v62 = vmul.f32 %v5417_v18, %v5395_v26  ;;  %v2495_v10 = vmul.f32 %v5417_v18, %v5383_v28  ;;  %v2496_v55 = vmul.f32 %v5414_v11, %v5395_v26 }
 0x1dc   : > { %v2498_v5 = vmul.f32 %v5414_v11, %v5387_v38  ;;  %v2499_v43 = vmul.f32 %v5417_v18, %v5399_v9  ;;  %v2501_v56 = vmul.f32 %v5417_v18, %v5387_v38  ;;  %v2502_v13 = vmul.f32 %v5414_v11, %v5399_v9 }
 0x1dd   : > { %v2504_v17 = vmul.f32 %v5414_v11, %v5385_v19  ;;  %v2505_v28 = vmul.f32 %v5417_v18, %v5397_v31  ;;  %v2473_v48 = vadd.f32 %v2472_v29, %v2471_v16  ;;  %v2476_v26 = vsub.f32 %v2474_v0, %v2475_v22 }
 0x1de   : > { %v2479_v20 = vadd.f32 %v2478_v3, %v2477_v51  ;;  %v2482_v60 = vsub.f32 %v2480_v32, %v2481_v47  ;;  %v2485_v1 = vadd.f32 %v2484_v14, %v2483_v54  ;;  %v2488_v12 = vsub.f32 %v2486_v8, %v2487_v45 }
 0x1df   : > { %v2491_v4 = vadd.f32 %v2490_v36, %v2489_v44  ;;  %v5531_v7 = vsub.f32 %v2492_v24, %v2493_v62  ;;  %v2507_v38 = vmul.f32 %v5417_v18, %v5385_v19  ;;  %v2508_v9 = vmul.f32 %v5414_v11, %v5397_v31 }
 0x1e0   : > { %v2510_v58 = vmul.f32 %v5414_v11, %v5393_v40  ;;  %v2511_v53 = vmul.f32 %v5417_v18, %v5401_v33  ;;  %v5541_v34 = vadd.f32 %v2496_v55, %v2495_v10  ;;  %v2500_v27 = vsub.f32 %v2498_v5, %v2499_v43 }
 0x1e1   : > { %v5543_v46 = vadd.f32 %v2502_v13, %v2501_v56  ;;  %v5545_v30 = vsub.f32 %v2504_v17, %v2505_v28  ;;  %v2540_v63 = vmul.f32 %v2446_v15, %v2446_v15  ;;  %v2541_v16 = vmul.f32 %v2452_v59, %v2452_v59 }
 0x1e2   : > { %v2543_v29 = vmul.f32 %v2449_v35, %v2449_v35  ;;  %v2544_v19 = vmul.f32 %v2455_v52, %v2455_v52  ;;  %v2513_v31 = vmul.f32 %v5417_v18, %v5393_v40  ;;  %v2514_v0 = vmul.f32 %v5414_v11, %v5401_v33 }
 0x1e3   : > { %v2516_v22 = vmul.f32 %v5414_v11, %v5403_v42  ;;  %v2517_v51 = vmul.f32 %v5417_v18, %v5469_v2  ;;  %v5555_v3 = vadd.f32 %v2508_v9, %v2507_v38  ;;  %v2512_v32 = vsub.f32 %v2510_v58, %v2511_v53 }
 0x1e4   : > { %v2546_v47 = vmul.f32 %v2458_v49, %v2458_v49  ;;  %v2547_v15 = vmul.f32 %v2464_v57, %v2464_v57  ;;  %v2519_v35 = vmul.f32 %v5417_v18, %v5403_v42  ;;  %v2520_v40 = vmul.f32 %v5414_v11, %v5469_v2 }
 0x1e5   : > { %v2522_v33 = vmul.f32 %v5414_v11, %v5419_v23  ;;  %v2523_v59 = vmul.f32 %v5417_v18, %v5477_v61  ;;  %v2542_v52 = vadd.f32 %v2541_v16, %v2540_v63  ;;  %v2545_v54 = vadd.f32 %v2544_v19, %v2543_v29 }
 0x1e6   : > { %v2549_v14 = vmul.f32 %v2461_v6, %v2461_v6  ;;  %v2550_v8 = vmul.f32 %v2467_v39, %v2467_v39  ;;  %v2515_v45 = vadd.f32 %v2514_v0, %v2513_v31  ;;  %v5565_v44 = vsub.f32 %v2516_v22, %v2517_v51 }
 0x1e7   : > { %v2525_v49 = vmul.f32 %v5417_v18, %v5419_v23  ;;  %v2526_v42 = vmul.f32 %v5414_v11, %v5477_v61  ;;  %v2528_v2 = vmul.f32 %v5414_v11, %v5405_v21  ;;  %v2548_v57 = vadd.f32 %v2547_v15, %v2546_v47 }
 0x1e8   : > { %v2552_v36 = vmul.f32 %v5483_v25, %v5483_v25  ;;  %v2553_v24 = vmul.f32 %v2476_v26, %v2476_v26  ;;  %v5575_v62 = vadd.f32 %v2520_v40, %v2519_v35  ;;  %v2524_v6 = vsub.f32 %v2522_v33, %v2523_v59 }
 0x1e9   : > { %v2529_v39 = vmul.f32 %v5417_v18, %v5475_v50  ;;  %v2531_v23 = vmul.f32 %v5417_v18, %v5405_v21  ;;  %v2551_v10 = vadd.f32 %v2550_v8, %v2549_v14  ;;  %v2555_v55 = vmul.f32 %v2473_v48, %v2473_v48 }
 0x1ea   : > { %v2556_v61 = vmul.f32 %v2479_v20, %v2479_v20  ;;  %v2588_v5 = vadd.f32 %v2545_v54, %v2542_v52  ;;  %v2527_v43 = vadd.f32 %v2526_v42, %v2525_v49  ;;  %v2558_v56 = vmul.f32 %v2482_v60, %v2482_v60 }
 0x1eb   : > { %v2559_v13 = vmul.f32 %v2488_v12, %v2488_v12  ;;  %v2629_v17 = vsub.f32 %v2542_v52, %v2545_v54  ;;  %v2532_v25 = vmul.f32 %v5414_v11, %v5475_v50  ;;  %v2554_v28 = vadd.f32 %v2553_v24, %v2552_v36 }
 0x1ec   : > { %v2589_v26 = vadd.f32 %v2588_v5, %v2548_v57  ;;  %v2615_v38 = vsub.f32 %v2588_v5, %v2548_v57  ;;  %v2534_v9 = vmul.f32 %v5414_v11, %v5467_v37  ;;  %v2561_v58 = vmul.f32 %v2485_v1, %v2485_v1 }
 0x1ed   : > { %v2562_v53 = vmul.f32 %v2491_v4, %v2491_v4  ;;  %v2630_v21 = vadd.f32 %v2629_v17, %v2548_v57  ;;  %v2535_v48 = vmul.f32 %v5417_v18, %v5479_v41  ;;  %v2557_v20 = vadd.f32 %v2556_v61, %v2555_v55 }
 0x1ee   : > { %v2590_v63 = vadd.f32 %v2589_v26, %v2551_v10  ;;  %v2616_v60 = vsub.f32 %v2615_v38, %v2551_v10  ;;  %v2530_v12 = vsub.f32 %v2528_v2, %v2529_v39  ;;  %v2560_v16 = vadd.f32 %v2559_v13, %v2558_v56 }
 0x1ef   : > { %v2564_v50 = vmul.f32 %v5531_v7, %v5531_v7  ;;  %v2631_v29 = vsub.f32 %v2630_v21, %v2551_v10  ;;  %v2565_v19 = vmul.f32 %v2500_v27, %v2500_v27  ;;  %v2537_v1 = vmul.f32 %v5417_v18, %v5467_v37 }
 0x1f0   : > { %v2591_v31 = vadd.f32 %v2590_v63, %v2554_v28  ;;  %v2603_v0 = vsub.f32 %v2590_v63, %v2554_v28  ;;  %v2617_v22 = vadd.f32 %v2616_v60, %v2554_v28  ;;  %v2563_v4 = vadd.f32 %v2562_v53, %v2561_v58 }
 0x1f1   : > { %v2567_v51 = vmul.f32 %v5541_v34, %v5541_v34  ;;  %v2632_v47 = vadd.f32 %v2631_v29, %v2554_v28  ;;  %v2568_v15 = vmul.f32 %v5543_v46, %v5543_v46  ;;  %v2538_v7 = vmul.f32 %v5414_v11, %v5479_v41 }
 0x1f2   : > { %v2592_v35 = vadd.f32 %v2591_v31, %v2557_v20  ;;  %v2604_v40 = vsub.f32 %v2603_v0, %v2557_v20  ;;  %v2618_v33 = vadd.f32 %v2617_v22, %v2557_v20  ;;  %v2570_v27 = vmul.f32 %v5545_v30, %v5545_v30 }
 0x1f3   : > { %v2571_v59 = vmul.f32 %v2512_v32, %v2512_v32  ;;  %v2633_v52 = vsub.f32 %v2632_v47, %v2557_v20  ;;  %v2566_v18 = vadd.f32 %v2565_v19, %v2564_v50  ;;  %v2533_v34 = vadd.f32 %v2532_v25, %v2531_v23 }
 0x1f4   : > { %v2593_v37 = vadd.f32 %v2592_v35, %v2560_v16  ;;  %v2605_v54 = vsub.f32 %v2604_v40, %v2560_v16  ;;  %v2619_v14 = vsub.f32 %v2618_v33, %v2560_v16  ;;  %v2573_v8 = vmul.f32 %v5555_v3, %v5555_v3 }
 0x1f5   : > { %v2574_v46 = vmul.f32 %v2515_v45, %v2515_v45  ;;  %v2634_v49 = vadd.f32 %v2633_v52, %v2560_v16  ;;  %v2569_v42 = vadd.f32 %v2568_v15, %v2567_v51  ;;  %v2536_v11 = vsub.f32 %v2534_v9, %v2535_v48 }
 0x1f6   : > { %v2594_v2 = vadd.f32 %v2593_v37, %v2563_v4  ;;  %v2606_v57 = vsub.f32 %v2605_v54, %v2563_v4  ;;  %v2620_v36 = vsub.f32 %v2619_v14, %v2563_v4  ;;  %v2572_v41 = vadd.f32 %v2571_v59, %v2570_v27 }
 0x1f7   : > { %v2576_v30 = vmul.f32 %v5565_v44, %v5565_v44  ;;  %v2635_v32 = vsub.f32 %v2634_v49, %v2563_v4  ;;  %v2577_v24 = vmul.f32 %v2524_v6, %v2524_v6  ;;  %v2539_v23 = vadd.f32 %v2538_v7, %v2537_v1 }
 0x1f8   : > { %v2595_v39 = vsub.f32 %v2594_v2, %v2566_v18  ;;  %v2607_v10 = vadd.f32 %v2606_v57, %v2566_v18  ;;  %v2621_v55 = vadd.f32 %v2620_v36, %v2566_v18  ;;  %v2575_v61 = vadd.f32 %v2574_v46, %v2573_v8 }
 0x1f9   : > { %v2579_v3 = vmul.f32 %v5575_v62, %v5575_v62  ;;  %v2636_v45 = vadd.f32 %v2635_v32, %v2566_v18  ;;  %v2580_v5 = vmul.f32 %v2527_v43, %v2527_v43  ;;  %v2582_v25 = vmul.f32 %v2530_v12, %v2530_v12 }
 0x1fa   : > { %v2596_v56 = vsub.f32 %v2595_v39, %v2569_v42  ;;  %v2608_v13 = vadd.f32 %v2607_v10, %v2569_v42  ;;  %v2622_v17 = vadd.f32 %v2621_v55, %v2569_v42  ;;  %v2583_v28 = vmul.f32 %v2536_v11, %v2536_v11 }
 0x1fb   : > { %v2637_v26 = vsub.f32 %v2636_v45, %v2569_v42  ;;  %v2578_v44 = vadd.f32 %v2577_v24, %v2576_v30  ;;  %v2585_v58 = vmul.f32 %v2533_v34, %v2533_v34  ;;  %v2586_v53 = vmul.f32 %v2539_v23, %v2539_v23 }
 0x1fc   : > { %v2597_v38 = vsub.f32 %v2596_v56, %v2572_v41  ;;  %v2609_v6 = vadd.f32 %v2608_v13, %v2572_v41  ;;  %v2623_v9 = vsub.f32 %v2622_v17, %v2572_v41  ;;  %v2581_v48 = vadd.f32 %v2580_v5, %v2579_v3 }
 0x1fd   : > { %v2638_v21 = vadd.f32 %v2637_v26, %v2572_v41  ;;  %v2584_v43 = vadd.f32 %v2583_v28, %v2582_v25  ;;  %v2587_v19 = vadd.f32 %v2586_v53, %v2585_v58 }
 0x1fe   : > { %v2598_v20 = vsub.f32 %v2597_v38, %v2575_v61  ;;  %v2610_v63 = vadd.f32 %v2609_v6, %v2575_v61  ;;  %v2624_v62 = vsub.f32 %v2623_v9, %v2575_v61 }
 0x1ff   : > { %v2639_v60 = vsub.f32 %v2638_v21, %v2575_v61 }
 0x200   : > { %v2599_v16 = vsub.f32 %v2598_v20, %v2578_v44  ;;  %v2611_v50 = vsub.f32 %v2610_v63, %v2578_v44  ;;  %v2625_v12 = vadd.f32 %v2624_v62, %v2578_v44 }
 0x201   : > { %v2640_v29 = vadd.f32 %v2639_v60, %v2578_v44 }
 0x202   : > { %v2600_v31 = vsub.f32 %v2599_v16, %v2581_v48  ;;  %v2612_v0 = vsub.f32 %v2611_v50, %v2581_v48  ;;  %v2626_v22 = vadd.f32 %v2625_v12, %v2581_v48 }
 0x203   : > { %v2641_v1 = vsub.f32 %v2640_v29, %v2581_v48 }
 0x204   : > { %v2601_v4 = vsub.f32 %v2600_v31, %v2584_v43  ;;  %v2613_v51 = vsub.f32 %v2612_v0, %v2584_v43  ;;  %v2627_v47 = vsub.f32 %v2626_v22, %v2584_v43 }
 0x205   : > { %v2642_v15 = vadd.f32 %v2641_v1, %v2584_v43 }
 0x206   : > { %v2602_v35 = vsub.f32 %v2601_v4, %v2587_v19  ;;  %v2614_v40 = vsub.f32 %v2613_v51, %v2587_v19  ;;  %v2628_v33 = vsub.f32 %v2627_v47, %v2587_v19 }
 0x207   : > { %v2643_v7 = vsub.f32 %v2642_v15, %v2587_v19 }
 0x208   : > { %2644 = vst [vmem:[%s216_s8] sm:$0xff] %v2602_v35 }
 0x209   : > { %2645 = vst [vmem:[%s216_s8 + $0x8] sm:$0xff] %v2614_v40 }
 0x20a   : > { %2646 = vst [vmem:[%s216_s8 + $0x10] sm:$0xff] %v2628_v33 }
 0x20b   : > { %2647 = vst [vmem:[%s216_s8 + $0x18] sm:$0xff] %v2643_v7 }
 0x20c   : > { %3049 = shalt.err (!%p3046_p8)
}
 0x20d   : > { %s3110_s13 = smov 128   ;;  %s3111_s14 = smov 256  }
 0x20e   : > { %s3112_s15 = smov 8  }
 0x20f   : > { %2889 = dma.vmem_to_hbm [thread:$0]  (%p3185_p11), %s2661_s10, 512, %s2663_s17, %s2649_s19, %s3110_s13, %s3111_s14, %s3112_s15  }
 0x210 PF: > { %s5707_s16 = sld [smem:[#allocation14_spill]] }
 0x211   : > { %s5709_s21 = sld [smem:[#allocation17_spill]] }
 0x216   : > { %s2677_s24 = sand.u32 1, %s5707_s16  }
 0x217   : > { %p5710_p9 = scmp.ge.s32.totalorder %s5709_s21, 2  ;;  %s2678_s25 = scalar_lea.sflag [#allocation4], %s2677_s24 }
 0x219   : > { %p2903_p10 = pnand %p5710_p9, %p3189_p12 }
 0x21b   : > { %p2904_p1 = pneg %p2903_p10 }
 0x21d   : > { %3079 = dma.done.wait (%p2904_p1), %s2678_s25, 512  }
 0x21e   : > { %3081 = vsyncadd (%p2904_p1), %s2678_s25, 4294966784  ;;  %s5711_s15 = sld [smem:[#allocation19_spill]] }
 0x21f   : > { %s5712_s12 = sld [smem:[#allocation15_spill]] }
 0x220   : > { %s5713_s13 = sld [smem:[#allocation16_spill]] }
 0x221   : > { %s5714_s14 = sld [smem:[#allocation20_spill]] }
 0x224   : > { %p18_p2 = scmp.ge.s32.totalorder %s5711_s15, 4  }
 0x226   :  { %20 = sbr.rel (!%p18_p2) target bundleno = 12 (0xc), region = 89 }
 0x22b   :  { %2684 = vsyncpa [#allocation3], 1 }
 0x22c   :  { %2686 = vsyncpa [#allocation3 + $0x1], 1 }
 0x22d   :  { %2687 = vsyncpa [#allocation4], 1 }
 0x22e   :  { %2689 = vsyncpa [#allocation4 + $0x1], 1 }
 0x22f   :  { %2690 = vsyncpa [#allocation5], 1 }
 0x230   :  { %2692 = vsyncpa [#allocation5 + $0x1], 1 }
 0x231   :  { %2693 = vsyncpa [#allocation7], 1 }

</bundles_post_ra>
